<compile_context>
chip_gen: v7x
topology: tpu7x:2x2x1
jax: 0.10.0
libtpu: 0.0.40
codegen_flags: <defaults>
</compile_context>

<pallas_src>
import jax
import jax.numpy as jnp
from jax import lax
from jax.experimental import pallas as pl
from jax.experimental.pallas import tpu as pltpu


def _detecter_kernel(dist_ref, nodes_k_ref, nodes_m_ref, w_enc_ref, w_dist_ref,
                     b_enc_ref, w_lin_ref, b_lin_ref, out_ref, msg_ref):
    """Grid = (row tiles ["parallel"], dist-K tiles ["arbitrary" reduction])."""
    k = pl.program_id(1)
    num_k = pl.num_programs(1)
    tm = msg_ref.shape[0]

    # ---- init the message accumulator for this row tile ----
    @pl.when(k == 0)
    def _init():
        msg_ref[...] = jnp.zeros_like(msg_ref)

    # ---- stream dist: msg += dist_tile @ nodes_k (lane-0-aligned f32 acc) ----
    msg_ref[...] += jnp.dot(dist_ref[...], nodes_k_ref[...],
                            preferred_element_type=jnp.float32)

    # ---- epilogue on the last K step: encoder + pairing + Linear(H, 1) ----
    @pl.when(k == num_k - 1)
    def _finalize():
        pre = (jnp.dot(nodes_m_ref[...], w_enc_ref[...],
                       preferred_element_type=jnp.float32)
               + jnp.dot(msg_ref[...], w_dist_ref[...],
                         preferred_element_type=jnp.float32)
               + b_enc_ref[...])
        hidden = jnp.tanh(pre)                                   # (TM, H) f32

        # Even/odd pairing via sublane roll: row m holds hidden[m]*hidden[m+1].
        # Odd rows are junk and dropped in the wrapper (tm is even).
        shifted = pltpu.roll(hidden, shift=tm - 1, axis=0)       # hidden[m+1]
        prod = hidden * shifted                                  # (TM, H)

        # Linear(H, 1) as an MXU NT contraction producing the lane-dense
        # (., TM) row directly -- no (TM, H) XLU transpose.  w_lin is padded
        # to 8 sublanes in the wrapper; row 0 carries the real weights.
        scores8 = lax.dot_general(w_lin_ref[...], prod,
                                  dimension_numbers=(((1,), (1,)), ((), ())),
                                  preferred_element_type=jnp.float32)  # (8, TM)
        out_ref[...] = scores8[0:1, :] + b_lin_ref[0, 0]


def _pick_tile(n, target, unit=128):
    """Largest multiple of `unit` that divides n and is <= target (n % unit == 0)."""
    t = min(target, n)
    t -= t % unit
    t = max(t, unit)
    while t > unit and n % t:
        t -= unit
    return t


def detecter_forward(nodes, dist, params, *, tm=512, tk=512,
                     compute_dtype=jnp.bfloat16):
    """Fused Detecter forward.

    compute_dtype controls only the streamed O(N^2) dist / nodes-K operands;
    accumulation and all elementwise math stay float32 (v5e-safe).  Pass
    compute_dtype=jnp.float32 for a tight-tolerance check mode.
    """
    n, d_in = nodes.shape
    assert n % 2 == 0, "Detecter pairs consecutive rows; N must be even"
    h = params["w_enc"].shape[1]

    if n % 128 == 0:
        tm = _pick_tile(n, tm)
        tk = _pick_tile(n, tk)
        # Keep >= 2 row tiles so the "parallel" axis can split across v7x's
        # two TensorCores (no-op on single-TC v5e/v6e).
        if n // tm < 2 and tm % 256 == 0:
            tm //= 2
    else:
        # Ragged N: fall back to whole-array blocks (full dims are always legal).
        tm = tk = n
    num_m, num_k = n // tm, n // tk

    # ---- weight prep (once per call, outside the kernel) ----
    b_enc = params["b_enc"].reshape(1, h).astype(jnp.float32)
    # Pad Linear(128,1) weights to 8 sublanes; only row 0 is real.
    w_lin = jnp.zeros((8, h), jnp.float32).at[0].set(
        params["w_lin"].reshape(h).astype(jnp.float32))
    b_lin = params["b_lin"].reshape(1, 1).astype(jnp.float32)

    # Streamed operands honor compute_dtype (bf16 halves HBM traffic on the
    # dominant dist stream); accumulation stays f32.
    # TODO(synk): on v7x, an fp8 dist stream is a further ~2x HBM win if the
    # dist dynamic range tolerates it (validate numerically before enabling).
    dist_c = dist.astype(compute_dtype)
    nodes_k = nodes.astype(compute_dtype)
    nodes_f32 = nodes.astype(jnp.float32)

    # VMEM budget: double-buffered streams + resident weights + scratch,
    # clamped to <= 48 MiB (safe on v7x's 64 MiB physical VMEM).
    csize = jnp.dtype(compute_dtype).itemsize
    vmem_est = (2 * tm * tk * csize          # dist double buffer
                + 2 * tk * d_in * csize      # nodes (K stream)
                + 2 * tm * d_in * 4          # nodes (row tile)
                + 2 * (2 * d_in * h + 9 * h) * 4   # weights / biases
                + tm * d_in * 4              # msg accumulator scratch
                + 2 * tm * 4)                # output row
    vmem_limit = int(min(48 * 2 ** 20, max(32 * 2 ** 20, 2 * vmem_est)))

    out = pl.pallas_call(
        _detecter_kernel,
        grid=(num_m, num_k),
        in_specs=[
            # dist tile: the dominant HBM stream.
            # TODO(synk): add pipeline_mode=pl.Buffered(3) here if a profile
            # still shows exposed dist DMA at these tile sizes.
            pl.BlockSpec((tm, tk), lambda i, k: (i, k)),
            pl.BlockSpec((tk, d_in), lambda i, k: (k, 0)),      # nodes (K stream)
            pl.BlockSpec((tm, d_in), lambda i, k: (i, 0)),      # nodes (row tile)
            pl.BlockSpec((d_in, h), lambda i, k: (0, 0)),       # W_enc (resident)
            pl.BlockSpec((d_in, h), lambda i, k: (0, 0)),       # W_dist (resident)
            pl.BlockSpec((1, h), lambda i, k: (0, 0)),          # b_enc row
            pl.BlockSpec((8, h), lambda i, k: (0, 0)),          # w_lin (padded)
            pl.BlockSpec(memory_space=pltpu.SMEM),              # b_lin scalar
        ],
        out_specs=pl.BlockSpec((1, tm), lambda i, k: (0, i)),   # lane-dense row
        out_shape=jax.ShapeDtypeStruct((1, n), jnp.float32),
        scratch_shapes=[pltpu.VMEM((tm, d_in), jnp.float32)],   # msg accumulator
        compiler_params=pltpu.CompilerParams(
            dimension_semantics=("parallel", "arbitrary"),
            vmem_limit_bytes=vmem_limit),
    )(dist_c, nodes_k, nodes_f32, params["w_enc"].astype(jnp.float32),
      params["w_dist"].astype(jnp.float32), b_enc, w_lin, b_lin)

    # All N per-row scores come back lane-dense; keep the even (valid) rows.
    return out.reshape(n)[0::2]


def detecter_reference(nodes, dist, params, compute_dtype=jnp.float32):
    msg = jnp.dot(dist.astype(compute_dtype), nodes.astype(compute_dtype),
                  preferred_element_type=jnp.float32)
    hidden = jnp.tanh(nodes @ params["w_enc"] + msg @ params["w_dist"]
                      + params["b_enc"])
    prod = hidden[0::2] * hidden[1::2]
    return (jnp.sum(prod * params["w_lin"].reshape(1, -1), axis=-1)
            + params["b_lin"][0, 0])


def init_params(key, d_in, hidden_dim):
    k1, k2, k3, k4, k5 = jax.random.split(key, 5)
    return {
        "w_enc": jax.random.normal(k1, (d_in, hidden_dim), jnp.float32) * 0.1,
        "w_dist": jax.random.normal(k2, (d_in, hidden_dim), jnp.float32) * 0.1,
        "b_enc": jax.random.normal(k3, (1, hidden_dim), jnp.float32) * 0.1,
        # torch.nn.Linear(128, 1): weight shape (1, 128), bias shape (1,)
        "w_lin": jax.random.normal(k4, (1, hidden_dim), jnp.float32) * 0.1,
        "b_lin": jax.random.normal(k5, (1, 1), jnp.float32) * 0.1,
    }


if __name__ == "__main__":
    # N=1024 exercises the streaming grid (tm=tk=512 -> num_m=2, num_k=2) while
    # staying small; encoder hidden = 128 as required by Linear(128, 1).
    N, D_IN, H = 1024, 32, 128
    key = jax.random.PRNGKey(0)
    k_nodes, k_dist, k_params = jax.random.split(key, 3)

    nodes = jax.random.normal(k_nodes, (N, D_IN), jnp.float32)
    dist = jax.random.normal(k_dist, (N, N), jnp.float32) * (1.0 / N ** 0.5)
    params = init_params(k_params, D_IN, H)

    # f32 "check mode": tight comparison against the f32 reference.
    score_f32 = jax.block_until_ready(
        detecter_forward(nodes, dist, params, compute_dtype=jnp.float32))
    ref_f32 = detecter_reference(nodes, dist, params, jnp.float32)
    assert score_f32.shape == (N // 2,), score_f32.shape
    err_f32 = float(jnp.max(jnp.abs(score_f32 - ref_f32)))
    assert jnp.allclose(score_f32, ref_f32, atol=1e-3, rtol=1e-3), err_f32

    # Default mode (bf16 dist stream) against a bf16-matched reference.
    score_bf = jax.block_until_ready(detecter_forward(nodes, dist, params))
    ref_bf = detecter_reference(nodes, dist, params, jnp.bfloat16)
    assert score_bf.shape == (N // 2,), score_bf.shape
    err_bf = float(jnp.max(jnp.abs(score_bf - ref_bf)))
    assert jnp.allclose(score_bf, ref_bf, atol=5e-3, rtol=5e-3), err_bf

    print("KERNEL_OK")
</pallas_src>

<mosaic_0001>
module attributes {stable_mosaic.version = 11 : i64} {
  func.func @_detecter_kernel(%arg0: i32, %arg1: i32, %arg2: memref<512x512xf32, #tpu.memory_space<vmem>>, %arg3: memref<512x32xf32, #tpu.memory_space<vmem>>, %arg4: memref<512x32xf32, #tpu.memory_space<vmem>>, %arg5: memref<32x128xf32, #tpu.memory_space<vmem>>, %arg6: memref<32x128xf32, #tpu.memory_space<vmem>>, %arg7: memref<1x128xf32, #tpu.memory_space<vmem>>, %arg8: memref<8x128xf32, #tpu.memory_space<vmem>>, %arg9: memref<1x1xf32, #tpu.memory_space<smem>>, %arg10: memref<1x512xf32, #tpu.memory_space<vmem>>, %arg11: memref<512x32xf32, #tpu.memory_space<vmem>>) attributes {dimension_semantics = [#tpu.dimension_semantics<parallel>, #tpu.dimension_semantics<arbitrary>], iteration_bounds = array<i64: 2, 2>, scalar_prefetch = 0 : i64, scratch_operands = 1 : i64, tpu.core_type = #tpu.core_type<tc>, window_params = [{transform_indices = @transform_0, window_bounds = array<i64: 512, 512>}, {transform_indices = @transform_1, window_bounds = array<i64: 512, 32>}, {transform_indices = @transform_2, window_bounds = array<i64: 512, 32>}, {pipeline_mode = #tpu.pipeline_mode<synchronous>, transform_indices = @transform_3, window_bounds = array<i64: 32, 128>}, {pipeline_mode = #tpu.pipeline_mode<synchronous>, transform_indices = @transform_4, window_bounds = array<i64: 32, 128>}, {pipeline_mode = #tpu.pipeline_mode<synchronous>, transform_indices = @transform_5, window_bounds = array<i64: 1, 128>}, {pipeline_mode = #tpu.pipeline_mode<synchronous>, transform_indices = @transform_6, window_bounds = array<i64: 8, 128>}, {transform_indices = @transform_7, window_bounds = array<i64: 1, 1>}, {transform_indices = @transform_8, window_bounds = array<i64: 1, 512>}]} {
    %c0_i32 = arith.constant 0 : i32
    %0 = arith.cmpi eq, %arg1, %c0_i32 : i32
    %1 = arith.extui %0 : i1 to i32
    %c0_i32_0 = arith.constant 0 : i32
    %2 = arith.cmpi ne, %1, %c0_i32_0 : i32
    scf.if %2 {
      %cst_9 = arith.constant 0.000000e+00 : f32
      %12 = vector.broadcast %cst_9 : f32 to vector<512x32xf32>
      %c0_10 = arith.constant 0 : index
      %c0_11 = arith.constant 0 : index
      %13 = vector.load %arg11[%c0_10, %c0_11] : memref<512x32xf32, #tpu.memory_space<vmem>>, vector<512x32xf32>
      tpu.vector_store %arg11[%c0_10, %c0_11], %12 {strides = array<i32>} : memref<512x32xf32, #tpu.memory_space<vmem>>, vector<512x32xf32>,
    } else {
    }
    %c0 = arith.constant 0 : index
    %c0_1 = arith.constant 0 : index
    %3 = vector.load %arg11[%c0, %c0_1] : memref<512x32xf32, #tpu.memory_space<vmem>>, vector<512x32xf32>
    %c0_2 = arith.constant 0 : index
    %c0_3 = arith.constant 0 : index
    %4 = vector.load %arg2[%c0_2, %c0_3] : memref<512x512xf32, #tpu.memory_space<vmem>>, vector<512x512xf32>
    %c0_4 = arith.constant 0 : index
    %c0_5 = arith.constant 0 : index
    %5 = vector.load %arg3[%c0_4, %c0_5] : memref<512x32xf32, #tpu.memory_space<vmem>>, vector<512x32xf32>
    %cst = arith.constant dense<0.000000e+00> : vector<512x32xf32>
    %6 = tpu.matmul %4, %5, %cst {dimension_numbers = #tpu.dot_dimension_numbers<[1], [0], [0], [1], [0, 0, 1, 1], [], []>} : vector<512x512xf32>, vector<512x32xf32>, vector<512x32xf32> -> vector<512x32xf32>
    %7 = arith.addf %3, %6 : vector<512x32xf32>
    %c0_6 = arith.constant 0 : index
    %c0_7 = arith.constant 0 : index
    %8 = vector.load %arg11[%c0_6, %c0_7] : memref<512x32xf32, #tpu.memory_space<vmem>>, vector<512x32xf32>
    tpu.vector_store %arg11[%c0_6, %c0_7], %7 {strides = array<i32>} : memref<512x32xf32, #tpu.memory_space<vmem>>, vector<512x32xf32>,
    %c1_i32 = arith.constant 1 : i32
    %9 = arith.cmpi eq, %arg1, %c1_i32 : i32
    %10 = arith.extui %9 : i1 to i32
    %c0_i32_8 = arith.constant 0 : i32
    %11 = arith.cmpi ne, %10, %c0_i32_8 : i32
    scf.if %11 {
      %c0_9 = arith.constant 0 : index
      %c0_10 = arith.constant 0 : index
      %12 = vector.load %arg4[%c0_9, %c0_10] : memref<512x32xf32, #tpu.memory_space<vmem>>, vector<512x32xf32>
      %c0_11 = arith.constant 0 : index
      %c0_12 = arith.constant 0 : index
      %13 = vector.load %arg5[%c0_11, %c0_12] : memref<32x128xf32, #tpu.memory_space<vmem>>, vector<32x128xf32>
      %cst_13 = arith.constant dense<0.000000e+00> : vector<512x128xf32>
      %14 = tpu.matmul %12, %13, %cst_13 {dimension_numbers = #tpu.dot_dimension_numbers<[1], [0], [0], [1], [0, 0, 1, 1], [], []>} : vector<512x32xf32>, vector<32x128xf32>, vector<512x128xf32> -> vector<512x128xf32>
      %c0_14 = arith.constant 0 : index
      %c0_15 = arith.constant 0 : index
      %15 = vector.load %arg11[%c0_14, %c0_15] : memref<512x32xf32, #tpu.memory_space<vmem>>, vector<512x32xf32>
      %c0_16 = arith.constant 0 : index
      %c0_17 = arith.constant 0 : index
      %16 = vector.load %arg6[%c0_16, %c0_17] : memref<32x128xf32, #tpu.memory_space<vmem>>, vector<32x128xf32>
      %cst_18 = arith.constant dense<0.000000e+00> : vector<512x128xf32>
      %17 = tpu.matmul %15, %16, %cst_18 {dimension_numbers = #tpu.dot_dimension_numbers<[1], [0], [0], [1], [0, 0, 1, 1], [], []>} : vector<512x32xf32>, vector<32x128xf32>, vector<512x128xf32> -> vector<512x128xf32>
      %18 = arith.addf %14, %17 : vector<512x128xf32>
      %c0_19 = arith.constant 0 : index
      %c0_20 = arith.constant 0 : index
      %19 = vector.load %arg7[%c0_19, %c0_20] : memref<1x128xf32, #tpu.memory_space<vmem>>, vector<1x128xf32>
      %20 = vector.broadcast %19 : vector<1x128xf32> to vector<512x128xf32>
      %21 = arith.addf %18, %20 : vector<512x128xf32>
      %22 = math.tanh %21 : vector<512x128xf32>
      %c511_i32 = arith.constant 511 : i32
      %23 = tpu.dynamic_rotate %22 by %c511_i32 dim 0 : vector<512x128xf32>, i32 -> vector<512x128xf32>
      %24 = arith.mulf %22, %23 : vector<512x128xf32>
      %c0_21 = arith.constant 0 : index
      %c0_22 = arith.constant 0 : index
      %25 = vector.load %arg8[%c0_21, %c0_22] : memref<8x128xf32, #tpu.memory_space<vmem>>, vector<8x128xf32>
      %cst_23 = arith.constant dense<0.000000e+00> : vector<8x512xf32>
      %26 = tpu.matmul %25, %24, %cst_23 {dimension_numbers = #tpu.dot_dimension_numbers<[1], [1], [0], [0], [0, 0, 1, 0], [], []>} : vector<8x128xf32>, vector<512x128xf32>, vector<8x512xf32> -> vector<8x512xf32>
      %27 = vector.extract_strided_slice %26 {offsets = [0, 0], sizes = [1, 512], strides = [1, 1]} : vector<8x512xf32> to vector<1x512xf32>
      %c0_24 = arith.constant 0 : index
      %c0_25 = arith.constant 0 : index
      %28 = memref.load %arg9[%c0_24, %c0_25] : memref<1x1xf32, #tpu.memory_space<smem>>
      %29 = vector.broadcast %28 : f32 to vector<1x512xf32>
      %30 = arith.addf %27, %29 : vector<1x512xf32>
      %c0_26 = arith.constant 0 : index
      %c0_27 = arith.constant 0 : index
      %31 = vector.load %arg10[%c0_26, %c0_27] : memref<1x512xf32, #tpu.memory_space<vmem>>, vector<1x512xf32>
      tpu.vector_store %arg10[%c0_26, %c0_27], %30 {strides = array<i32>} : memref<1x512xf32, #tpu.memory_space<vmem>>, vector<1x512xf32>,
    } else {
    }
    return
  }
  func.func @transform_0(%arg0: i32, %arg1: i32) -> (i32, i32) {
    %c0_i32 = arith.constant 0 : i32
    return %arg0, %arg1 : i32, i32
  }
  func.func @transform_1(%arg0: i32, %arg1: i32) -> (i32, i32) {
    %c0_i32 = arith.constant 0 : i32
    %c0_i32_0 = arith.constant 0 : i32
    return %arg1, %c0_i32 : i32, i32
  }
  func.func @transform_2(%arg0: i32, %arg1: i32) -> (i32, i32) {
    %c0_i32 = arith.constant 0 : i32
    %c0_i32_0 = arith.constant 0 : i32
    return %arg0, %c0_i32 : i32, i32
  }
  func.func @transform_3(%arg0: i32, %arg1: i32) -> (i32, i32) {
    %c0_i32 = arith.constant 0 : i32
    %c0_i32_0 = arith.constant 0 : i32
    %c0_i32_1 = arith.constant 0 : i32
    return %c0_i32, %c0_i32_0 : i32, i32
  }
  func.func @transform_4(%arg0: i32, %arg1: i32) -> (i32, i32) {
    %c0_i32 = arith.constant 0 : i32
    %c0_i32_0 = arith.constant 0 : i32
    %c0_i32_1 = arith.constant 0 : i32
    return %c0_i32, %c0_i32_0 : i32, i32
  }
  func.func @transform_5(%arg0: i32, %arg1: i32) -> (i32, i32) {
    %c0_i32 = arith.constant 0 : i32
    %c0_i32_0 = arith.constant 0 : i32
    %c0_i32_1 = arith.constant 0 : i32
    return %c0_i32, %c0_i32_0 : i32, i32
  }
  func.func @transform_6(%arg0: i32, %arg1: i32) -> (i32, i32) {
    %c0_i32 = arith.constant 0 : i32
    %c0_i32_0 = arith.constant 0 : i32
    %c0_i32_1 = arith.constant 0 : i32
    return %c0_i32, %c0_i32_0 : i32, i32
  }
  func.func @transform_7(%arg0: i32, %arg1: i32) -> (i32, i32) {
    %c0_i32 = arith.constant 0 : i32
    %c0_i32_0 = arith.constant 0 : i32
    %c0_i32_1 = arith.constant 0 : i32
    return %c0_i32, %c0_i32_0 : i32, i32
  }
  func.func @transform_8(%arg0: i32, %arg1: i32) -> (i32, i32) {
    %c0_i32 = arith.constant 0 : i32
    %c0_i32_0 = arith.constant 0 : i32
    return %c0_i32, %arg0 : i32, i32
  }
}

</mosaic_0001>

<bundles_post_ra>
// kernel: tpu_custom_call.1
= control target key start
LH: loop header
LB: loop body
LE: loop exit
PB: predicated region body
PF: predicated region fallthrough
CT: control target
= control target key end

     0   :  { %s6831_s0 = inlined_call_operand.hbm [shape: f32[1024,1024], index: 0, kind: input, shape index: {}]   ;;  %s6832_s1 = inlined_call_operand.vmem [shape: f32[1024,32], index: 1, kind: input, shape index: {}]   ;;  %s6833_s2 = inlined_call_operand.vmem [shape: f32[1024,32], index: 2, kind: input, shape index: {}]   ;;  %s6834_s3 = inlined_call_operand.hbm [shape: f32[32,128], index: 3, kind: input, shape index: {}]   ;;  %s6835_s4 = inlined_call_operand.hbm [shape: f32[32,128], index: 4, kind: input, shape index: {}]   ;;  %s6836_s5 = inlined_call_operand.hbm [shape: f32[1,128], index: 5, kind: input, shape index: {}]   ;;  %s6837_s6 = inlined_call_operand.hbm [shape: f32[8,128], index: 6, kind: input, shape index: {}]   ;;  %s6838_s7 = inlined_call_operand.<no memory space> [shape: f32[1,1], index: 7, kind: input, shape index: {}]   ;;  %s6839_s8 = inlined_call_operand.hbm [shape: f32[1,1024], index: 8, kind: output, shape index: {}]  }
   0x1   :  { %6855 = sst [smem:[#allocation36_spill]] %s6832_s1 }
   0x2   :  { %6856 = sst [smem:[#allocation37_spill]] %s6833_s2 }
   0x3   :  { %6857 = sst [smem:[#allocation38_spill]] %s6834_s3 }
   0x4   :  { %6858 = sst [smem:[#allocation39_spill]] %s6835_s4 }
   0x5   :  { %6859 = sst [smem:[#allocation40_spill]] %s6836_s5 }
   0x6   :  { %6860 = sst [smem:[#allocation41_spill]] %s6837_s6 }
   0x7   :  { %6861 = sst [smem:[#allocation42_spill]] %s6839_s8 }
   0x8   :  { %13 = sst [smem:[#allocation3]] %s6838_s7 }
   0x9   :  { %14 = vsyncpa [#allocation5], 0 }
   0xa   :  { %16 = vsyncpa [#allocation5 + $0x1], 0 }
   0xb   :  { %17 = vsyncpa [#allocation8], 0 }
   0xc   :  { %18 = vsyncpa [#allocation11], 0 }
   0xd   :  { %19 = vsyncpa [#allocation6], 0 }
   0xe   :  { %21 = vsyncpa [#allocation6 + $0x1], 0  ;;  %s5198_s29 = smov 0   ;;  %s5200_s30 = smov 0  }
   0xf   :  { %s5202_s9 = smov 0   ;;  %s5204_s10 = smov 0  }
  0x10   :  { %s5206_s11 = smov 0   ;;  %s5208_s12 = smov 0  }
  0x11   :  { %s5210_s13 = smov 0   ;;  %s5212_s7 = smov 0  }
  0x12   :  { %s5214_s14 = smov 0   ;;  %s5216_s15 = smov 0  }
  0x13   :  { %s5218_s16 = smov 0  }
  0x14 LB: > { %6862 = sst [smem:[#allocation18_spill]] %s5094_s29  ;;  %s3763_s17 = sadd.s32 4294967295, %s5134_s16   ;;  %s5134_s16 = sphi %s5218_s16, %s27_s16   ;;  %s5130_s15 = sphi %s5216_s15, %s6941_s15   ;;  %s5126_s14 = sphi %s5214_s14, %s6940_s14   ;;  %s5122_s7 = sphi %s5212_s7, %s6939_s7   ;;  %s5118_s13 = sphi %s5210_s13, %s6938_s13   ;;  %s5114_s12 = sphi %s5208_s12, %s6937_s12   ;;  %s5110_s11 = sphi %s5206_s11, %s6936_s11   ;;  %s5106_s10 = sphi %s5204_s10, %s6935_s10   ;;  %s5102_s9 = sphi %s5202_s9, %s6934_s9   ;;  %s5098_s30 = sphi %s5200_s30, %s6933_s30   ;;  %s5094_s29 = sphi %s5198_s29, %s6932_s29  }
  0x15   : > { %6863 = sst [smem:[#allocation19_spill]] %s5118_s13  ;;  %s3764_s18 = sadd.s32 4294967294, %s5134_s16  }
  0x16   : > { %6864 = sst [smem:[#allocation20_spill]] %s5122_s7  ;;  %p61_p0 = scmp.ne.s32.totalorder %s5110_s11, %s5106_s10 }
  0x17   : > { %p5254_p1 = scmp.eq.s32.totalorder %s3763_s17, 0  ;;  %p241_p2 = scmp.ne.s32.totalorder %s5102_s9, %s5098_s30 }
  0x18   : > { %p242_p4 = scmp.eq.s32.totalorder %s3763_s17, 3  ;;  %p247_p5 = scmp.ne.s32.totalorder %s5098_s30, %s5094_s29 }
  0x19   : > { %s6865_s19 = scalar_select %p5254_p1, 1, 0 }
  0x1a   : > { %p5263_p3 = por %p5254_p1, %p61_p0  ;;  %p248_p6 = scmp.eq.s32.totalorder %s3764_s18, 3 }
  0x1b   : > { %p5269_p7 = por %p242_p4, %p241_p2  ;;  %p3765_p8 = scmp.ge.s32.totalorder %s5134_s16, 1 }
  0x1c   : > { %s6866_s21 = scalar_select %p5263_p3, 1, 0 }
  0x1d   : > { %s6867_s22 = scalar_select %p5269_p7, 1, 0 }
  0x1e   : > { %p5274_p9 = por %p248_p6, %p247_p5  ;;  %p255_p10 = scmp.lt.s32.totalorder %s5134_s16, 5 }
  0x1f   : > { %6868 = sst [smem:[#allocation21_spill]] %s6867_s22  ;;  %s5136_s25 = smov [#allocation7]  }
  0x20   : > { %s6869_s23 = scalar_select %p5274_p9, 1, 0 }
  0x21   : > { %p5279_p11 = pnand %p3765_p8, %p255_p10  ;;  %s267_s26 = sshll.u32 %s5136_s25, 4  ;;  %s5283_s26 = int_to_ptr.vmem [resolvable:$true] %s267_s26 }
  0x22   : > { %6870 = sst [smem:[#allocation22_spill]] %s6869_s23  ;;  %s5137_s28 = smov [#allocation10]  }
  0x23   : > { %s6871_s24 = scalar_select %p5279_p11, 1, 0 }
  0x24   : > { %p4601_p12 = pneg %p5279_p11  ;;  %s294_s10 = sshll.u32 %s5137_s28, 4  ;;  %s5293_s10 = int_to_ptr.vmem [resolvable:$true] %s294_s10 }
  0x25   : > { %s5138_s17 = smov [#allocation9]   ;;  %s6873_s3 = sld [smem:[#allocation38_spill]] }
  0x26   : > { %p5289_p13 = pnand %p4601_p12, %p5254_p1  ;;  %s5295_s18 = sshll.u32 %s5138_s17, 4  ;;  %s281_s18 = int_to_ptr.vmem [resolvable:$true] %s5295_s18 }
  0x28   : > { %p5305_p2 = pneg %p5289_p13 }
  0x2b   : > { %s4862_s25 = scalar_lea.hbm %s6873_s3, 512 }
  0x2c   : > { %p4863_p0 = scmp.ne.s32.totalorder %s6873_s3, %s4862_s25  ;;  %p4869_p6 = scmp.lt.u32.totalorder %s4862_s25, %s6873_s3 }
  0x2e   : > { %p4865_p4 = pnand %p5305_p2, %p4863_p0 }
  0x30   : > { %p4866_p5 = pneg %p4865_p4 }
  0x32   : > { %p4871_p8 = pnand %p4869_p6, %p4866_p5 }
  0x34   : > { %4874 = shalt.err (!%p4871_p8)
}
  0x35   : > { %s4875_s29 = scalar_lea.vmem %s5283_s26, 512  ;;  %p4883_p7 = scmp.lt.s32.totalorder %s5283_s26, %s5283_s26 }
  0x36   : > { %p4876_p10 = scmp.ne.s32.totalorder %s5283_s26, %s4875_s29  ;;  %p4884_p1 = scmp.lt.s32.totalorder %s4875_s29, %s4875_s29 }
  0x38   : > { %p4878_p12 = pnand %p4876_p10, %p5305_p2  ;;  %p4885_p0 = por %p4884_p1, %p4883_p7 }
  0x3a   : > { %p4879_p9 = pneg %p4878_p12 }
  0x3c   : > { %p4886_p4 = pnand %p4885_p0, %p4879_p9 }
  0x3e   : > { %4889 = shalt.err (!%p4886_p4)
}
  0x3f   : > { %s5139_s20 = smov 128   ;;  %s5140_s22 = smov 8  }
  0x40   : > { %4604 = dma.hbm_to_vmem [thread:$0]  (!%p5289_p13), %s6873_s3, 512, %s5283_s26, [#allocation8], %s5139_s20, %s5139_s20, %s5140_s22  }
  0x41   : > { %s6875_s5 = sld [smem:[#allocation40_spill]] }
  0x47   : > { %s4890_s29 = scalar_lea.hbm %s6875_s5, 16 }
  0x48   : > { %p4891_p1 = scmp.ne.s32.totalorder %s6875_s5, %s4890_s29  ;;  %p4897_p5 = scmp.lt.u32.totalorder %s4890_s29, %s6875_s5 }
  0x4a   : > { %p4893_p7 = pnand %p4891_p1, %p5305_p2 }
  0x4c   : > { %p4894_p9 = pneg %p4893_p7 }
  0x4e   : > { %p4899_p6 = pnand %p4897_p5, %p4894_p9 }
  0x50   : > { %4902 = shalt.err (!%p4899_p6)
}
  0x51   : > { %s4903_s26 = scalar_lea.vmem %s5293_s10, 16  ;;  %s4910_s1 = scalar_lea.vmem %s5293_s10, 32 }
  0x52   : > { %p4904_p8 = scmp.ne.s32.totalorder %s5293_s10, %s4903_s26  ;;  %p4911_p0 = scmp.lt.s32.totalorder %s5293_s10, %s5293_s10 }
  0x53   : > { %p4912_p4 = scmp.lt.s32.totalorder %s4910_s1, %s4903_s26 }
  0x54   : > { %p4906_p10 = pnand %p4904_p8, %p5305_p2 }
  0x55   : > { %p4913_p1 = por %p4912_p4, %p4911_p0 }
  0x56   : > { %p4907_p12 = pneg %p4906_p10 }
  0x58   : > { %p4914_p7 = pnand %p4913_p1, %p4907_p12 }
  0x5a   : > { %4917 = shalt.err (!%p4914_p7)
}
  0x5b   : > { %4610 = dma.hbm_to_vmem [thread:$0]  (!%p5289_p13), %s6875_s5, 16, %s5293_s10, [#allocation11]  }
  0x5c   : > { %s6876_s4 = sld [smem:[#allocation39_spill]] }
  0x62   : > { %s4918_s25 = scalar_lea.hbm %s6876_s4, 512 }
  0x63   : > { %p4919_p9 = scmp.ne.s32.totalorder %s6876_s4, %s4918_s25  ;;  %p4925_p8 = scmp.lt.u32.totalorder %s4918_s25, %s6876_s4 }
  0x65   : > { %p4921_p5 = pnand %p4919_p9, %p5305_p2 }
  0x67   : > { %p4922_p6 = pneg %p4921_p5 }
  0x69   : > { %p4927_p10 = pnand %p4925_p8, %p4922_p6 }
  0x6b   : > { %4930 = shalt.err (!%p4927_p10)
}
  0x6c   : > { %s4931_s1 = scalar_lea.vmem %s281_s18, 512  ;;  %p4939_p1 = scmp.lt.s32.totalorder %s281_s18, %s281_s18 }
  0x6d   : > { %p4932_p12 = scmp.ne.s32.totalorder %s281_s18, %s4931_s1  ;;  %p4940_p7 = scmp.lt.s32.totalorder %s4931_s1, %s4931_s1 }
  0x6f   : > { %p4934_p0 = pnand %p4932_p12, %p5305_p2  ;;  %p4941_p3 = por %p4940_p7, %p4939_p1 }
  0x71   : > { %p4935_p4 = pneg %p4934_p0 }
  0x73   : > { %p4942_p11 = pnand %p4941_p3, %p4935_p4 }
  0x75   : > { %4945 = shalt.err (!%p4942_p11)
}
  0x76   : > { %4607 = dma.hbm_to_vmem [thread:$0]  (!%p5289_p13), %s6876_s4, 512, %s281_s18, [#allocation8], %s5139_s20, %s5139_s20, %s5140_s22  }
  0x77   : > { %s5141_s13 = smov [#allocation12]   ;;  %s6877_s6 = sld [smem:[#allocation41_spill]] }
  0x78   : > { %s305_s7 = sshll.u32 %s5141_s13, 4  ;;  %s306_s7 = int_to_ptr.vmem [resolvable:$true] %s305_s7 }
  0x7d   : > { %s4946_s28 = scalar_lea.hbm %s6877_s6, 128 }
  0x7e   : > { %p4947_p3 = scmp.ne.s32.totalorder %s6877_s6, %s4946_s28  ;;  %p4953_p5 = scmp.lt.u32.totalorder %s4946_s28, %s6877_s6 }
  0x80   : > { %p4949_p11 = pnand %p4947_p3, %p5305_p2 }
  0x82   : > { %p4950_p9 = pneg %p4949_p11 }
  0x84   : > { %p4955_p6 = pnand %p4953_p5, %p4950_p9 }
  0x86   : > { %4958 = shalt.err (!%p4955_p6)
}
  0x87   : > { %s4959_s18 = scalar_lea.vmem %s306_s7, 128  ;;  %p4967_p0 = scmp.lt.s32.totalorder %s306_s7, %s306_s7 }
  0x88   : > { %p4960_p8 = scmp.ne.s32.totalorder %s306_s7, %s4959_s18  ;;  %p4968_p4 = scmp.lt.s32.totalorder %s4959_s18, %s4959_s18 }
  0x8a   : > { %p4962_p10 = pnand %p4960_p8, %p5305_p2  ;;  %p4969_p1 = por %p4968_p4, %p4967_p0 }
  0x8c   : > { %p4963_p12 = pneg %p4962_p10 }
  0x8e   : > { %p4970_p7 = pnand %p4969_p1, %p4963_p12 }
  0x90   : > { %4973 = shalt.err (!%p4970_p7)
}
  0x91   : > { %4613 = dma.hbm_to_vmem [thread:$0]  (!%p5289_p13), %s6877_s6, 128, %s306_s7, [#allocation11]  }
  0x92   : > { %s36_s8 = sadd.s32 1, %s5126_s14  ;;  %s39_s10 = sadd.s32 1, %s5130_s15 }
  0x93   : > { %p37_p2 = scmp.ge.s32.totalorder %s36_s8, 2  ;;  %s48_s27 = sadd.s32 1, %s5114_s12 }
  0x94   : > { %p55_p3 = scmp.ne.s32.totalorder %s5114_s12, %s5110_s11  ;;  %p56_p11 = scmp.eq.s32.totalorder %s5134_s16, 0 }
  0x95   : > { %s6943_s8 = smov (%p37_p2, %s36_s8), 0  ;;  %s6945_s10 = smov (!%p37_p2, %s39_s10), %s5130_s15 }
  0x96   : > { %6878 = sst [smem:[#allocation23_spill]] %s6943_s8  ;;  %s44_s2 = ssub.s32 %s5126_s14, %s6943_s8 }
  0x97   : > { %p5404_p9 = por %p56_p11, %p55_p3  ;;  %p41_p13 = scmp.ge.s32.totalorder %s6945_s10, 2 }
  0x98   : > { %p4626_p5 = scmp.lt.s32.totalorder %s5134_s16, 4  ;;  %s319_s7 = sand.u32 1, %s5114_s12  }
  0x99   : > { %s3773_s23 = sshll.u32 %s5126_s14, 2  ;;  %s6947_s10 = smov (%p41_p13, %s6945_s10), 0 }
  0x9a   : > { %s3771_s25 = sshll.u32 %s319_s7, 11  ;;  %s43_s28 = ssub.s32 %s5130_s15, %s6947_s10 }
  0x9b   : > { %s45_s17 = sor.u32 %s44_s2, %s43_s28  ;;  %p229_p6 = scmp.eq.s32.totalorder %s43_s28, 0 }
  0x9c   : > { %p46_p8 = scmp.eq.s32.totalorder %s45_s17, 0  ;;  %s3923_s29 = sshll.u32 %s5130_s15, 9 }
  0x9d   : > { %s6880_s26 = sadd.s32 1, %s5102_s9  ;;  %s330_s20 = sadd.s32 %s3923_s29, %s3773_s23 }
  0x9e   : > { %s5419_s1 = scalar_select %p229_p6, %s5102_s9, %s6880_s26  }
  0x9f   : > { %s5422_s18 = scalar_select %p46_p8, %s5114_s12, %s48_s27  }
  0xa0   : > { %s323_s22 = scalar_lea.vmem [#allocation4], %s3771_s25  ;;  %s3775_s4 = sshll.u32 %s330_s20, 7 }
  0xa1   : > { %s333_s3 = sshll.u32 %s323_s22, 4  ;;  %s5429_s8 = scalar_lea.hbm %s6831_s0, %s3775_s4  ;;  %s5424_s3 = int_to_ptr.vmem [resolvable:$true] %s333_s3 }
  0xa2   : > { %p5435_p10 = pnand %p4626_p5, %p5404_p9  ;;  %s5439_s2 = scalar_lea.sflag [#allocation5], %s319_s7 }
  0xa3   : > { %s4974_s23 = scalar_lea.hbm %s5429_s8, 32768  ;;  %s4979_s6 = scalar_lea.hbm %s6831_s0, 131072 }
  0xa4   : > { %p4975_p12 = scmp.ne.s32.totalorder %s5429_s8, %s4974_s23  ;;  %p4976_p0 = pneg %p5435_p10 }
  0xa5   : > { %p4980_p7 = scmp.lt.u32.totalorder %s5429_s8, %s6831_s0  ;;  %p4981_p2 = scmp.lt.u32.totalorder %s4979_s6, %s4974_s23 }
  0xa6   : > { %p4977_p4 = pnand %p4976_p0, %p4975_p12  ;;  %p4983_p11 = scmp.lt.u32.totalorder %s4974_s23, %s5429_s8 }
  0xa7   : > { %p4982_p3 = por %p4981_p2, %p4980_p7 }
  0xa8   : > { %p4978_p1 = pneg %p4977_p4 }
  0xa9   : > { %p4984_p9 = por %p4983_p11, %p4982_p3 }
  0xab   : > { %p4985_p13 = pnand %p4984_p9, %p4978_p1 }
  0xad   : > { %4988 = shalt.err (!%p4985_p13)
}
  0xae   : > { %s4989_s7 = scalar_lea.vmem %s5424_s3, 32768  ;;  %s5142_s28 = smov [#allocation4]  }
  0xaf   : > { %p4990_p5 = scmp.ne.s32.totalorder %s5424_s3, %s4989_s7  ;;  %s4994_s17 = sshll.u32 %s5142_s28, 4  ;;  %s4995_s17 = int_to_ptr.vmem [resolvable:$false] %s4994_s17 }
  0xb0   : > { %s4996_s29 = scalar_lea.vmem %s4995_s17, 65536  ;;  %p4997_p12 = scmp.lt.s32.totalorder %s5424_s3, %s4995_s17 }
  0xb1   : > { %p4992_p6 = pnand %p4990_p5, %p4976_p0  ;;  %p4998_p4 = scmp.lt.s32.totalorder %s4996_s29, %s4989_s7 }
  0xb3   : > { %p4993_p8 = pneg %p4992_p6  ;;  %p4999_p7 = por %p4998_p4, %p4997_p12 }
  0xb5   : > { %p5000_p2 = pnand %p4999_p7, %p4993_p8 }
  0xb7   : > { %5003 = shalt.err (!%p5000_p2)
}
  0xb8   : > { %s5143_s26 = smov 1024   ;;  %s5144_s20 = smov 512  }
  0xb9   : > { %s5145_s22 = smov 32   ;;  %p6882_p0 = scmp.ne.s32.totalorder %s6871_s24, 0 }
  0xba   : > { %4617 = dma.hbm_to_vmem [thread:$0]  (!%p5435_p10), %s5429_s8, 32768, %s5424_s3, %s5439_s2, %s5143_s26, %s5144_s20, %s5145_s22  }
  0xbb   : > { %363 = sbr.rel (%p6882_p0) target bundleno = 1476 (0x5c4), region = 52  ;;  %s365_s23 = sand.u32 (!%p6882_p0), 1, %s5110_s11  }
  0xbc   : > { %s3777_s4 = sshll.u32 (!%p6882_p0), %s365_s23, 11  ;;  %s366_s5 = scalar_lea.sflag (!%p6882_p0), [#allocation5], %s365_s23 }
  0xbd   : > { %s5470_s6 = scalar_lea.vmem (!%p6882_p0), [#allocation4], %s3777_s4  ;;  %p6883_p1 = scmp.ne.s32.totalorder (!%p6882_p0), %s6866_s21, 0 }
  0xc2   : > { %5077 = dma.done.wait (%p6883_p1), %s366_s5, 32768  }
  0xc3   : > { %5079 = vsyncadd (%p6883_p1), %s366_s5, 4294934528  ;;  %p6884_p3 = scmp.ne.s32.totalorder %s6865_s19, 0 }
  0xc5   : > { %5081 = dma.done.wait (%p6884_p3), [#allocation8], 1024  }
  0xc6   : > { %5083 = vsyncadd (%p6884_p3), [#allocation8], 4294966272 }
  0xc7   : > { %5085 = dma.done.wait (%p6884_p3), [#allocation11], 144  }
  0xc8   : > { %5087 = vsyncadd (%p6884_p3), [#allocation11], 4294967152  ;;  %s6885_s3 = sld [smem:[#allocation19_spill]]  ;;  %s6886_s24 = sld [smem:[#allocation20_spill]] }
  0xc9   : > { %s425_s8 = sand.u32 1, %s5098_s30   ;;  %s6887_s7 = sld [smem:[#allocation36_spill]] }
  0xca   : > { %s5488_s21 = sshll.u32 %s425_s8, 2  ;;  %s6888_s22 = sld [smem:[#allocation37_spill]] }
  0xcb   : > { %s427_s4 = scalar_lea.vmem [#allocation13], %s5488_s21 }
  0xce   : > { %s3783_s27 = sshll.u32 %s6885_s3, 6  ;;  %s5491_s2 = sshll.u32 %s6886_s24, 6 }
  0xcf   : > { %p431_p10 = scmp.lt.s32.totalorder %s3783_s27, 127  ;;  %p437_p11 = scmp.lt.s32.totalorder %s5491_s2, 127 }
  0xd0   : > { %p3787_p9 = scmp.ne.s32.totalorder %s6885_s3, 0 }
  0xd1   : > { %s6949_s27 = smov (!%p431_p10, %s3783_s27), 127  ;;  %vm447_vm0 = vcmask (!%p3787_p9), 261120   ;;  %v5146_v0 = vmov (!%p3787_p9), 0.0  }
  0xd2   : > { %s3784_s13 = sshll.u32 %s6949_s27, 3  ;;  %446 = sbr.rel (%p3787_p9) target bundleno = 243 (0xf3), region = 76  ;;  %448 = vst.msk [vmem:[#allocation2] sm:$0xff] (!%p3787_p9), %vm447_vm0, %v5146_v0  ;;  %449 = vst.msk [vmem:[#allocation2 + $0x8] sm:$0xff] (!%p3787_p9), %vm447_vm0, %v5146_v0 }
  0xd3   : > { %s5497_s28 = scalar_lea.vmem %s6887_s7, %s3784_s13  ;;  %450 = vst.msk [vmem:[#allocation2 + $0x10] sm:$0xff] (!%p3787_p9), %vm447_vm0, %v5146_v0  ;;  %451 = vst.msk [vmem:[#allocation2 + $0x18] sm:$0xff] (!%p3787_p9), %vm447_vm0, %v5146_v0 }
  0xd4   : > { %s438_s17 = scalar_select %p437_p11, %s5491_s2, 127 }
  0xd5   : > { %452 = vst.msk [vmem:[#allocation2 + $0x20] sm:$0xff] (!%p3787_p9), %vm447_vm0, %v5146_v0  ;;  %453 = vst.msk [vmem:[#allocation2 + $0x28] sm:$0xff] (!%p3787_p9), %vm447_vm0, %v5146_v0 }
  0xd6   : > { %s3786_s29 = sshll.u32 %s438_s17, 3  ;;  %454 = vst.msk [vmem:[#allocation2 + $0x30] sm:$0xff] (!%p3787_p9), %vm447_vm0, %v5146_v0  ;;  %455 = vst.msk [vmem:[#allocation2 + $0x38] sm:$0xff] (!%p3787_p9), %vm447_vm0, %v5146_v0 }
  0xd7   : > { %s5503_s23 = scalar_lea.vmem %s6888_s22, %s3786_s29  ;;  %456 = vst.msk [vmem:[#allocation2 + $0x40] sm:$0xff] (!%p3787_p9), %vm447_vm0, %v5146_v0  ;;  %457 = vst.msk [vmem:[#allocation2 + $0x48] sm:$0xff] (!%p3787_p9), %vm447_vm0, %v5146_v0 }
  0xd8   : > { %458 = vst.msk [vmem:[#allocation2 + $0x50] sm:$0xff] (!%p3787_p9), %vm447_vm0, %v5146_v0  ;;  %459 = vst.msk [vmem:[#allocation2 + $0x58] sm:$0xff] (!%p3787_p9), %vm447_vm0, %v5146_v0 }
  0xd9   : > { %460 = vst.msk [vmem:[#allocation2 + $0x60] sm:$0xff] %vm447_vm0, %v5146_v0  ;;  %461 = vst.msk [vmem:[#allocation2 + $0x68] sm:$0xff] %vm447_vm0, %v5146_v0 }
  0xda   : > { %462 = vst.msk [vmem:[#allocation2 + $0x70] sm:$0xff] %vm447_vm0, %v5146_v0  ;;  %463 = vst.msk [vmem:[#allocation2 + $0x78] sm:$0xff] %vm447_vm0, %v5146_v0 }
  0xdb   : > { %464 = vst.msk [vmem:[#allocation2 + $0x80] sm:$0xff] %vm447_vm0, %v5146_v0  ;;  %465 = vst.msk [vmem:[#allocation2 + $0x88] sm:$0xff] %vm447_vm0, %v5146_v0 }
  0xdc   : > { %466 = vst.msk [vmem:[#allocation2 + $0x90] sm:$0xff] %vm447_vm0, %v5146_v0  ;;  %467 = vst.msk [vmem:[#allocation2 + $0x98] sm:$0xff] %vm447_vm0, %v5146_v0 }
  0xdd   : > { %468 = vst.msk [vmem:[#allocation2 + $0xa0] sm:$0xff] %vm447_vm0, %v5146_v0  ;;  %469 = vst.msk [vmem:[#allocation2 + $0xa8] sm:$0xff] %vm447_vm0, %v5146_v0 }
  0xde   : > { %470 = vst.msk [vmem:[#allocation2 + $0xb0] sm:$0xff] %vm447_vm0, %v5146_v0  ;;  %471 = vst.msk [vmem:[#allocation2 + $0xb8] sm:$0xff] %vm447_vm0, %v5146_v0 }
  0xdf   : > { %472 = vst.msk [vmem:[#allocation2 + $0xc0] sm:$0xff] %vm447_vm0, %v5146_v0  ;;  %473 = vst.msk [vmem:[#allocation2 + $0xc8] sm:$0xff] %vm447_vm0, %v5146_v0 }
  0xe0   : > { %474 = vst.msk [vmem:[#allocation2 + $0xd0] sm:$0xff] %vm447_vm0, %v5146_v0  ;;  %475 = vst.msk [vmem:[#allocation2 + $0xd8] sm:$0xff] %vm447_vm0, %v5146_v0 }
  0xe1   : > { %476 = vst.msk [vmem:[#allocation2 + $0xe0] sm:$0xff] %vm447_vm0, %v5146_v0  ;;  %477 = vst.msk [vmem:[#allocation2 + $0xe8] sm:$0xff] %vm447_vm0, %v5146_v0 }
  0xe2   : > { %478 = vst.msk [vmem:[#allocation2 + $0xf0] sm:$0xff] %vm447_vm0, %v5146_v0  ;;  %479 = vst.msk [vmem:[#allocation2 + $0xf8] sm:$0xff] %vm447_vm0, %v5146_v0 }
  0xe3   : > { %480 = vst.msk [vmem:[#allocation2 + $0x100] sm:$0xff] %vm447_vm0, %v5146_v0  ;;  %481 = vst.msk [vmem:[#allocation2 + $0x108] sm:$0xff] %vm447_vm0, %v5146_v0 }
  0xe4   : > { %482 = vst.msk [vmem:[#allocation2 + $0x110] sm:$0xff] %vm447_vm0, %v5146_v0  ;;  %483 = vst.msk [vmem:[#allocation2 + $0x118] sm:$0xff] %vm447_vm0, %v5146_v0 }
  0xe5   : > { %484 = vst.msk [vmem:[#allocation2 + $0x120] sm:$0xff] %vm447_vm0, %v5146_v0  ;;  %485 = vst.msk [vmem:[#allocation2 + $0x128] sm:$0xff] %vm447_vm0, %v5146_v0 }
  0xe6   : > { %486 = vst.msk [vmem:[#allocation2 + $0x130] sm:$0xff] %vm447_vm0, %v5146_v0  ;;  %487 = vst.msk [vmem:[#allocation2 + $0x138] sm:$0xff] %vm447_vm0, %v5146_v0 }
  0xe7   : > { %488 = vst.msk [vmem:[#allocation2 + $0x140] sm:$0xff] %vm447_vm0, %v5146_v0  ;;  %489 = vst.msk [vmem:[#allocation2 + $0x148] sm:$0xff] %vm447_vm0, %v5146_v0 }
  0xe8   : > { %490 = vst.msk [vmem:[#allocation2 + $0x150] sm:$0xff] %vm447_vm0, %v5146_v0  ;;  %491 = vst.msk [vmem:[#allocation2 + $0x158] sm:$0xff] %vm447_vm0, %v5146_v0 }
  0xe9   : > { %492 = vst.msk [vmem:[#allocation2 + $0x160] sm:$0xff] %vm447_vm0, %v5146_v0  ;;  %493 = vst.msk [vmem:[#allocation2 + $0x168] sm:$0xff] %vm447_vm0, %v5146_v0 }
  0xea   : > { %494 = vst.msk [vmem:[#allocation2 + $0x170] sm:$0xff] %vm447_vm0, %v5146_v0  ;;  %495 = vst.msk [vmem:[#allocation2 + $0x178] sm:$0xff] %vm447_vm0, %v5146_v0 }
  0xeb   : > { %496 = vst.msk [vmem:[#allocation2 + $0x180] sm:$0xff] %vm447_vm0, %v5146_v0  ;;  %497 = vst.msk [vmem:[#allocation2 + $0x188] sm:$0xff] %vm447_vm0, %v5146_v0 }
  0xec   : > { %498 = vst.msk [vmem:[#allocation2 + $0x190] sm:$0xff] %vm447_vm0, %v5146_v0  ;;  %499 = vst.msk [vmem:[#allocation2 + $0x198] sm:$0xff] %vm447_vm0, %v5146_v0 }
  0xed   : > { %500 = vst.msk [vmem:[#allocation2 + $0x1a0] sm:$0xff] %vm447_vm0, %v5146_v0  ;;  %501 = vst.msk [vmem:[#allocation2 + $0x1a8] sm:$0xff] %vm447_vm0, %v5146_v0 }
  0xee   : > { %502 = vst.msk [vmem:[#allocation2 + $0x1b0] sm:$0xff] %vm447_vm0, %v5146_v0  ;;  %503 = vst.msk [vmem:[#allocation2 + $0x1b8] sm:$0xff] %vm447_vm0, %v5146_v0 }
  0xef   : > { %504 = vst.msk [vmem:[#allocation2 + $0x1c0] sm:$0xff] %vm447_vm0, %v5146_v0  ;;  %505 = vst.msk [vmem:[#allocation2 + $0x1c8] sm:$0xff] %vm447_vm0, %v5146_v0 }
  0xf0   : > { %506 = vst.msk [vmem:[#allocation2 + $0x1d0] sm:$0xff] %vm447_vm0, %v5146_v0  ;;  %507 = vst.msk [vmem:[#allocation2 + $0x1d8] sm:$0xff] %vm447_vm0, %v5146_v0 }
  0xf1   : > { %508 = vst.msk [vmem:[#allocation2 + $0x1e0] sm:$0xff] %vm447_vm0, %v5146_v0  ;;  %509 = vst.msk [vmem:[#allocation2 + $0x1e8] sm:$0xff] %vm447_vm0, %v5146_v0 }
  0xf2   : > { %510 = vst.msk [vmem:[#allocation2 + $0x1f0] sm:$0xff] %vm447_vm0, %v5146_v0  ;;  %511 = vst.msk [vmem:[#allocation2 + $0x1f8] sm:$0xff] %vm447_vm0, %v5146_v0 }
  0xf3 PF: > { %v832_v1 = vld [vmem:[%s5497_s28] sm:$0xff]  ;;  %v833_v2 = vld [vmem:[%s5497_s28 + $0x8] sm:$0xff]  ;;  %v5147_v4 = vmov 0.0|0.0   ;;  %v834_v7 = vld [vmem:[%s5497_s28 + $0x10] sm:$0xff]  ;;  %vm1730_vm1 = vcmask 261120   ;;  %s6889_s5 = sld [smem:[#allocation19_spill]] }
  0xf4   : > { %v864_v3 = vld [vmem:[%s5497_s28 + $0x100] sm:$0xff]  ;;  %4337 = vmatprep.subr.bf16.mxu0 %v5147_v4  ;;  %4385 = vmatprep.subr.bf16.mxu1 %v5147_v4  ;;  %v4338_v5 = vpack.c.bf16 %v833_v2, %v832_v1  ;;  %v865_v6 = vld [vmem:[%s5497_s28 + $0x108] sm:$0xff]  ;;  %v835_v8 = vld [vmem:[%s5497_s28 + $0x18] sm:$0xff] }
  0xf5   : > { %v4386_v9 = vpack.c.bf16 %v865_v6, %v864_v3  ;;  %v866_v10 = vld [vmem:[%s5497_s28 + $0x110] sm:$0xff]  ;;  %v867_v11 = vld [vmem:[%s5497_s28 + $0x118] sm:$0xff]  ;;  %v4341_v12 = vpack.c.bf16 %v835_v8, %v834_v7  ;;  %v836_v14 = vld [vmem:[%s5497_s28 + $0x20] sm:$0xff] }
  0xf6   : > { %4339 = vmatpush1.bf16.msra.mxu0 %v4338_v5  ;;  %v4389_v13 = vpack.c.bf16 %v867_v11, %v866_v10  ;;  %v837_v15 = vld [vmem:[%s5497_s28 + $0x28] sm:$0xff]  ;;  %v868_v16 = vld [vmem:[%s5497_s28 + $0x120] sm:$0xff]  ;;  %v838_v20 = vld [vmem:[%s5497_s28 + $0x30] sm:$0xff] }
  0xf7   : > { %4387 = vmatpush1.bf16.msra.mxu1 %v4386_v9  ;;  %4340 = vmatprep.subr.bf16.mxu0 %v5147_v4  ;;  %v869_v17 = vld [vmem:[%s5497_s28 + $0x128] sm:$0xff]  ;;  %v4344_v18 = vpack.c.bf16 %v837_v15, %v836_v14  ;;  %v839_v21 = vld [vmem:[%s5497_s28 + $0x38] sm:$0xff]  ;;  %v870_v22 = vld [vmem:[%s5497_s28 + $0x130] sm:$0xff] }
  0xf8   : > { %4388 = vmatprep.subr.bf16.mxu1 %v5147_v4  ;;  %v4392_v19 = vpack.c.bf16 %v869_v17, %v868_v16  ;;  %v871_v23 = vld [vmem:[%s5497_s28 + $0x138] sm:$0xff]  ;;  %v4347_v24 = vpack.c.bf16 %v839_v21, %v838_v20  ;;  %v840_v26 = vld [vmem:[%s5497_s28 + $0x40] sm:$0xff]  ;;  %v841_v27 = vld [vmem:[%s5497_s28 + $0x48] sm:$0xff] }
  0xf9   : > { %v4395_v25 = vpack.c.bf16 %v871_v23, %v870_v22  ;;  %v872_v28 = vld [vmem:[%s5497_s28 + $0x140] sm:$0xff]  ;;  %v873_v29 = vld [vmem:[%s5497_s28 + $0x148] sm:$0xff]  ;;  %v4350_v30 = vpack.c.bf16 %v841_v27, %v840_v26  ;;  %v842_v32 = vld [vmem:[%s5497_s28 + $0x50] sm:$0xff]  ;;  %p3788_p13 = scmp.ne.s32.totalorder %s6889_s5, 1 }
  0xfa   : > { %4342 = vmatpush1.bf16.msra.mxu0 %v4341_v12  ;;  %v4398_v31 = vpack.c.bf16 %v873_v29, %v872_v28  ;;  %v843_v33 = vld [vmem:[%s5497_s28 + $0x58] sm:$0xff]  ;;  %v874_v34 = vld [vmem:[%s5497_s28 + $0x150] sm:$0xff]  ;;  %v844_v38 = vld [vmem:[%s5497_s28 + $0x60] sm:$0xff] }
  0xfb   : > { %4390 = vmatpush1.bf16.msra.mxu1 %v4389_v13  ;;  %4343 = vmatprep.subr.bf16.mxu0 %v5147_v4  ;;  %v875_v35 = vld [vmem:[%s5497_s28 + $0x158] sm:$0xff]  ;;  %v4353_v36 = vpack.c.bf16 %v843_v33, %v842_v32  ;;  %v845_v39 = vld [vmem:[%s5497_s28 + $0x68] sm:$0xff]  ;;  %v876_v40 = vld [vmem:[%s5497_s28 + $0x160] sm:$0xff] }
  0xfc   : > { %4391 = vmatprep.subr.bf16.mxu1 %v5147_v4  ;;  %v4401_v37 = vpack.c.bf16 %v875_v35, %v874_v34  ;;  %v877_v41 = vld [vmem:[%s5497_s28 + $0x168] sm:$0xff]  ;;  %v579_v43 = vld [vmem:[%s5470_s6 + $0x18] sm:$0xff]  ;;  %v4356_v44 = vpack.c.bf16 %v845_v39, %v844_v38  ;;  %v846_v46 = vld [vmem:[%s5497_s28 + $0x70] sm:$0xff] }
  0xfd   : > { %v577_v42 = vld [vmem:[%s5470_s6 + $0x8] sm:$0xff]  ;;  %1345 = vmatprep.mubr.f32.mxu1 %v579_v43  ;;  %v4404_v45 = vpack.c.bf16 %v877_v41, %v876_v40  ;;  %v847_v47 = vld [vmem:[%s5497_s28 + $0x78] sm:$0xff]  ;;  %v878_v48 = vld [vmem:[%s5497_s28 + $0x170] sm:$0xff] }
  0xfe   : > { %4345 = vmatpush1.bf16.msra.mxu0 %v4344_v18  ;;  %960 = vmatprep.mubr.f32.mxu0 %v577_v42  ;;  %v879_v49 = vld [vmem:[%s5497_s28 + $0x178] sm:$0xff]  ;;  %v4359_v50 = vpack.c.bf16 %v847_v47, %v846_v46  ;;  %v848_v52 = vld [vmem:[%s5497_s28 + $0x80] sm:$0xff]  ;;  %v849_v53 = vld [vmem:[%s5497_s28 + $0x88] sm:$0xff] }
  0xff   : > { %4393 = vmatpush1.bf16.msra.mxu1 %v4392_v19  ;;  %4346 = vmatprep.subr.bf16.mxu0 %v5147_v4  ;;  %v4407_v51 = vpack.c.bf16 %v879_v49, %v878_v48  ;;  %v880_v54 = vld [vmem:[%s5497_s28 + $0x180] sm:$0xff]  ;;  %v881_v55 = vld [vmem:[%s5497_s28 + $0x188] sm:$0xff]  ;;  %v4362_v56 = vpack.c.bf16 %v849_v53, %v848_v52  ;;  %v850_v58 = vld [vmem:[%s5497_s28 + $0x90] sm:$0xff] }
 0x100   : > { %4394 = vmatprep.subr.bf16.mxu1 %v5147_v4  ;;  %v4410_v57 = vpack.c.bf16 %v881_v55, %v880_v54  ;;  %v851_v59 = vld [vmem:[%s5497_s28 + $0x98] sm:$0xff]  ;;  %v882_v60 = vld [vmem:[%s5497_s28 + $0x190] sm:$0xff]  ;;  %v852_v0 = vld [vmem:[%s5497_s28 + $0xa0] sm:$0xff] }
 0x101   : > { %v883_v61 = vld [vmem:[%s5497_s28 + $0x198] sm:$0xff]  ;;  %v4365_v62 = vpack.c.bf16 %v851_v59, %v850_v58  ;;  %v853_v1 = vld [vmem:[%s5497_s28 + $0xa8] sm:$0xff]  ;;  %v884_v2 = vld [vmem:[%s5497_s28 + $0x1a0] sm:$0xff] }
 0x102   : > { %4348 = vmatpush1.bf16.msra.mxu0 %v4347_v24  ;;  %v4413_v63 = vpack.c.bf16 %v883_v61, %v882_v60  ;;  %v885_v3 = vld [vmem:[%s5497_s28 + $0x1a8] sm:$0xff]  ;;  %v4368_v5 = vpack.c.bf16 %v853_v1, %v852_v0  ;;  %v854_v7 = vld [vmem:[%s5497_s28 + $0xb0] sm:$0xff]  ;;  %v855_v8 = vld [vmem:[%s5497_s28 + $0xb8] sm:$0xff] }
 0x103   : > { %4396 = vmatpush1.bf16.msra.mxu1 %v4395_v25  ;;  %4349 = vmatprep.subr.bf16.mxu0 %v5147_v4  ;;  %v4416_v6 = vpack.c.bf16 %v885_v3, %v884_v2  ;;  %v886_v9 = vld [vmem:[%s5497_s28 + $0x1b0] sm:$0xff]  ;;  %v887_v10 = vld [vmem:[%s5497_s28 + $0x1b8] sm:$0xff]  ;;  %v4371_v11 = vpack.c.bf16 %v855_v8, %v854_v7  ;;  %v856_v13 = vld [vmem:[%s5497_s28 + $0xc0] sm:$0xff] }
 0x104   : > { %4397 = vmatprep.subr.bf16.mxu1 %v5147_v4  ;;  %v4419_v12 = vpack.c.bf16 %v887_v10, %v886_v9  ;;  %v857_v14 = vld [vmem:[%s5497_s28 + $0xc8] sm:$0xff]  ;;  %v888_v15 = vld [vmem:[%s5497_s28 + $0x1c0] sm:$0xff]  ;;  %v858_v19 = vld [vmem:[%s5497_s28 + $0xd0] sm:$0xff] }
 0x105   : > { %v889_v16 = vld [vmem:[%s5497_s28 + $0x1c8] sm:$0xff]  ;;  %v4374_v17 = vpack.c.bf16 %v857_v14, %v856_v13  ;;  %v859_v20 = vld [vmem:[%s5497_s28 + $0xd8] sm:$0xff]  ;;  %v890_v21 = vld [vmem:[%s5497_s28 + $0x1d0] sm:$0xff] }
 0x106   : > { %4351 = vmatpush1.bf16.msra.mxu0 %v4350_v30  ;;  %v4422_v18 = vpack.c.bf16 %v889_v16, %v888_v15  ;;  %v891_v22 = vld [vmem:[%s5497_s28 + $0x1d8] sm:$0xff]  ;;  %v4377_v23 = vpack.c.bf16 %v859_v20, %v858_v19  ;;  %v860_v25 = vld [vmem:[%s5497_s28 + $0xe0] sm:$0xff]  ;;  %v861_v26 = vld [vmem:[%s5497_s28 + $0xe8] sm:$0xff] }
 0x107   : > { %4399 = vmatpush1.bf16.msra.mxu1 %v4398_v31  ;;  %4352 = vmatprep.subr.bf16.mxu0 %v5147_v4  ;;  %v4425_v24 = vpack.c.bf16 %v891_v22, %v890_v21  ;;  %v892_v27 = vld [vmem:[%s5497_s28 + $0x1e0] sm:$0xff]  ;;  %v893_v28 = vld [vmem:[%s5497_s28 + $0x1e8] sm:$0xff]  ;;  %v4380_v29 = vpack.c.bf16 %v861_v26, %v860_v25  ;;  %v862_v31 = vld [vmem:[%s5497_s28 + $0xf0] sm:$0xff] }
 0x108   : > { %4400 = vmatprep.subr.bf16.mxu1 %v5147_v4  ;;  %v4428_v30 = vpack.c.bf16 %v893_v28, %v892_v27  ;;  %v863_v32 = vld [vmem:[%s5497_s28 + $0xf8] sm:$0xff]  ;;  %v894_v33 = vld [vmem:[%s5497_s28 + $0x1f0] sm:$0xff]  ;;  %v581_v39 = vld [vmem:[%s5470_s6 + $0x28] sm:$0xff] }
 0x109   : > { %v895_v34 = vld [vmem:[%s5497_s28 + $0x1f8] sm:$0xff]  ;;  %v4383_v35 = vpack.c.bf16 %v863_v32, %v862_v31  ;;  %v578_v38 = vld [vmem:[%s5470_s6 + $0x10] sm:$0xff]  ;;  %v580_v41 = vld [vmem:[%s5470_s6 + $0x20] sm:$0xff] }
 0x10a   : > { %4354 = vmatpush1.bf16.msra.mxu0 %v4353_v36  ;;  %v4431_v36 = vpack.c.bf16 %v895_v34, %v894_v33  ;;  %v583_v40 = vld [vmem:[%s5470_s6 + $0x38] sm:$0xff]  ;;  %v582_v42 = vld [vmem:[%s5470_s6 + $0x30] sm:$0xff]  ;;  %v585_v43 = vld [vmem:[%s5470_s6 + $0x48] sm:$0xff] }
 0x10b   : > { %4402 = vmatpush1.bf16.msra.mxu1 %v4401_v37  ;;  %4355 = vmatprep.subr.bf16.mxu0 %v5147_v4  ;;  %v576_v37 = vld [vmem:[%s5470_s6] sm:$0xff]  ;;  %v589_v46 = vld [vmem:[%s5470_s6 + $0x68] sm:$0xff]  ;;  %v591_v47 = vld [vmem:[%s5470_s6 + $0x78] sm:$0xff] }
 0x10c   : > { %4403 = vmatprep.subr.bf16.mxu1 %v5147_v4  ;;  %v588_v48 = vld [vmem:[%s5470_s6 + $0x60] sm:$0xff]  ;;  %v590_v49 = vld [vmem:[%s5470_s6 + $0x70] sm:$0xff]  ;;  %v597_v54 = vld [vmem:[%s5470_s6 + $0xa8] sm:$0xff] }
 0x10d   : > { %v592_v52 = vld [vmem:[%s5470_s6 + $0x80] sm:$0xff]  ;;  %v594_v53 = vld [vmem:[%s5470_s6 + $0x90] sm:$0xff]  ;;  %v599_v55 = vld [vmem:[%s5470_s6 + $0xb8] sm:$0xff] }
 0x10e   : > { %4357 = vmatpush1.bf16.msra.mxu0 %v4356_v44  ;;  %v584_v44 = vld [vmem:[%s5470_s6 + $0x40] sm:$0xff]  ;;  %v601_v58 = vld [vmem:[%s5470_s6 + $0xc8] sm:$0xff]  ;;  %v603_v59 = vld [vmem:[%s5470_s6 + $0xd8] sm:$0xff] }
 0x10f   : > { %4405 = vmatpush1.bf16.msra.mxu1 %v4404_v45  ;;  %4358 = vmatprep.subr.bf16.mxu0 %v5147_v4  ;;  %v586_v45 = vld [vmem:[%s5470_s6 + $0x50] sm:$0xff]  ;;  %v600_v60 = vld [vmem:[%s5470_s6 + $0xc0] sm:$0xff]  ;;  %v609_v2 = vld [vmem:[%s5470_s6 + $0x108] sm:$0xff] }
 0x110   : > { %4406 = vmatprep.subr.bf16.mxu1 %v5147_v4  ;;  %v602_v61 = vld [vmem:[%s5470_s6 + $0xd0] sm:$0xff]  ;;  %v604_v0 = vld [vmem:[%s5470_s6 + $0xe0] sm:$0xff]  ;;  %v611_v3 = vld [vmem:[%s5470_s6 + $0x118] sm:$0xff] }
 0x111   : > { %v606_v1 = vld [vmem:[%s5470_s6 + $0xf0] sm:$0xff]  ;;  %v613_v7 = vld [vmem:[%s5470_s6 + $0x128] sm:$0xff]  ;;  %v615_v8 = vld [vmem:[%s5470_s6 + $0x138] sm:$0xff] }
 0x112   : > { %4360 = vmatpush1.bf16.msra.mxu0 %v4359_v50  ;;  %v593_v50 = vld [vmem:[%s5470_s6 + $0x88] sm:$0xff]  ;;  %v612_v9 = vld [vmem:[%s5470_s6 + $0x120] sm:$0xff]  ;;  %v614_v10 = vld [vmem:[%s5470_s6 + $0x130] sm:$0xff] }
 0x113   : > { %4408 = vmatpush1.bf16.msra.mxu1 %v4407_v51  ;;  %4361 = vmatprep.subr.bf16.mxu0 %v5147_v4  ;;  %v595_v51 = vld [vmem:[%s5470_s6 + $0x98] sm:$0xff]  ;;  %v616_v13 = vld [vmem:[%s5470_s6 + $0x140] sm:$0xff]  ;;  %v618_v14 = vld [vmem:[%s5470_s6 + $0x150] sm:$0xff] }
 0x114   : > { %4409 = vmatprep.subr.bf16.mxu1 %v5147_v4  ;;  %v621_v15 = vld [vmem:[%s5470_s6 + $0x168] sm:$0xff]  ;;  %v623_v16 = vld [vmem:[%s5470_s6 + $0x178] sm:$0xff]  ;;  %v624_v21 = vld [vmem:[%s5470_s6 + $0x180] sm:$0xff] }
 0x115   : > { %v625_v19 = vld [vmem:[%s5470_s6 + $0x188] sm:$0xff]  ;;  %v627_v20 = vld [vmem:[%s5470_s6 + $0x198] sm:$0xff]  ;;  %v626_v22 = vld [vmem:[%s5470_s6 + $0x190] sm:$0xff] }
 0x116   : > { %4363 = vmatpush1.bf16.msra.mxu0 %v4362_v56  ;;  %v596_v56 = vld [vmem:[%s5470_s6 + $0xa0] sm:$0xff]  ;;  %v630_v26 = vld [vmem:[%s5470_s6 + $0x1b0] sm:$0xff]  ;;  %v633_v27 = vld [vmem:[%s5470_s6 + $0x1c8] sm:$0xff] }
 0x117   : > { %4411 = vmatpush1.bf16.msra.mxu1 %v4410_v57  ;;  %4364 = vmatprep.subr.bf16.mxu0 %v5147_v4  ;;  %v598_v57 = vld [vmem:[%s5470_s6 + $0xb0] sm:$0xff]  ;;  %v628_v25 = vld [vmem:[%s5470_s6 + $0x1a0] sm:$0xff]  ;;  %v635_v28 = vld [vmem:[%s5470_s6 + $0x1d8] sm:$0xff] }
 0x118   : > { %4412 = vmatprep.subr.bf16.mxu1 %v5147_v4  ;;  %v637_v31 = vld [vmem:[%s5470_s6 + $0x1e8] sm:$0xff]  ;;  %v639_v32 = vld [vmem:[%s5470_s6 + $0x1f8] sm:$0xff]  ;;  %v636_v33 = vld [vmem:[%s5470_s6 + $0x1e0] sm:$0xff] }
 0x119   : > { %v638_v34 = vld [vmem:[%s5470_s6 + $0x1f0] sm:$0xff] }
 0x11a   : > { %4366 = vmatpush1.bf16.msra.mxu0 %v4365_v62  ;;  %v605_v62 = vld [vmem:[%s5470_s6 + $0xe8] sm:$0xff] }
 0x11b   : > { %4414 = vmatpush1.bf16.msra.mxu1 %v4413_v63  ;;  %4367 = vmatprep.subr.bf16.mxu0 %v5147_v4  ;;  %v607_v63 = vld [vmem:[%s5470_s6 + $0xf8] sm:$0xff] }
 0x11c   : > { %4415 = vmatprep.subr.bf16.mxu1 %v5147_v4 }
 0x11e   : > { %4369 = vmatpush1.bf16.msra.mxu0 %v4368_v5  ;;  %v608_v5 = vld [vmem:[%s5470_s6 + $0x100] sm:$0xff] }
 0x11f   : > { %4417 = vmatpush1.bf16.msra.mxu1 %v4416_v6  ;;  %4370 = vmatprep.subr.bf16.mxu0 %v5147_v4  ;;  %v610_v6 = vld [vmem:[%s5470_s6 + $0x110] sm:$0xff] }
 0x120   : > { %4418 = vmatprep.subr.bf16.mxu1 %v5147_v4 }
 0x122   : > { %4372 = vmatpush1.bf16.msra.mxu0 %v4371_v11  ;;  %v617_v11 = vld [vmem:[%s5470_s6 + $0x148] sm:$0xff] }
 0x123   : > { %4420 = vmatpush1.bf16.msra.mxu1 %v4419_v12  ;;  %4373 = vmatprep.subr.bf16.mxu0 %v5147_v4  ;;  %v619_v12 = vld [vmem:[%s5470_s6 + $0x158] sm:$0xff] }
 0x124   : > { %4421 = vmatprep.subr.bf16.mxu1 %v5147_v4 }
 0x126   : > { %4375 = vmatpush1.bf16.msra.mxu0 %v4374_v17  ;;  %v620_v17 = vld [vmem:[%s5470_s6 + $0x160] sm:$0xff] }
 0x127   : > { %4423 = vmatpush1.bf16.msra.mxu1 %v4422_v18  ;;  %4376 = vmatprep.subr.bf16.mxu0 %v5147_v4  ;;  %v622_v18 = vld [vmem:[%s5470_s6 + $0x170] sm:$0xff] }
 0x128   : > { %4424 = vmatprep.subr.bf16.mxu1 %v5147_v4 }
 0x12a   : > { %4378 = vmatpush1.bf16.msra.mxu0 %v4377_v23  ;;  %v629_v23 = vld [vmem:[%s5470_s6 + $0x1a8] sm:$0xff] }
 0x12b   : > { %4426 = vmatpush1.bf16.msra.mxu1 %v4425_v24  ;;  %4379 = vmatprep.subr.bf16.mxu0 %v5147_v4  ;;  %v631_v24 = vld [vmem:[%s5470_s6 + $0x1b8] sm:$0xff] }
 0x12c   : > { %4427 = vmatprep.subr.bf16.mxu1 %v5147_v4 }
 0x12e   : > { %4381 = vmatpush1.bf16.msra.mxu0 %v4380_v29  ;;  %v632_v29 = vld [vmem:[%s5470_s6 + $0x1c0] sm:$0xff] }
 0x12f   : > { %4429 = vmatpush1.bf16.msra.mxu1 %v4428_v30  ;;  %4382 = vmatprep.subr.bf16.mxu0 %v5147_v4  ;;  %v634_v30 = vld [vmem:[%s5470_s6 + $0x1d0] sm:$0xff] }
 0x130   : > { %4430 = vmatprep.subr.bf16.mxu1 %v5147_v4  ;;  %v587_v4 = vld [vmem:[%s5470_s6 + $0x58] sm:$0xff] }
 0x132   : > { %4384 = vmatpush1.bf16.msra.mxu0 %v4383_v35  ;;  %v641_v35 = vld [vmem:[%s5470_s6 + $0x208] sm:$0xff] }
 0x133   : > { %4432 = vmatpush1.bf16.msra.mxu1 %v4431_v36  ;;  %v643_v36 = vld [vmem:[%s5470_s6 + $0x218] sm:$0xff] }
 0x135   : > { %961 = vmatmul.mubr.f32.vlgmr.msra.gmra.mrb[0].mxu0 %v576_v37  ;;  %v640_v37 = vld [vmem:[%s5470_s6 + $0x200] sm:$0xff] }
 0x136   : > { %1346 = vmatmul.mubr.f32.vlgmr.msra.gmra.mrb[0].mxu1 %v578_v38  ;;  %965 = vmatprep.mubr.f32.mxu0 %v581_v39  ;;  %v642_v38 = vld [vmem:[%s5470_s6 + $0x210] sm:$0xff]  ;;  %v645_v39 = vld [vmem:[%s5470_s6 + $0x228] sm:$0xff] }
 0x137   : > { %1350 = vmatprep.mubr.f32.mxu1 %v583_v40  ;;  %v647_v40 = vld [vmem:[%s5470_s6 + $0x238] sm:$0xff] }
 0x139   : > { %966 = vmatmul.mubr.f32.gmra.mrb[2].mxu0 %v580_v41  ;;  %v644_v41 = vld [vmem:[%s5470_s6 + $0x220] sm:$0xff] }
 0x13a   : > { %1351 = vmatmul.mubr.f32.gmra.mrb[2].mxu1 %v582_v42  ;;  %970 = vmatprep.mubr.f32.mxu0 %v585_v43  ;;  %v646_v42 = vld [vmem:[%s5470_s6 + $0x230] sm:$0xff]  ;;  %v649_v43 = vld [vmem:[%s5470_s6 + $0x248] sm:$0xff] }
 0x13b   : > { %1355 = vmatprep.mubr.f32.mxu1 %v587_v4  ;;  %v651_v4 = vld [vmem:[%s5470_s6 + $0x258] sm:$0xff] }
 0x13d   : > { %971 = vmatmul.mubr.f32.gmra.mrb[4].mxu0 %v584_v44  ;;  %v648_v44 = vld [vmem:[%s5470_s6 + $0x240] sm:$0xff] }
 0x13e   : > { %1356 = vmatmul.mubr.f32.gmra.mrb[4].mxu1 %v586_v45  ;;  %975 = vmatprep.mubr.f32.mxu0 %v589_v46  ;;  %v650_v45 = vld [vmem:[%s5470_s6 + $0x250] sm:$0xff]  ;;  %v653_v46 = vld [vmem:[%s5470_s6 + $0x268] sm:$0xff] }
 0x13f   : > { %1360 = vmatprep.mubr.f32.mxu1 %v591_v47  ;;  %v655_v47 = vld [vmem:[%s5470_s6 + $0x278] sm:$0xff] }
 0x141   : > { %976 = vmatmul.mubr.f32.gmra.mrb[6].mxu0 %v588_v48  ;;  %v652_v48 = vld [vmem:[%s5470_s6 + $0x260] sm:$0xff] }
 0x142   : > { %1361 = vmatmul.mubr.f32.gmra.mrb[6].mxu1 %v590_v49  ;;  %980 = vmatprep.mubr.f32.mxu0 %v593_v50  ;;  %v654_v49 = vld [vmem:[%s5470_s6 + $0x270] sm:$0xff]  ;;  %v657_v50 = vld [vmem:[%s5470_s6 + $0x288] sm:$0xff] }
 0x143   : > { %1365 = vmatprep.mubr.f32.mxu1 %v595_v51  ;;  %v659_v51 = vld [vmem:[%s5470_s6 + $0x298] sm:$0xff] }
 0x145   : > { %981 = vmatmul.mubr.f32.gmra.mrb[8].mxu0 %v592_v52  ;;  %v656_v52 = vld [vmem:[%s5470_s6 + $0x280] sm:$0xff] }
 0x146   : > { %1366 = vmatmul.mubr.f32.gmra.mrb[8].mxu1 %v594_v53  ;;  %985 = vmatprep.mubr.f32.mxu0 %v597_v54  ;;  %v658_v53 = vld [vmem:[%s5470_s6 + $0x290] sm:$0xff]  ;;  %v661_v54 = vld [vmem:[%s5470_s6 + $0x2a8] sm:$0xff] }
 0x147   : > { %1370 = vmatprep.mubr.f32.mxu1 %v599_v55  ;;  %v663_v55 = vld [vmem:[%s5470_s6 + $0x2b8] sm:$0xff] }
 0x149   : > { %986 = vmatmul.mubr.f32.gmra.mrb[10].mxu0 %v596_v56  ;;  %v660_v56 = vld [vmem:[%s5470_s6 + $0x2a0] sm:$0xff] }
 0x14a   : > { %1371 = vmatmul.mubr.f32.gmra.mrb[10].mxu1 %v598_v57  ;;  %990 = vmatprep.mubr.f32.mxu0 %v601_v58  ;;  %v662_v57 = vld [vmem:[%s5470_s6 + $0x2b0] sm:$0xff]  ;;  %v665_v58 = vld [vmem:[%s5470_s6 + $0x2c8] sm:$0xff] }
 0x14b   : > { %1375 = vmatprep.mubr.f32.mxu1 %v603_v59  ;;  %v667_v59 = vld [vmem:[%s5470_s6 + $0x2d8] sm:$0xff] }
 0x14d   : > { %991 = vmatmul.mubr.f32.gmra.mrb[12].mxu0 %v600_v60  ;;  %v664_v60 = vld [vmem:[%s5470_s6 + $0x2c0] sm:$0xff] }
 0x14e   : > { %1376 = vmatmul.mubr.f32.gmra.mrb[12].mxu1 %v602_v61  ;;  %995 = vmatprep.mubr.f32.mxu0 %v605_v62  ;;  %v666_v61 = vld [vmem:[%s5470_s6 + $0x2d0] sm:$0xff]  ;;  %v669_v62 = vld [vmem:[%s5470_s6 + $0x2e8] sm:$0xff] }
 0x14f   : > { %1380 = vmatprep.mubr.f32.mxu1 %v607_v63  ;;  %v671_v63 = vld [vmem:[%s5470_s6 + $0x2f8] sm:$0xff] }
 0x151   : > { %996 = vmatmul.mubr.f32.gmra.mrb[14].mxu0 %v604_v0  ;;  %v668_v0 = vld [vmem:[%s5470_s6 + $0x2e0] sm:$0xff] }
 0x152   : > { %1381 = vmatmul.mubr.f32.gmra.mrb[14].mxu1 %v606_v1  ;;  %1000 = vmatprep.mubr.f32.mxu0 %v609_v2  ;;  %v670_v1 = vld [vmem:[%s5470_s6 + $0x2f0] sm:$0xff]  ;;  %v673_v2 = vld [vmem:[%s5470_s6 + $0x308] sm:$0xff] }
 0x153   : > { %1385 = vmatprep.mubr.f32.mxu1 %v611_v3  ;;  %v675_v3 = vld [vmem:[%s5470_s6 + $0x318] sm:$0xff] }
 0x155   : > { %1001 = vmatmul.mubr.f32.gmra.mrb[16].mxu0 %v608_v5  ;;  %v672_v5 = vld [vmem:[%s5470_s6 + $0x300] sm:$0xff] }
 0x156   : > { %1386 = vmatmul.mubr.f32.gmra.mrb[16].mxu1 %v610_v6  ;;  %1005 = vmatprep.mubr.f32.mxu0 %v613_v7  ;;  %v674_v6 = vld [vmem:[%s5470_s6 + $0x310] sm:$0xff]  ;;  %v677_v7 = vld [vmem:[%s5470_s6 + $0x328] sm:$0xff] }
 0x157   : > { %1390 = vmatprep.mubr.f32.mxu1 %v615_v8  ;;  %v679_v8 = vld [vmem:[%s5470_s6 + $0x338] sm:$0xff] }
 0x159   : > { %1006 = vmatmul.mubr.f32.gmra.mrb[18].mxu0 %v612_v9  ;;  %v676_v9 = vld [vmem:[%s5470_s6 + $0x320] sm:$0xff] }
 0x15a   : > { %1391 = vmatmul.mubr.f32.gmra.mrb[18].mxu1 %v614_v10  ;;  %1010 = vmatprep.mubr.f32.mxu0 %v617_v11  ;;  %v678_v10 = vld [vmem:[%s5470_s6 + $0x330] sm:$0xff]  ;;  %v681_v11 = vld [vmem:[%s5470_s6 + $0x348] sm:$0xff] }
 0x15b   : > { %1395 = vmatprep.mubr.f32.mxu1 %v619_v12  ;;  %v683_v12 = vld [vmem:[%s5470_s6 + $0x358] sm:$0xff] }
 0x15d   : > { %1011 = vmatmul.mubr.f32.gmra.mrb[20].mxu0 %v616_v13  ;;  %v680_v13 = vld [vmem:[%s5470_s6 + $0x340] sm:$0xff] }
 0x15e   : > { %1396 = vmatmul.mubr.f32.gmra.mrb[20].mxu1 %v618_v14  ;;  %1015 = vmatprep.mubr.f32.mxu0 %v621_v15  ;;  %v682_v14 = vld [vmem:[%s5470_s6 + $0x350] sm:$0xff]  ;;  %v685_v15 = vld [vmem:[%s5470_s6 + $0x368] sm:$0xff] }
 0x15f   : > { %1400 = vmatprep.mubr.f32.mxu1 %v623_v16  ;;  %v687_v16 = vld [vmem:[%s5470_s6 + $0x378] sm:$0xff] }
 0x161   : > { %1016 = vmatmul.mubr.f32.gmra.mrb[22].mxu0 %v620_v17  ;;  %v684_v17 = vld [vmem:[%s5470_s6 + $0x360] sm:$0xff] }
 0x162   : > { %1401 = vmatmul.mubr.f32.gmra.mrb[22].mxu1 %v622_v18  ;;  %1020 = vmatprep.mubr.f32.mxu0 %v625_v19  ;;  %v686_v18 = vld [vmem:[%s5470_s6 + $0x370] sm:$0xff]  ;;  %v689_v19 = vld [vmem:[%s5470_s6 + $0x388] sm:$0xff] }
 0x163   : > { %1405 = vmatprep.mubr.f32.mxu1 %v627_v20  ;;  %v691_v20 = vld [vmem:[%s5470_s6 + $0x398] sm:$0xff] }
 0x165   : > { %1021 = vmatmul.mubr.f32.gmra.mrb[24].mxu0 %v624_v21  ;;  %v688_v21 = vld [vmem:[%s5470_s6 + $0x380] sm:$0xff] }
 0x166   : > { %1406 = vmatmul.mubr.f32.gmra.mrb[24].mxu1 %v626_v22  ;;  %1025 = vmatprep.mubr.f32.mxu0 %v629_v23  ;;  %v690_v22 = vld [vmem:[%s5470_s6 + $0x390] sm:$0xff]  ;;  %v693_v23 = vld [vmem:[%s5470_s6 + $0x3a8] sm:$0xff] }
 0x167   : > { %1410 = vmatprep.mubr.f32.mxu1 %v631_v24  ;;  %v695_v24 = vld [vmem:[%s5470_s6 + $0x3b8] sm:$0xff] }
 0x169   : > { %1026 = vmatmul.mubr.f32.gmra.mrb[26].mxu0 %v628_v25  ;;  %v692_v25 = vld [vmem:[%s5470_s6 + $0x3a0] sm:$0xff] }
 0x16a   : > { %1411 = vmatmul.mubr.f32.gmra.mrb[26].mxu1 %v630_v26  ;;  %1030 = vmatprep.mubr.f32.mxu0 %v633_v27  ;;  %v694_v26 = vld [vmem:[%s5470_s6 + $0x3b0] sm:$0xff]  ;;  %v697_v27 = vld [vmem:[%s5470_s6 + $0x3c8] sm:$0xff] }
 0x16b   : > { %1415 = vmatprep.mubr.f32.mxu1 %v635_v28  ;;  %v699_v28 = vld [vmem:[%s5470_s6 + $0x3d8] sm:$0xff] }
 0x16d   : > { %1031 = vmatmul.mubr.f32.gmra.mrb[28].mxu0 %v632_v29  ;;  %v696_v29 = vld [vmem:[%s5470_s6 + $0x3c0] sm:$0xff] }
 0x16e   : > { %1416 = vmatmul.mubr.f32.gmra.mrb[28].mxu1 %v634_v30  ;;  %1035 = vmatprep.mubr.f32.mxu0 %v637_v31  ;;  %v698_v30 = vld [vmem:[%s5470_s6 + $0x3d0] sm:$0xff]  ;;  %v701_v31 = vld [vmem:[%s5470_s6 + $0x3e8] sm:$0xff] }
 0x16f   : > { %1420 = vmatprep.mubr.f32.mxu1 %v639_v32  ;;  %v703_v32 = vld [vmem:[%s5470_s6 + $0x3f8] sm:$0xff] }
 0x171   : > { %1036 = vmatmul.mubr.f32.gmra.mrb[30].mxu0 %v636_v33  ;;  %v700_v33 = vld [vmem:[%s5470_s6 + $0x3e0] sm:$0xff] }
 0x172   : > { %1421 = vmatmul.mubr.f32.gmra.mrb[30].mxu1 %v638_v34  ;;  %1040 = vmatprep.mubr.f32.mxu0 %v641_v35  ;;  %v702_v34 = vld [vmem:[%s5470_s6 + $0x3f0] sm:$0xff]  ;;  %v705_v35 = vld [vmem:[%s5470_s6 + $0x408] sm:$0xff] }
 0x173   : > { %1425 = vmatprep.mubr.f32.mxu1 %v643_v36  ;;  %v707_v36 = vld [vmem:[%s5470_s6 + $0x418] sm:$0xff] }
 0x175   : > { %1041 = vmatmul.mubr.f32.gmra.mrb[32].mxu0 %v640_v37  ;;  %v704_v37 = vld [vmem:[%s5470_s6 + $0x400] sm:$0xff] }
 0x176   : > { %1426 = vmatmul.mubr.f32.gmra.mrb[32].mxu1 %v642_v38  ;;  %1045 = vmatprep.mubr.f32.mxu0 %v645_v39  ;;  %v706_v38 = vld [vmem:[%s5470_s6 + $0x410] sm:$0xff]  ;;  %v709_v39 = vld [vmem:[%s5470_s6 + $0x428] sm:$0xff] }
 0x177   : > { %1430 = vmatprep.mubr.f32.mxu1 %v647_v40  ;;  %v711_v40 = vld [vmem:[%s5470_s6 + $0x438] sm:$0xff] }
 0x179   : > { %1046 = vmatmul.mubr.f32.gmra.mrb[34].mxu0 %v644_v41  ;;  %v708_v41 = vld [vmem:[%s5470_s6 + $0x420] sm:$0xff] }
 0x17a   : > { %1431 = vmatmul.mubr.f32.gmra.mrb[34].mxu1 %v646_v42  ;;  %1050 = vmatprep.mubr.f32.mxu0 %v649_v43  ;;  %v710_v42 = vld [vmem:[%s5470_s6 + $0x430] sm:$0xff]  ;;  %v713_v43 = vld [vmem:[%s5470_s6 + $0x448] sm:$0xff] }
 0x17b   : > { %1435 = vmatprep.mubr.f32.mxu1 %v651_v4  ;;  %v715_v4 = vld [vmem:[%s5470_s6 + $0x458] sm:$0xff] }
 0x17d   : > { %1051 = vmatmul.mubr.f32.gmra.mrb[36].mxu0 %v648_v44  ;;  %v712_v44 = vld [vmem:[%s5470_s6 + $0x440] sm:$0xff] }
 0x17e   : > { %1436 = vmatmul.mubr.f32.gmra.mrb[36].mxu1 %v650_v45  ;;  %1055 = vmatprep.mubr.f32.mxu0 %v653_v46  ;;  %v714_v45 = vld [vmem:[%s5470_s6 + $0x450] sm:$0xff]  ;;  %v717_v46 = vld [vmem:[%s5470_s6 + $0x468] sm:$0xff] }
 0x17f   : > { %1440 = vmatprep.mubr.f32.mxu1 %v655_v47  ;;  %v719_v47 = vld [vmem:[%s5470_s6 + $0x478] sm:$0xff] }
 0x181   : > { %1056 = vmatmul.mubr.f32.gmra.mrb[38].mxu0 %v652_v48  ;;  %v716_v48 = vld [vmem:[%s5470_s6 + $0x460] sm:$0xff] }
 0x182   : > { %1441 = vmatmul.mubr.f32.gmra.mrb[38].mxu1 %v654_v49  ;;  %1060 = vmatprep.mubr.f32.mxu0 %v657_v50  ;;  %v718_v49 = vld [vmem:[%s5470_s6 + $0x470] sm:$0xff]  ;;  %v721_v50 = vld [vmem:[%s5470_s6 + $0x488] sm:$0xff] }
 0x183   : > { %1445 = vmatprep.mubr.f32.mxu1 %v659_v51  ;;  %v723_v51 = vld [vmem:[%s5470_s6 + $0x498] sm:$0xff] }
 0x185   : > { %1061 = vmatmul.mubr.f32.gmra.mrb[40].mxu0 %v656_v52  ;;  %v720_v52 = vld [vmem:[%s5470_s6 + $0x480] sm:$0xff] }
 0x186   : > { %1446 = vmatmul.mubr.f32.gmra.mrb[40].mxu1 %v658_v53  ;;  %1065 = vmatprep.mubr.f32.mxu0 %v661_v54  ;;  %v722_v53 = vld [vmem:[%s5470_s6 + $0x490] sm:$0xff]  ;;  %v725_v54 = vld [vmem:[%s5470_s6 + $0x4a8] sm:$0xff] }
 0x187   : > { %1450 = vmatprep.mubr.f32.mxu1 %v663_v55  ;;  %v727_v55 = vld [vmem:[%s5470_s6 + $0x4b8] sm:$0xff] }
 0x189   : > { %1066 = vmatmul.mubr.f32.gmra.mrb[42].mxu0 %v660_v56  ;;  %v724_v56 = vld [vmem:[%s5470_s6 + $0x4a0] sm:$0xff] }
 0x18a   : > { %1451 = vmatmul.mubr.f32.gmra.mrb[42].mxu1 %v662_v57  ;;  %1070 = vmatprep.mubr.f32.mxu0 %v665_v58  ;;  %v726_v57 = vld [vmem:[%s5470_s6 + $0x4b0] sm:$0xff]  ;;  %v729_v58 = vld [vmem:[%s5470_s6 + $0x4c8] sm:$0xff] }
 0x18b   : > { %1455 = vmatprep.mubr.f32.mxu1 %v667_v59  ;;  %v731_v59 = vld [vmem:[%s5470_s6 + $0x4d8] sm:$0xff] }
 0x18d   : > { %1071 = vmatmul.mubr.f32.gmra.mrb[44].mxu0 %v664_v60  ;;  %v728_v60 = vld [vmem:[%s5470_s6 + $0x4c0] sm:$0xff] }
 0x18e   : > { %1456 = vmatmul.mubr.f32.gmra.mrb[44].mxu1 %v666_v61  ;;  %1075 = vmatprep.mubr.f32.mxu0 %v669_v62  ;;  %v730_v61 = vld [vmem:[%s5470_s6 + $0x4d0] sm:$0xff]  ;;  %v733_v62 = vld [vmem:[%s5470_s6 + $0x4e8] sm:$0xff] }
 0x18f   : > { %1460 = vmatprep.mubr.f32.mxu1 %v671_v63  ;;  %v735_v63 = vld [vmem:[%s5470_s6 + $0x4f8] sm:$0xff] }
 0x191   : > { %1076 = vmatmul.mubr.f32.gmra.mrb[46].mxu0 %v668_v0  ;;  %v732_v0 = vld [vmem:[%s5470_s6 + $0x4e0] sm:$0xff] }
 0x192   : > { %1461 = vmatmul.mubr.f32.gmra.mrb[46].mxu1 %v670_v1  ;;  %1080 = vmatprep.mubr.f32.mxu0 %v673_v2  ;;  %v734_v1 = vld [vmem:[%s5470_s6 + $0x4f0] sm:$0xff]  ;;  %v737_v2 = vld [vmem:[%s5470_s6 + $0x508] sm:$0xff] }
 0x193   : > { %1465 = vmatprep.mubr.f32.mxu1 %v675_v3  ;;  %v739_v3 = vld [vmem:[%s5470_s6 + $0x518] sm:$0xff] }
 0x195   : > { %1081 = vmatmul.mubr.f32.gmra.mrb[48].mxu0 %v672_v5  ;;  %v736_v5 = vld [vmem:[%s5470_s6 + $0x500] sm:$0xff] }
 0x196   : > { %1466 = vmatmul.mubr.f32.gmra.mrb[48].mxu1 %v674_v6  ;;  %1085 = vmatprep.mubr.f32.mxu0 %v677_v7  ;;  %v738_v6 = vld [vmem:[%s5470_s6 + $0x510] sm:$0xff]  ;;  %v741_v7 = vld [vmem:[%s5470_s6 + $0x528] sm:$0xff] }
 0x197   : > { %1470 = vmatprep.mubr.f32.mxu1 %v679_v8  ;;  %v743_v8 = vld [vmem:[%s5470_s6 + $0x538] sm:$0xff] }
 0x199   : > { %1086 = vmatmul.mubr.f32.gmra.mrb[50].mxu0 %v676_v9  ;;  %v740_v9 = vld [vmem:[%s5470_s6 + $0x520] sm:$0xff] }
 0x19a   : > { %1471 = vmatmul.mubr.f32.gmra.mrb[50].mxu1 %v678_v10  ;;  %1090 = vmatprep.mubr.f32.mxu0 %v681_v11  ;;  %v742_v10 = vld [vmem:[%s5470_s6 + $0x530] sm:$0xff]  ;;  %v745_v11 = vld [vmem:[%s5470_s6 + $0x548] sm:$0xff] }
 0x19b   : > { %1475 = vmatprep.mubr.f32.mxu1 %v683_v12  ;;  %v747_v12 = vld [vmem:[%s5470_s6 + $0x558] sm:$0xff] }
 0x19d   : > { %1091 = vmatmul.mubr.f32.gmra.mrb[52].mxu0 %v680_v13  ;;  %v744_v13 = vld [vmem:[%s5470_s6 + $0x540] sm:$0xff] }
 0x19e   : > { %1476 = vmatmul.mubr.f32.gmra.mrb[52].mxu1 %v682_v14  ;;  %1095 = vmatprep.mubr.f32.mxu0 %v685_v15  ;;  %v746_v14 = vld [vmem:[%s5470_s6 + $0x550] sm:$0xff]  ;;  %v749_v15 = vld [vmem:[%s5470_s6 + $0x568] sm:$0xff] }
 0x19f   : > { %1480 = vmatprep.mubr.f32.mxu1 %v687_v16  ;;  %v751_v16 = vld [vmem:[%s5470_s6 + $0x578] sm:$0xff] }
 0x1a1   : > { %1096 = vmatmul.mubr.f32.gmra.mrb[54].mxu0 %v684_v17  ;;  %v748_v17 = vld [vmem:[%s5470_s6 + $0x560] sm:$0xff] }
 0x1a2   : > { %1481 = vmatmul.mubr.f32.gmra.mrb[54].mxu1 %v686_v18  ;;  %1100 = vmatprep.mubr.f32.mxu0 %v689_v19  ;;  %v750_v18 = vld [vmem:[%s5470_s6 + $0x570] sm:$0xff]  ;;  %v753_v19 = vld [vmem:[%s5470_s6 + $0x588] sm:$0xff] }
 0x1a3   : > { %1485 = vmatprep.mubr.f32.mxu1 %v691_v20  ;;  %v755_v20 = vld [vmem:[%s5470_s6 + $0x598] sm:$0xff] }
 0x1a5   : > { %1101 = vmatmul.mubr.f32.gmra.mrb[56].mxu0 %v688_v21  ;;  %v752_v21 = vld [vmem:[%s5470_s6 + $0x580] sm:$0xff] }
 0x1a6   : > { %1486 = vmatmul.mubr.f32.gmra.mrb[56].mxu1 %v690_v22  ;;  %1105 = vmatprep.mubr.f32.mxu0 %v693_v23  ;;  %v754_v22 = vld [vmem:[%s5470_s6 + $0x590] sm:$0xff]  ;;  %v757_v23 = vld [vmem:[%s5470_s6 + $0x5a8] sm:$0xff] }
 0x1a7   : > { %1490 = vmatprep.mubr.f32.mxu1 %v695_v24  ;;  %v759_v24 = vld [vmem:[%s5470_s6 + $0x5b8] sm:$0xff] }
 0x1a9   : > { %1106 = vmatmul.mubr.f32.gmra.mrb[58].mxu0 %v692_v25  ;;  %v756_v25 = vld [vmem:[%s5470_s6 + $0x5a0] sm:$0xff] }
 0x1aa   : > { %1491 = vmatmul.mubr.f32.gmra.mrb[58].mxu1 %v694_v26  ;;  %1110 = vmatprep.mubr.f32.mxu0 %v697_v27  ;;  %v758_v26 = vld [vmem:[%s5470_s6 + $0x5b0] sm:$0xff]  ;;  %v761_v27 = vld [vmem:[%s5470_s6 + $0x5c8] sm:$0xff] }
 0x1ab   : > { %1495 = vmatprep.mubr.f32.mxu1 %v699_v28  ;;  %v763_v28 = vld [vmem:[%s5470_s6 + $0x5d8] sm:$0xff] }
 0x1ad   : > { %1111 = vmatmul.mubr.f32.gmra.mrb[60].mxu0 %v696_v29  ;;  %v760_v29 = vld [vmem:[%s5470_s6 + $0x5c0] sm:$0xff] }
 0x1ae   : > { %1496 = vmatmul.mubr.f32.gmra.mrb[60].mxu1 %v698_v30  ;;  %1115 = vmatprep.mubr.f32.mxu0 %v701_v31  ;;  %v762_v30 = vld [vmem:[%s5470_s6 + $0x5d0] sm:$0xff]  ;;  %v765_v31 = vld [vmem:[%s5470_s6 + $0x5e8] sm:$0xff] }
 0x1af   : > { %1500 = vmatprep.mubr.f32.mxu1 %v703_v32  ;;  %v767_v32 = vld [vmem:[%s5470_s6 + $0x5f8] sm:$0xff] }
 0x1b1   : > { %1116 = vmatmul.mubr.f32.gmra.mrb[62].mxu0 %v700_v33  ;;  %v764_v33 = vld [vmem:[%s5470_s6 + $0x5e0] sm:$0xff] }
 0x1b2   : > { %1501 = vmatmul.mubr.f32.gmra.mrb[62].mxu1 %v702_v34  ;;  %1120 = vmatprep.mubr.f32.mxu0 %v705_v35  ;;  %v766_v34 = vld [vmem:[%s5470_s6 + $0x5f0] sm:$0xff]  ;;  %v769_v35 = vld [vmem:[%s5470_s6 + $0x608] sm:$0xff] }
 0x1b3   : > { %1505 = vmatprep.mubr.f32.mxu1 %v707_v36  ;;  %v771_v36 = vld [vmem:[%s5470_s6 + $0x618] sm:$0xff] }
 0x1b5   : > { %1121 = vmatmul.mubr.f32.gmra.mrb[64].mxu0 %v704_v37  ;;  %v768_v37 = vld [vmem:[%s5470_s6 + $0x600] sm:$0xff] }
 0x1b6   : > { %1506 = vmatmul.mubr.f32.gmra.mrb[64].mxu1 %v706_v38  ;;  %1125 = vmatprep.mubr.f32.mxu0 %v709_v39  ;;  %v770_v38 = vld [vmem:[%s5470_s6 + $0x610] sm:$0xff]  ;;  %v773_v39 = vld [vmem:[%s5470_s6 + $0x628] sm:$0xff] }
 0x1b7   : > { %1510 = vmatprep.mubr.f32.mxu1 %v711_v40  ;;  %v775_v40 = vld [vmem:[%s5470_s6 + $0x638] sm:$0xff] }
 0x1b9   : > { %1126 = vmatmul.mubr.f32.gmra.mrb[66].mxu0 %v708_v41  ;;  %v772_v41 = vld [vmem:[%s5470_s6 + $0x620] sm:$0xff] }
 0x1ba   : > { %1511 = vmatmul.mubr.f32.gmra.mrb[66].mxu1 %v710_v42  ;;  %1130 = vmatprep.mubr.f32.mxu0 %v713_v43  ;;  %v774_v42 = vld [vmem:[%s5470_s6 + $0x630] sm:$0xff]  ;;  %v777_v43 = vld [vmem:[%s5470_s6 + $0x648] sm:$0xff] }
 0x1bb   : > { %1515 = vmatprep.mubr.f32.mxu1 %v715_v4  ;;  %v779_v4 = vld [vmem:[%s5470_s6 + $0x658] sm:$0xff] }
 0x1bd   : > { %1131 = vmatmul.mubr.f32.gmra.mrb[68].mxu0 %v712_v44  ;;  %v776_v44 = vld [vmem:[%s5470_s6 + $0x640] sm:$0xff] }
 0x1be   : > { %1516 = vmatmul.mubr.f32.gmra.mrb[68].mxu1 %v714_v45  ;;  %1135 = vmatprep.mubr.f32.mxu0 %v717_v46  ;;  %v778_v45 = vld [vmem:[%s5470_s6 + $0x650] sm:$0xff]  ;;  %v781_v46 = vld [vmem:[%s5470_s6 + $0x668] sm:$0xff] }
 0x1bf   : > { %1520 = vmatprep.mubr.f32.mxu1 %v719_v47  ;;  %v783_v47 = vld [vmem:[%s5470_s6 + $0x678] sm:$0xff] }
 0x1c1   : > { %1136 = vmatmul.mubr.f32.gmra.mrb[70].mxu0 %v716_v48  ;;  %v780_v48 = vld [vmem:[%s5470_s6 + $0x660] sm:$0xff] }
 0x1c2   : > { %1521 = vmatmul.mubr.f32.gmra.mrb[70].mxu1 %v718_v49  ;;  %1140 = vmatprep.mubr.f32.mxu0 %v721_v50  ;;  %v782_v49 = vld [vmem:[%s5470_s6 + $0x670] sm:$0xff]  ;;  %v785_v50 = vld [vmem:[%s5470_s6 + $0x688] sm:$0xff] }
 0x1c3   : > { %1525 = vmatprep.mubr.f32.mxu1 %v723_v51  ;;  %v787_v51 = vld [vmem:[%s5470_s6 + $0x698] sm:$0xff] }
 0x1c5   : > { %1141 = vmatmul.mubr.f32.gmra.mrb[72].mxu0 %v720_v52  ;;  %v784_v52 = vld [vmem:[%s5470_s6 + $0x680] sm:$0xff] }
 0x1c6   : > { %1526 = vmatmul.mubr.f32.gmra.mrb[72].mxu1 %v722_v53  ;;  %1145 = vmatprep.mubr.f32.mxu0 %v725_v54  ;;  %v786_v53 = vld [vmem:[%s5470_s6 + $0x690] sm:$0xff]  ;;  %v789_v54 = vld [vmem:[%s5470_s6 + $0x6a8] sm:$0xff] }
 0x1c7   : > { %1530 = vmatprep.mubr.f32.mxu1 %v727_v55  ;;  %v791_v55 = vld [vmem:[%s5470_s6 + $0x6b8] sm:$0xff] }
 0x1c9   : > { %1146 = vmatmul.mubr.f32.gmra.mrb[74].mxu0 %v724_v56  ;;  %v788_v56 = vld [vmem:[%s5470_s6 + $0x6a0] sm:$0xff] }
 0x1ca   : > { %1531 = vmatmul.mubr.f32.gmra.mrb[74].mxu1 %v726_v57  ;;  %1150 = vmatprep.mubr.f32.mxu0 %v729_v58  ;;  %v790_v57 = vld [vmem:[%s5470_s6 + $0x6b0] sm:$0xff]  ;;  %v793_v58 = vld [vmem:[%s5470_s6 + $0x6c8] sm:$0xff] }
 0x1cb   : > { %1535 = vmatprep.mubr.f32.mxu1 %v731_v59 }
 0x1cd   : > { %1151 = vmatmul.mubr.f32.gmra.mrb[76].mxu0 %v728_v60  ;;  %v795_v60 = vld [vmem:[%s5470_s6 + $0x6d8] sm:$0xff] }
 0x1ce   : > { %1536 = vmatmul.mubr.f32.gmra.mrb[76].mxu1 %v730_v61  ;;  %1155 = vmatprep.mubr.f32.mxu0 %v733_v62  ;;  %v512_v61 = vld [vmem:[#allocation2] sm:$0xff] }
 0x1cf   : > { %1540 = vmatprep.mubr.f32.mxu1 %v735_v63 }
 0x1d1   : > { %1156 = vmatmul.mubr.f32.gmra.mrb[78].mxu0 %v732_v0 }
 0x1d2   : > { %1541 = vmatmul.mubr.f32.gmra.mrb[78].mxu1 %v734_v1  ;;  %1160 = vmatprep.mubr.f32.mxu0 %v737_v2  ;;  %v792_v2 = vld [vmem:[%s5470_s6 + $0x6c0] sm:$0xff] }
 0x1d3   : > { %1545 = vmatprep.mubr.f32.mxu1 %v739_v3  ;;  %v794_v3 = vld [vmem:[%s5470_s6 + $0x6d0] sm:$0xff] }
 0x1d5   : > { %1161 = vmatmul.mubr.f32.gmra.mrb[80].mxu0 %v736_v5  ;;  %v797_v5 = vld [vmem:[%s5470_s6 + $0x6e8] sm:$0xff] }
 0x1d6   : > { %1546 = vmatmul.mubr.f32.gmra.mrb[80].mxu1 %v738_v6  ;;  %1165 = vmatprep.mubr.f32.mxu0 %v741_v7 }
 0x1d7   : > { %1550 = vmatprep.mubr.f32.mxu1 %v743_v8  ;;  %v799_v8 = vld [vmem:[%s5470_s6 + $0x6f8] sm:$0xff] }
 0x1d9   : > { %1166 = vmatmul.mubr.f32.gmra.mrb[82].mxu0 %v740_v9  ;;  %v513_v9 = vld [vmem:[#allocation2 + $0x8] sm:$0xff] }
 0x1da   : > { %1551 = vmatmul.mubr.f32.gmra.mrb[82].mxu1 %v742_v10  ;;  %1170 = vmatprep.mubr.f32.mxu0 %v745_v11 }
 0x1db   : > { %1555 = vmatprep.mubr.f32.mxu1 %v747_v12 }
 0x1dd   : > { %1171 = vmatmul.mubr.f32.gmra.mrb[84].mxu0 %v744_v13 }
 0x1de   : > { %1556 = vmatmul.mubr.f32.gmra.mrb[84].mxu1 %v746_v14  ;;  %1175 = vmatprep.mubr.f32.mxu0 %v749_v15  ;;  %v796_v14 = vld [vmem:[%s5470_s6 + $0x6e0] sm:$0xff]  ;;  %v798_v15 = vld [vmem:[%s5470_s6 + $0x6f0] sm:$0xff] }
 0x1df   : > { %1560 = vmatprep.mubr.f32.mxu1 %v751_v16  ;;  %v801_v16 = vld [vmem:[%s5470_s6 + $0x708] sm:$0xff] }
 0x1e1   : > { %1176 = vmatmul.mubr.f32.gmra.mrb[86].mxu0 %v748_v17 }
 0x1e2   : > { %1561 = vmatmul.mubr.f32.gmra.mrb[86].mxu1 %v750_v18  ;;  %1180 = vmatprep.mubr.f32.mxu0 %v753_v19  ;;  %v803_v19 = vld [vmem:[%s5470_s6 + $0x718] sm:$0xff] }
 0x1e3   : > { %1565 = vmatprep.mubr.f32.mxu1 %v755_v20  ;;  %v514_v20 = vld [vmem:[#allocation2 + $0x10] sm:$0xff] }
 0x1e5   : > { %1181 = vmatmul.mubr.f32.gmra.mrb[88].mxu0 %v752_v21 }
 0x1e6   : > { %1566 = vmatmul.mubr.f32.gmra.mrb[88].mxu1 %v754_v22  ;;  %1185 = vmatprep.mubr.f32.mxu0 %v757_v23 }
 0x1e7   : > { %1570 = vmatprep.mubr.f32.mxu1 %v759_v24 }
 0x1e9   : > { %1186 = vmatmul.mubr.f32.gmra.mrb[90].mxu0 %v756_v25  ;;  %v800_v25 = vld [vmem:[%s5470_s6 + $0x700] sm:$0xff] }
 0x1ea   : > { %1571 = vmatmul.mubr.f32.gmra.mrb[90].mxu1 %v758_v26  ;;  %1190 = vmatprep.mubr.f32.mxu0 %v761_v27  ;;  %v802_v26 = vld [vmem:[%s5470_s6 + $0x710] sm:$0xff]  ;;  %v805_v27 = vld [vmem:[%s5470_s6 + $0x728] sm:$0xff] }
 0x1eb   : > { %1575 = vmatprep.mubr.f32.mxu1 %v763_v28 }
 0x1ed   : > { %1191 = vmatmul.mubr.f32.gmra.mrb[92].mxu0 %v760_v29 }
 0x1ee   : > { %1576 = vmatmul.mubr.f32.gmra.mrb[92].mxu1 %v762_v30  ;;  %1195 = vmatprep.mubr.f32.mxu0 %v765_v31  ;;  %v807_v30 = vld [vmem:[%s5470_s6 + $0x738] sm:$0xff] }
 0x1ef   : > { %1580 = vmatprep.mubr.f32.mxu1 %v767_v32  ;;  %v515_v31 = vld [vmem:[#allocation2 + $0x18] sm:$0xff] }
 0x1f1   : > { %1196 = vmatmul.mubr.f32.gmra.mrb[94].mxu0 %v764_v33 }
 0x1f2   : > { %1581 = vmatmul.mubr.f32.gmra.mrb[94].mxu1 %v766_v34  ;;  %1200 = vmatprep.mubr.f32.mxu0 %v769_v35 }
 0x1f3   : > { %1585 = vmatprep.mubr.f32.mxu1 %v771_v36  ;;  %v804_v36 = vld [vmem:[%s5470_s6 + $0x720] sm:$0xff] }
 0x1f5   : > { %1201 = vmatmul.mubr.f32.gmra.mrb[96].mxu0 %v768_v37  ;;  %v806_v37 = vld [vmem:[%s5470_s6 + $0x730] sm:$0xff] }
 0x1f6   : > { %1586 = vmatmul.mubr.f32.gmra.mrb[96].mxu1 %v770_v38  ;;  %1205 = vmatprep.mubr.f32.mxu0 %v773_v39  ;;  %v809_v38 = vld [vmem:[%s5470_s6 + $0x748] sm:$0xff] }
 0x1f7   : > { %1590 = vmatprep.mubr.f32.mxu1 %v775_v40 }
 0x1f9   : > { %1206 = vmatmul.mubr.f32.gmra.mrb[98].mxu0 %v772_v41  ;;  %v811_v41 = vld [vmem:[%s5470_s6 + $0x758] sm:$0xff] }
 0x1fa   : > { %1591 = vmatmul.mubr.f32.gmra.mrb[98].mxu1 %v774_v42  ;;  %1210 = vmatprep.mubr.f32.mxu0 %v777_v43  ;;  %v516_v42 = vld [vmem:[#allocation2 + $0x20] sm:$0xff] }
 0x1fb   : > { %1595 = vmatprep.mubr.f32.mxu1 %v779_v4 }
 0x1fd   : > { %1211 = vmatmul.mubr.f32.gmra.mrb[100].mxu0 %v776_v44 }
 0x1fe   : > { %1596 = vmatmul.mubr.f32.gmra.mrb[100].mxu1 %v778_v45  ;;  %1215 = vmatprep.mubr.f32.mxu0 %v781_v46  ;;  %v808_v46 = vld [vmem:[%s5470_s6 + $0x740] sm:$0xff] }
 0x1ff   : > { %1600 = vmatprep.mubr.f32.mxu1 %v783_v47  ;;  %v810_v47 = vld [vmem:[%s5470_s6 + $0x750] sm:$0xff] }
 0x201   : > { %1216 = vmatmul.mubr.f32.gmra.mrb[102].mxu0 %v780_v48  ;;  %v813_v48 = vld [vmem:[%s5470_s6 + $0x768] sm:$0xff] }
 0x202   : > { %1601 = vmatmul.mubr.f32.gmra.mrb[102].mxu1 %v782_v49  ;;  %1220 = vmatprep.mubr.f32.mxu0 %v785_v50 }
 0x203   : > { %1605 = vmatprep.mubr.f32.mxu1 %v787_v51  ;;  %v815_v51 = vld [vmem:[%s5470_s6 + $0x778] sm:$0xff] }
 0x205   : > { %1221 = vmatmul.mubr.f32.gmra.mrb[104].mxu0 %v784_v52  ;;  %v517_v52 = vld [vmem:[#allocation2 + $0x28] sm:$0xff] }
 0x206   : > { %1606 = vmatmul.mubr.f32.gmra.mrb[104].mxu1 %v786_v53  ;;  %1225 = vmatprep.mubr.f32.mxu0 %v789_v54 }
 0x207   : > { %1610 = vmatprep.mubr.f32.mxu1 %v791_v55 }
 0x208   : > { %v962_v59 = vpop.f32.mrb[0].mxu0 }
 0x209   : > { %v1347_v62 = vpop.f32.mrb[0].mxu1  ;;  %v964_v63 = vpop.f32.mrb[1].mxu0  ;;  %1226 = vmatmul.mubr.f32.gmra.mrb[106].mxu0 %v788_v56 }
 0x20a   : > { %v1348_v0 = vadd.f32 %v1347_v62, %v962_v59  ;;  %v1349_v1 = vpop.f32.mrb[1].mxu1  ;;  %1611 = vmatmul.mubr.f32.gmra.mrb[106].mxu1 %v790_v57  ;;  %1230 = vmatprep.mubr.f32.mxu0 %v793_v58  ;;  %v812_v57 = vld [vmem:[%s5470_s6 + $0x760] sm:$0xff]  ;;  %v814_v58 = vld [vmem:[%s5470_s6 + $0x770] sm:$0xff]  ;;  %v817_v59 = vld [vmem:[%s5470_s6 + $0x788] sm:$0xff] }
 0x20b   : > { %1615 = vmatprep.mubr.f32.mxu1 %v795_v60  ;;  %v819_v62 = vld [vmem:[%s5470_s6 + $0x798] sm:$0xff]  ;;  %v518_v63 = vld [vmem:[#allocation2 + $0x30] sm:$0xff] }
 0x20c   : > { %v1666_v6 = vadd.f32 %v1348_v0, %v512_v61  ;;  %v967_v7 = vpop.f32.mrb[2].mxu0 }
 0x20d   : > { %v1352_v10 = vpop.f32.mrb[2].mxu1  ;;  %v969_v11 = vpop.f32.mrb[3].mxu0  ;;  %1231 = vmatmul.mubr.f32.gmra.mrb[108].mxu0 %v792_v2 }
 0x20e   : > { %1731 = vst.msk [vmem:[#allocation2] sm:$0xff] %vm1730_vm1, %v1666_v6  ;;  %v1353_v12 = vadd.f32 %v1352_v10, %v967_v7  ;;  %v1354_v13 = vpop.f32.mrb[3].mxu1  ;;  %1616 = vmatmul.mubr.f32.gmra.mrb[108].mxu1 %v794_v3  ;;  %1235 = vmatprep.mubr.f32.mxu0 %v797_v5  ;;  %v816_v5 = vld [vmem:[%s5470_s6 + $0x780] sm:$0xff]  ;;  %v818_v6 = vld [vmem:[%s5470_s6 + $0x790] sm:$0xff]  ;;  %v821_v7 = vld [vmem:[%s5470_s6 + $0x7a8] sm:$0xff] }
 0x20f   : > { %1620 = vmatprep.mubr.f32.mxu1 %v799_v8  ;;  %v823_v10 = vld [vmem:[%s5470_s6 + $0x7b8] sm:$0xff] }
 0x210   : > { %v1667_v17 = vadd.f32 %v1353_v12, %v513_v9  ;;  %v972_v18 = vpop.f32.mrb[4].mxu0  ;;  %v519_v11 = vld [vmem:[#allocation2 + $0x38] sm:$0xff] }
 0x211   : > { %v1357_v21 = vpop.f32.mrb[4].mxu1  ;;  %v974_v22 = vpop.f32.mrb[5].mxu0  ;;  %1236 = vmatmul.mubr.f32.gmra.mrb[110].mxu0 %v796_v14 }
 0x212   : > { %1732 = vst.msk [vmem:[#allocation2 + $0x8] sm:$0xff] %vm1730_vm1, %v1667_v17  ;;  %v1358_v23 = vadd.f32 %v1357_v21, %v972_v18  ;;  %v1359_v24 = vpop.f32.mrb[5].mxu1  ;;  %1621 = vmatmul.mubr.f32.gmra.mrb[110].mxu1 %v798_v15  ;;  %1240 = vmatprep.mubr.f32.mxu0 %v801_v16  ;;  %v820_v16 = vld [vmem:[%s5470_s6 + $0x7a0] sm:$0xff]  ;;  %v822_v17 = vld [vmem:[%s5470_s6 + $0x7b0] sm:$0xff]  ;;  %v825_v18 = vld [vmem:[%s5470_s6 + $0x7c8] sm:$0xff] }
 0x213   : > { %1625 = vmatprep.mubr.f32.mxu1 %v803_v19  ;;  %v827_v21 = vld [vmem:[%s5470_s6 + $0x7d8] sm:$0xff]  ;;  %v520_v22 = vld [vmem:[#allocation2 + $0x40] sm:$0xff] }
 0x214   : > { %v1668_v28 = vadd.f32 %v1358_v23, %v514_v20  ;;  %v977_v29 = vpop.f32.mrb[6].mxu0 }
 0x215   : > { %v1362_v32 = vpop.f32.mrb[6].mxu1  ;;  %v979_v33 = vpop.f32.mrb[7].mxu0  ;;  %1241 = vmatmul.mubr.f32.gmra.mrb[112].mxu0 %v800_v25 }
 0x216   : > { %1733 = vst.msk [vmem:[#allocation2 + $0x10] sm:$0xff] %vm1730_vm1, %v1668_v28  ;;  %v1363_v34 = vadd.f32 %v1362_v32, %v977_v29  ;;  %v1364_v35 = vpop.f32.mrb[7].mxu1  ;;  %1626 = vmatmul.mubr.f32.gmra.mrb[112].mxu1 %v802_v26  ;;  %1245 = vmatprep.mubr.f32.mxu0 %v805_v27  ;;  %v824_v27 = vld [vmem:[%s5470_s6 + $0x7c0] sm:$0xff]  ;;  %v826_v28 = vld [vmem:[%s5470_s6 + $0x7d0] sm:$0xff]  ;;  %v829_v29 = vld [vmem:[%s5470_s6 + $0x7e8] sm:$0xff] }
 0x217   : > { %1630 = vmatprep.mubr.f32.mxu1 %v807_v30  ;;  %v831_v32 = vld [vmem:[%s5470_s6 + $0x7f8] sm:$0xff]  ;;  %v521_v33 = vld [vmem:[#allocation2 + $0x48] sm:$0xff] }
 0x218   : > { %v1669_v39 = vadd.f32 %v1363_v34, %v515_v31  ;;  %v982_v40 = vpop.f32.mrb[8].mxu0 }
 0x219   : > { %v1367_v43 = vpop.f32.mrb[8].mxu1  ;;  %v984_v4 = vpop.f32.mrb[9].mxu0  ;;  %1246 = vmatmul.mubr.f32.gmra.mrb[114].mxu0 %v804_v36 }
 0x21a   : > { %1734 = vst.msk [vmem:[#allocation2 + $0x18] sm:$0xff] %vm1730_vm1, %v1669_v39  ;;  %v1368_v44 = vadd.f32 %v1367_v43, %v982_v40  ;;  %v1369_v45 = vpop.f32.mrb[9].mxu1  ;;  %1631 = vmatmul.mubr.f32.gmra.mrb[114].mxu1 %v806_v37  ;;  %1250 = vmatprep.mubr.f32.mxu0 %v809_v38  ;;  %v828_v38 = vld [vmem:[%s5470_s6 + $0x7e0] sm:$0xff]  ;;  %v830_v39 = vld [vmem:[%s5470_s6 + $0x7f0] sm:$0xff] }
 0x21b   : > { %1635 = vmatprep.mubr.f32.mxu1 %v811_v41 }
 0x21c   : > { %v1670_v49 = vadd.f32 %v1368_v44, %v516_v42  ;;  %v987_v50 = vpop.f32.mrb[10].mxu0  ;;  %v522_v42 = vld [vmem:[#allocation2 + $0x50] sm:$0xff] }
 0x21d   : > { %v1372_v53 = vpop.f32.mrb[10].mxu1  ;;  %v989_v54 = vpop.f32.mrb[11].mxu0  ;;  %1251 = vmatmul.mubr.f32.gmra.mrb[116].mxu0 %v808_v46 }
 0x21e   : > { %1735 = vst.msk [vmem:[#allocation2 + $0x20] sm:$0xff] %vm1730_vm1, %v1670_v49  ;;  %v1373_v55 = vadd.f32 %v1372_v53, %v987_v50  ;;  %v1374_v56 = vpop.f32.mrb[11].mxu1  ;;  %1636 = vmatmul.mubr.f32.gmra.mrb[116].mxu1 %v810_v47  ;;  %1255 = vmatprep.mubr.f32.mxu0 %v813_v48  ;;  %v523_v48 = vld [vmem:[#allocation2 + $0x58] sm:$0xff] }
 0x21f   : > { %1640 = vmatprep.mubr.f32.mxu1 %v815_v51 }
 0x220   : > { %v1671_v60 = vadd.f32 %v1373_v55, %v517_v52  ;;  %v992_v61 = vpop.f32.mrb[12].mxu0  ;;  %v524_v55 = vld [vmem:[#allocation2 + $0x60] sm:$0xff] }
 0x221   : > { %v1377_v0 = vpop.f32.mrb[12].mxu1  ;;  %v994_v1 = vpop.f32.mrb[13].mxu0  ;;  %1256 = vmatmul.mubr.f32.gmra.mrb[118].mxu0 %v812_v57 }
 0x222   : > { %1736 = vst.msk [vmem:[#allocation2 + $0x28] sm:$0xff] %vm1730_vm1, %v1671_v60  ;;  %v1378_v2 = vadd.f32 %v1377_v0, %v992_v61  ;;  %v1379_v3 = vpop.f32.mrb[13].mxu1  ;;  %1641 = vmatmul.mubr.f32.gmra.mrb[118].mxu1 %v814_v58  ;;  %1260 = vmatprep.mubr.f32.mxu0 %v817_v59 }
 0x223   : > { %1645 = vmatprep.mubr.f32.mxu1 %v819_v62  ;;  %v525_v62 = vld [vmem:[#allocation2 + $0x68] sm:$0xff] }
 0x224   : > { %v1672_v8 = vadd.f32 %v1378_v2, %v518_v63  ;;  %v997_v9 = vpop.f32.mrb[14].mxu0 }
 0x225   : > { %v1382_v12 = vpop.f32.mrb[14].mxu1  ;;  %v999_v13 = vpop.f32.mrb[15].mxu0  ;;  %1261 = vmatmul.mubr.f32.gmra.mrb[120].mxu0 %v816_v5 }
 0x226   : > { %1737 = vst.msk [vmem:[#allocation2 + $0x30] sm:$0xff] %vm1730_vm1, %v1672_v8  ;;  %v1383_v14 = vadd.f32 %v1382_v12, %v997_v9  ;;  %v1384_v15 = vpop.f32.mrb[15].mxu1  ;;  %1646 = vmatmul.mubr.f32.gmra.mrb[120].mxu1 %v818_v6  ;;  %1265 = vmatprep.mubr.f32.mxu0 %v821_v7  ;;  %v526_v6 = vld [vmem:[#allocation2 + $0x70] sm:$0xff]  ;;  %v527_v13 = vld [vmem:[#allocation2 + $0x78] sm:$0xff] }
 0x227   : > { %1650 = vmatprep.mubr.f32.mxu1 %v823_v10 }
 0x228   : > { %v1673_v19 = vadd.f32 %v1383_v14, %v519_v11  ;;  %v1002_v20 = vpop.f32.mrb[16].mxu0 }
 0x229   : > { %v1387_v23 = vpop.f32.mrb[16].mxu1  ;;  %v1004_v24 = vpop.f32.mrb[17].mxu0  ;;  %1266 = vmatmul.mubr.f32.gmra.mrb[122].mxu0 %v820_v16 }
 0x22a   : > { %1738 = vst.msk [vmem:[#allocation2 + $0x38] sm:$0xff] %vm1730_vm1, %v1673_v19  ;;  %v1388_v25 = vadd.f32 %v1387_v23, %v1002_v20  ;;  %v1389_v26 = vpop.f32.mrb[17].mxu1  ;;  %1651 = vmatmul.mubr.f32.gmra.mrb[122].mxu1 %v822_v17  ;;  %1270 = vmatprep.mubr.f32.mxu0 %v825_v18  ;;  %v528_v20 = vld [vmem:[#allocation2 + $0x80] sm:$0xff] }
 0x22b   : > { %1655 = vmatprep.mubr.f32.mxu1 %v827_v21 }
 0x22c   : > { %v1674_v30 = vadd.f32 %v1388_v25, %v520_v22  ;;  %v1007_v31 = vpop.f32.mrb[18].mxu0 }
 0x22d   : > { %v1392_v34 = vpop.f32.mrb[18].mxu1  ;;  %v1009_v35 = vpop.f32.mrb[19].mxu0  ;;  %1271 = vmatmul.mubr.f32.gmra.mrb[124].mxu0 %v824_v27  ;;  %v529_v27 = vld [vmem:[#allocation2 + $0x88] sm:$0xff] }
 0x22e   : > { %1739 = vst.msk [vmem:[#allocation2 + $0x40] sm:$0xff] %vm1730_vm1, %v1674_v30  ;;  %v1393_v36 = vadd.f32 %v1392_v34, %v1007_v31  ;;  %v1394_v37 = vpop.f32.mrb[19].mxu1  ;;  %1656 = vmatmul.mubr.f32.gmra.mrb[124].mxu1 %v826_v28  ;;  %1275 = vmatprep.mubr.f32.mxu0 %v829_v29  ;;  %v530_v34 = vld [vmem:[#allocation2 + $0x90] sm:$0xff] }
 0x22f   : > { %1660 = vmatprep.mubr.f32.mxu1 %v831_v32 }
 0x230   : > { %v1675_v40 = vadd.f32 %v1393_v36, %v521_v33  ;;  %v1012_v41 = vpop.f32.mrb[20].mxu0 }
 0x231   : > { %v1397_v43 = vpop.f32.mrb[20].mxu1  ;;  %v1014_v4 = vpop.f32.mrb[21].mxu0  ;;  %1276 = vmatmul.mubr.f32.gmra.mrb[126].mxu0 %v828_v38 }
 0x232   : > { %1740 = vst.msk [vmem:[#allocation2 + $0x48] sm:$0xff] %vm1730_vm1, %v1675_v40  ;;  %v1398_v44 = vadd.f32 %v1397_v43, %v1012_v41  ;;  %v1399_v45 = vpop.f32.mrb[21].mxu1  ;;  %1661 = vmatmul.mubr.f32.gmra.mrb[126].mxu1 %v830_v39  ;;  %v531_v41 = vld [vmem:[#allocation2 + $0x98] sm:$0xff] }
 0x234   : > { %v1676_v46 = vadd.f32 %v1398_v44, %v522_v42  ;;  %v1017_v47 = vpop.f32.mrb[22].mxu0 }
 0x235   : > { %v1402_v49 = vpop.f32.mrb[22].mxu1  ;;  %v1019_v50 = vpop.f32.mrb[23].mxu0 }
 0x236   : > { %1741 = vst.msk [vmem:[#allocation2 + $0x50] sm:$0xff] %vm1730_vm1, %v1676_v46  ;;  %v1403_v51 = vadd.f32 %v1402_v49, %v1017_v47  ;;  %v1404_v52 = vpop.f32.mrb[23].mxu1  ;;  %v532_v47 = vld [vmem:[#allocation2 + $0xa0] sm:$0xff] }
 0x238   : > { %v1677_v53 = vadd.f32 %v1403_v51, %v523_v48  ;;  %v1022_v54 = vpop.f32.mrb[24].mxu0 }
 0x239   : > { %v1407_v56 = vpop.f32.mrb[24].mxu1  ;;  %v1024_v57 = vpop.f32.mrb[25].mxu0 }
 0x23a   : > { %1742 = vst.msk [vmem:[#allocation2 + $0x58] sm:$0xff] %vm1730_vm1, %v1677_v53  ;;  %v1408_v58 = vadd.f32 %v1407_v56, %v1022_v54  ;;  %v1409_v59 = vpop.f32.mrb[25].mxu1  ;;  %v533_v54 = vld [vmem:[#allocation2 + $0xa8] sm:$0xff] }
 0x23c   : > { %v1678_v60 = vadd.f32 %v1408_v58, %v524_v55  ;;  %v1027_v61 = vpop.f32.mrb[26].mxu0 }
 0x23d   : > { %v1412_v63 = vpop.f32.mrb[26].mxu1  ;;  %v1029_v0 = vpop.f32.mrb[27].mxu0 }
 0x23e   : > { %1743 = vst.msk [vmem:[#allocation2 + $0x60] sm:$0xff] %vm1730_vm1, %v1678_v60  ;;  %v1413_v1 = vadd.f32 %v1412_v63, %v1027_v61  ;;  %v1414_v2 = vpop.f32.mrb[27].mxu1  ;;  %v534_v61 = vld [vmem:[#allocation2 + $0xb0] sm:$0xff] }
 0x240   : > { %v1679_v3 = vadd.f32 %v1413_v1, %v525_v62  ;;  %v1032_v5 = vpop.f32.mrb[28].mxu0 }
 0x241   : > { %v1417_v7 = vpop.f32.mrb[28].mxu1  ;;  %v1034_v8 = vpop.f32.mrb[29].mxu0 }
 0x242   : > { %1744 = vst.msk [vmem:[#allocation2 + $0x68] sm:$0xff] %vm1730_vm1, %v1679_v3  ;;  %v1418_v9 = vadd.f32 %v1417_v7, %v1032_v5  ;;  %v1419_v10 = vpop.f32.mrb[29].mxu1  ;;  %v535_v5 = vld [vmem:[#allocation2 + $0xb8] sm:$0xff] }
 0x244   : > { %v1680_v11 = vadd.f32 %v1418_v9, %v526_v6  ;;  %v1037_v12 = vpop.f32.mrb[30].mxu0 }
 0x245   : > { %v1422_v14 = vpop.f32.mrb[30].mxu1  ;;  %v1039_v15 = vpop.f32.mrb[31].mxu0 }
 0x246   : > { %1745 = vst.msk [vmem:[#allocation2 + $0x70] sm:$0xff] %vm1730_vm1, %v1680_v11  ;;  %v1423_v16 = vadd.f32 %v1422_v14, %v1037_v12  ;;  %v1424_v17 = vpop.f32.mrb[31].mxu1  ;;  %v536_v12 = vld [vmem:[#allocation2 + $0xc0] sm:$0xff] }
 0x248   : > { %v1681_v18 = vadd.f32 %v1423_v16, %v527_v13  ;;  %v1042_v19 = vpop.f32.mrb[32].mxu0 }
 0x249   : > { %v1427_v21 = vpop.f32.mrb[32].mxu1  ;;  %v1044_v22 = vpop.f32.mrb[33].mxu0 }
 0x24a   : > { %1746 = vst.msk [vmem:[#allocation2 + $0x78] sm:$0xff] %vm1730_vm1, %v1681_v18  ;;  %v1428_v23 = vadd.f32 %v1427_v21, %v1042_v19  ;;  %v1429_v24 = vpop.f32.mrb[33].mxu1  ;;  %v537_v19 = vld [vmem:[#allocation2 + $0xc8] sm:$0xff] }
 0x24c   : > { %v1682_v25 = vadd.f32 %v1428_v23, %v528_v20  ;;  %v1047_v26 = vpop.f32.mrb[34].mxu0 }
 0x24d   : > { %v1432_v28 = vpop.f32.mrb[34].mxu1  ;;  %v1049_v29 = vpop.f32.mrb[35].mxu0 }
 0x24e   : > { %1747 = vst.msk [vmem:[#allocation2 + $0x80] sm:$0xff] %vm1730_vm1, %v1682_v25  ;;  %v1433_v30 = vadd.f32 %v1432_v28, %v1047_v26  ;;  %v1434_v31 = vpop.f32.mrb[35].mxu1  ;;  %v538_v26 = vld [vmem:[#allocation2 + $0xd0] sm:$0xff] }
 0x250   : > { %v1683_v32 = vadd.f32 %v1433_v30, %v529_v27  ;;  %v1052_v33 = vpop.f32.mrb[36].mxu0 }
 0x251   : > { %v1437_v35 = vpop.f32.mrb[36].mxu1  ;;  %v1054_v36 = vpop.f32.mrb[37].mxu0 }
 0x252   : > { %1748 = vst.msk [vmem:[#allocation2 + $0x88] sm:$0xff] %vm1730_vm1, %v1683_v32  ;;  %v1438_v37 = vadd.f32 %v1437_v35, %v1052_v33  ;;  %v1439_v38 = vpop.f32.mrb[37].mxu1  ;;  %v539_v33 = vld [vmem:[#allocation2 + $0xd8] sm:$0xff] }
 0x254   : > { %v1684_v39 = vadd.f32 %v1438_v37, %v530_v34  ;;  %v1057_v40 = vpop.f32.mrb[38].mxu0 }
 0x255   : > { %v1442_v42 = vpop.f32.mrb[38].mxu1  ;;  %v1059_v43 = vpop.f32.mrb[39].mxu0 }
 0x256   : > { %1749 = vst.msk [vmem:[#allocation2 + $0x90] sm:$0xff] %vm1730_vm1, %v1684_v39  ;;  %v1443_v4 = vadd.f32 %v1442_v42, %v1057_v40  ;;  %v1444_v44 = vpop.f32.mrb[39].mxu1  ;;  %v540_v40 = vld [vmem:[#allocation2 + $0xe0] sm:$0xff] }
 0x258   : > { %v1685_v45 = vadd.f32 %v1443_v4, %v531_v41  ;;  %v1062_v46 = vpop.f32.mrb[40].mxu0 }
 0x259   : > { %v1447_v48 = vpop.f32.mrb[40].mxu1  ;;  %v1064_v49 = vpop.f32.mrb[41].mxu0 }
 0x25a   : > { %1750 = vst.msk [vmem:[#allocation2 + $0x98] sm:$0xff] %vm1730_vm1, %v1685_v45  ;;  %v1448_v50 = vadd.f32 %v1447_v48, %v1062_v46  ;;  %v1449_v51 = vpop.f32.mrb[41].mxu1  ;;  %v541_v46 = vld [vmem:[#allocation2 + $0xe8] sm:$0xff] }
 0x25c   : > { %v1686_v52 = vadd.f32 %v1448_v50, %v532_v47  ;;  %v1067_v53 = vpop.f32.mrb[42].mxu0 }
 0x25d   : > { %v1452_v55 = vpop.f32.mrb[42].mxu1  ;;  %v1069_v56 = vpop.f32.mrb[43].mxu0 }
 0x25e   : > { %1751 = vst.msk [vmem:[#allocation2 + $0xa0] sm:$0xff] %vm1730_vm1, %v1686_v52  ;;  %v1453_v57 = vadd.f32 %v1452_v55, %v1067_v53  ;;  %v1454_v58 = vpop.f32.mrb[43].mxu1  ;;  %v542_v53 = vld [vmem:[#allocation2 + $0xf0] sm:$0xff] }
 0x260   : > { %v1687_v59 = vadd.f32 %v1453_v57, %v533_v54  ;;  %v1072_v60 = vpop.f32.mrb[44].mxu0 }
 0x261   : > { %v1457_v62 = vpop.f32.mrb[44].mxu1  ;;  %v1074_v63 = vpop.f32.mrb[45].mxu0 }
 0x262   : > { %1752 = vst.msk [vmem:[#allocation2 + $0xa8] sm:$0xff] %vm1730_vm1, %v1687_v59  ;;  %v1458_v0 = vadd.f32 %v1457_v62, %v1072_v60  ;;  %v1459_v1 = vpop.f32.mrb[45].mxu1  ;;  %v543_v60 = vld [vmem:[#allocation2 + $0xf8] sm:$0xff] }
 0x264   : > { %v1688_v2 = vadd.f32 %v1458_v0, %v534_v61  ;;  %v1077_v3 = vpop.f32.mrb[46].mxu0 }
 0x265   : > { %v1462_v6 = vpop.f32.mrb[46].mxu1  ;;  %v1079_v7 = vpop.f32.mrb[47].mxu0 }
 0x266   : > { %1753 = vst.msk [vmem:[#allocation2 + $0xb0] sm:$0xff] %vm1730_vm1, %v1688_v2  ;;  %v1463_v8 = vadd.f32 %v1462_v6, %v1077_v3  ;;  %v1464_v9 = vpop.f32.mrb[47].mxu1  ;;  %v544_v3 = vld [vmem:[#allocation2 + $0x100] sm:$0xff] }
 0x268   : > { %v1689_v10 = vadd.f32 %v1463_v8, %v535_v5  ;;  %v1082_v11 = vpop.f32.mrb[48].mxu0 }
 0x269   : > { %v1467_v13 = vpop.f32.mrb[48].mxu1  ;;  %v1084_v14 = vpop.f32.mrb[49].mxu0 }
 0x26a   : > { %1754 = vst.msk [vmem:[#allocation2 + $0xb8] sm:$0xff] %vm1730_vm1, %v1689_v10  ;;  %v1468_v15 = vadd.f32 %v1467_v13, %v1082_v11  ;;  %v1469_v16 = vpop.f32.mrb[49].mxu1  ;;  %v545_v11 = vld [vmem:[#allocation2 + $0x108] sm:$0xff] }
 0x26c   : > { %v1690_v17 = vadd.f32 %v1468_v15, %v536_v12  ;;  %v1087_v18 = vpop.f32.mrb[50].mxu0 }
 0x26d   : > { %v1472_v20 = vpop.f32.mrb[50].mxu1  ;;  %v1089_v21 = vpop.f32.mrb[51].mxu0 }
 0x26e   : > { %1755 = vst.msk [vmem:[#allocation2 + $0xc0] sm:$0xff] %vm1730_vm1, %v1690_v17  ;;  %v1473_v22 = vadd.f32 %v1472_v20, %v1087_v18  ;;  %v1474_v23 = vpop.f32.mrb[51].mxu1  ;;  %v546_v18 = vld [vmem:[#allocation2 + $0x110] sm:$0xff] }
 0x270   : > { %v1691_v24 = vadd.f32 %v1473_v22, %v537_v19  ;;  %v1092_v25 = vpop.f32.mrb[52].mxu0 }
 0x271   : > { %v1477_v27 = vpop.f32.mrb[52].mxu1  ;;  %v1094_v28 = vpop.f32.mrb[53].mxu0 }
 0x272   : > { %1756 = vst.msk [vmem:[#allocation2 + $0xc8] sm:$0xff] %vm1730_vm1, %v1691_v24  ;;  %v1478_v29 = vadd.f32 %v1477_v27, %v1092_v25  ;;  %v1479_v30 = vpop.f32.mrb[53].mxu1  ;;  %v547_v25 = vld [vmem:[#allocation2 + $0x118] sm:$0xff] }
 0x274   : > { %v1692_v31 = vadd.f32 %v1478_v29, %v538_v26  ;;  %v1097_v32 = vpop.f32.mrb[54].mxu0 }
 0x275   : > { %v1482_v34 = vpop.f32.mrb[54].mxu1  ;;  %v1099_v35 = vpop.f32.mrb[55].mxu0 }
 0x276   : > { %1757 = vst.msk [vmem:[#allocation2 + $0xd0] sm:$0xff] %vm1730_vm1, %v1692_v31  ;;  %v1483_v36 = vadd.f32 %v1482_v34, %v1097_v32  ;;  %v1484_v37 = vpop.f32.mrb[55].mxu1  ;;  %v548_v32 = vld [vmem:[#allocation2 + $0x120] sm:$0xff] }
 0x278   : > { %v1693_v38 = vadd.f32 %v1483_v36, %v539_v33  ;;  %v1102_v39 = vpop.f32.mrb[56].mxu0 }
 0x279   : > { %v1487_v41 = vpop.f32.mrb[56].mxu1  ;;  %v1104_v42 = vpop.f32.mrb[57].mxu0 }
 0x27a   : > { %1758 = vst.msk [vmem:[#allocation2 + $0xd8] sm:$0xff] %vm1730_vm1, %v1693_v38  ;;  %v1488_v43 = vadd.f32 %v1487_v41, %v1102_v39  ;;  %v1489_v4 = vpop.f32.mrb[57].mxu1  ;;  %v549_v39 = vld [vmem:[#allocation2 + $0x128] sm:$0xff] }
 0x27c   : > { %v1694_v44 = vadd.f32 %v1488_v43, %v540_v40  ;;  %v1107_v45 = vpop.f32.mrb[58].mxu0 }
 0x27d   : > { %v1492_v47 = vpop.f32.mrb[58].mxu1  ;;  %v1109_v48 = vpop.f32.mrb[59].mxu0 }
 0x27e   : > { %1759 = vst.msk [vmem:[#allocation2 + $0xe0] sm:$0xff] %vm1730_vm1, %v1694_v44  ;;  %v1493_v49 = vadd.f32 %v1492_v47, %v1107_v45  ;;  %v1494_v50 = vpop.f32.mrb[59].mxu1  ;;  %v550_v45 = vld [vmem:[#allocation2 + $0x130] sm:$0xff] }
 0x280   : > { %v1695_v51 = vadd.f32 %v1493_v49, %v541_v46  ;;  %v1112_v52 = vpop.f32.mrb[60].mxu0 }
 0x281   : > { %v1497_v54 = vpop.f32.mrb[60].mxu1  ;;  %v1114_v55 = vpop.f32.mrb[61].mxu0 }
 0x282   : > { %1760 = vst.msk [vmem:[#allocation2 + $0xe8] sm:$0xff] %vm1730_vm1, %v1695_v51  ;;  %v1498_v56 = vadd.f32 %v1497_v54, %v1112_v52  ;;  %v1499_v57 = vpop.f32.mrb[61].mxu1  ;;  %v551_v52 = vld [vmem:[#allocation2 + $0x138] sm:$0xff] }
 0x284   : > { %v1696_v58 = vadd.f32 %v1498_v56, %v542_v53  ;;  %v1117_v59 = vpop.f32.mrb[62].mxu0 }
 0x285   : > { %v1502_v61 = vpop.f32.mrb[62].mxu1  ;;  %v1119_v62 = vpop.f32.mrb[63].mxu0 }
 0x286   : > { %1761 = vst.msk [vmem:[#allocation2 + $0xf0] sm:$0xff] %vm1730_vm1, %v1696_v58  ;;  %v1503_v63 = vadd.f32 %v1502_v61, %v1117_v59  ;;  %v1504_v0 = vpop.f32.mrb[63].mxu1  ;;  %v552_v59 = vld [vmem:[#allocation2 + $0x140] sm:$0xff] }
 0x288   : > { %v1697_v1 = vadd.f32 %v1503_v63, %v543_v60  ;;  %v1122_v2 = vpop.f32.mrb[64].mxu0 }
 0x289   : > { %v1507_v5 = vpop.f32.mrb[64].mxu1  ;;  %v1124_v6 = vpop.f32.mrb[65].mxu0 }
 0x28a   : > { %1762 = vst.msk [vmem:[#allocation2 + $0xf8] sm:$0xff] %vm1730_vm1, %v1697_v1  ;;  %v1508_v7 = vadd.f32 %v1507_v5, %v1122_v2  ;;  %v1509_v8 = vpop.f32.mrb[65].mxu1  ;;  %v553_v2 = vld [vmem:[#allocation2 + $0x148] sm:$0xff] }
 0x28c   : > { %v1698_v9 = vadd.f32 %v1508_v7, %v544_v3  ;;  %v1127_v10 = vpop.f32.mrb[66].mxu0 }
 0x28d   : > { %v1512_v12 = vpop.f32.mrb[66].mxu1  ;;  %v1129_v13 = vpop.f32.mrb[67].mxu0 }
 0x28e   : > { %1763 = vst.msk [vmem:[#allocation2 + $0x100] sm:$0xff] %vm1730_vm1, %v1698_v9  ;;  %v1513_v14 = vadd.f32 %v1512_v12, %v1127_v10  ;;  %v1514_v15 = vpop.f32.mrb[67].mxu1  ;;  %v554_v10 = vld [vmem:[#allocation2 + $0x150] sm:$0xff] }
 0x290   : > { %v1699_v16 = vadd.f32 %v1513_v14, %v545_v11  ;;  %v1132_v17 = vpop.f32.mrb[68].mxu0 }
 0x291   : > { %v1517_v19 = vpop.f32.mrb[68].mxu1  ;;  %v1134_v20 = vpop.f32.mrb[69].mxu0 }
 0x292   : > { %1764 = vst.msk [vmem:[#allocation2 + $0x108] sm:$0xff] %vm1730_vm1, %v1699_v16  ;;  %v1518_v21 = vadd.f32 %v1517_v19, %v1132_v17  ;;  %v1519_v22 = vpop.f32.mrb[69].mxu1  ;;  %v555_v17 = vld [vmem:[#allocation2 + $0x158] sm:$0xff] }
 0x294   : > { %v1700_v23 = vadd.f32 %v1518_v21, %v546_v18  ;;  %v1137_v24 = vpop.f32.mrb[70].mxu0 }
 0x295   : > { %v1522_v26 = vpop.f32.mrb[70].mxu1  ;;  %v1139_v27 = vpop.f32.mrb[71].mxu0 }
 0x296   : > { %1765 = vst.msk [vmem:[#allocation2 + $0x110] sm:$0xff] %vm1730_vm1, %v1700_v23  ;;  %v1523_v28 = vadd.f32 %v1522_v26, %v1137_v24  ;;  %v1524_v29 = vpop.f32.mrb[71].mxu1  ;;  %v556_v24 = vld [vmem:[#allocation2 + $0x160] sm:$0xff] }
 0x298   : > { %v1701_v30 = vadd.f32 %v1523_v28, %v547_v25  ;;  %v1142_v31 = vpop.f32.mrb[72].mxu0 }
 0x299   : > { %v1527_v33 = vpop.f32.mrb[72].mxu1  ;;  %v1144_v34 = vpop.f32.mrb[73].mxu0 }
 0x29a   : > { %1766 = vst.msk [vmem:[#allocation2 + $0x118] sm:$0xff] %vm1730_vm1, %v1701_v30  ;;  %v1528_v35 = vadd.f32 %v1527_v33, %v1142_v31  ;;  %v1529_v36 = vpop.f32.mrb[73].mxu1  ;;  %v557_v31 = vld [vmem:[#allocation2 + $0x168] sm:$0xff] }
 0x29c   : > { %v1702_v37 = vadd.f32 %v1528_v35, %v548_v32  ;;  %v1147_v38 = vpop.f32.mrb[74].mxu0 }
 0x29d   : > { %v1532_v40 = vpop.f32.mrb[74].mxu1  ;;  %v1149_v41 = vpop.f32.mrb[75].mxu0 }
 0x29e   : > { %1767 = vst.msk [vmem:[#allocation2 + $0x120] sm:$0xff] %vm1730_vm1, %v1702_v37  ;;  %v1533_v42 = vadd.f32 %v1532_v40, %v1147_v38  ;;  %v1534_v43 = vpop.f32.mrb[75].mxu1  ;;  %v558_v38 = vld [vmem:[#allocation2 + $0x170] sm:$0xff] }
 0x2a0   : > { %v1703_v4 = vadd.f32 %v1533_v42, %v549_v39  ;;  %v1152_v44 = vpop.f32.mrb[76].mxu0 }
 0x2a1   : > { %v1537_v46 = vpop.f32.mrb[76].mxu1  ;;  %v1154_v47 = vpop.f32.mrb[77].mxu0 }
 0x2a2   : > { %1768 = vst.msk [vmem:[#allocation2 + $0x128] sm:$0xff] %vm1730_vm1, %v1703_v4  ;;  %v1538_v48 = vadd.f32 %v1537_v46, %v1152_v44  ;;  %v1539_v49 = vpop.f32.mrb[77].mxu1  ;;  %v559_v44 = vld [vmem:[#allocation2 + $0x178] sm:$0xff] }
 0x2a4   : > { %v1704_v50 = vadd.f32 %v1538_v48, %v550_v45  ;;  %v1157_v51 = vpop.f32.mrb[78].mxu0 }
 0x2a5   : > { %v1542_v53 = vpop.f32.mrb[78].mxu1  ;;  %v1159_v54 = vpop.f32.mrb[79].mxu0 }
 0x2a6   : > { %1769 = vst.msk [vmem:[#allocation2 + $0x130] sm:$0xff] %vm1730_vm1, %v1704_v50  ;;  %v1543_v55 = vadd.f32 %v1542_v53, %v1157_v51  ;;  %v1544_v56 = vpop.f32.mrb[79].mxu1  ;;  %v560_v51 = vld [vmem:[#allocation2 + $0x180] sm:$0xff] }
 0x2a8   : > { %v1705_v57 = vadd.f32 %v1543_v55, %v551_v52  ;;  %v1162_v58 = vpop.f32.mrb[80].mxu0 }
 0x2a9   : > { %v1547_v60 = vpop.f32.mrb[80].mxu1  ;;  %v1164_v61 = vpop.f32.mrb[81].mxu0 }
 0x2aa   : > { %1770 = vst.msk [vmem:[#allocation2 + $0x138] sm:$0xff] %vm1730_vm1, %v1705_v57  ;;  %v1548_v62 = vadd.f32 %v1547_v60, %v1162_v58  ;;  %v1549_v63 = vpop.f32.mrb[81].mxu1  ;;  %v561_v58 = vld [vmem:[#allocation2 + $0x188] sm:$0xff] }
 0x2ac   : > { %v1706_v0 = vadd.f32 %v1548_v62, %v552_v59  ;;  %v1167_v1 = vpop.f32.mrb[82].mxu0 }
 0x2ad   : > { %v1552_v3 = vpop.f32.mrb[82].mxu1  ;;  %v1169_v5 = vpop.f32.mrb[83].mxu0 }
 0x2ae   : > { %1771 = vst.msk [vmem:[#allocation2 + $0x140] sm:$0xff] %vm1730_vm1, %v1706_v0  ;;  %v1553_v6 = vadd.f32 %v1552_v3, %v1167_v1  ;;  %v1554_v7 = vpop.f32.mrb[83].mxu1  ;;  %v562_v1 = vld [vmem:[#allocation2 + $0x190] sm:$0xff] }
 0x2b0   : > { %v1707_v8 = vadd.f32 %v1553_v6, %v553_v2  ;;  %v1172_v9 = vpop.f32.mrb[84].mxu0 }
 0x2b1   : > { %v1557_v11 = vpop.f32.mrb[84].mxu1  ;;  %v1174_v12 = vpop.f32.mrb[85].mxu0 }
 0x2b2   : > { %1772 = vst.msk [vmem:[#allocation2 + $0x148] sm:$0xff] %vm1730_vm1, %v1707_v8  ;;  %v1558_v13 = vadd.f32 %v1557_v11, %v1172_v9  ;;  %v1559_v14 = vpop.f32.mrb[85].mxu1  ;;  %v563_v9 = vld [vmem:[#allocation2 + $0x198] sm:$0xff] }
 0x2b4   : > { %v1708_v15 = vadd.f32 %v1558_v13, %v554_v10  ;;  %v1177_v16 = vpop.f32.mrb[86].mxu0 }
 0x2b5   : > { %v1562_v18 = vpop.f32.mrb[86].mxu1  ;;  %v1179_v19 = vpop.f32.mrb[87].mxu0 }
 0x2b6   : > { %1773 = vst.msk [vmem:[#allocation2 + $0x150] sm:$0xff] %vm1730_vm1, %v1708_v15  ;;  %v1563_v20 = vadd.f32 %v1562_v18, %v1177_v16  ;;  %v1564_v21 = vpop.f32.mrb[87].mxu1  ;;  %v564_v16 = vld [vmem:[#allocation2 + $0x1a0] sm:$0xff] }
 0x2b8   : > { %v1709_v22 = vadd.f32 %v1563_v20, %v555_v17  ;;  %v1182_v23 = vpop.f32.mrb[88].mxu0 }
 0x2b9   : > { %v1567_v25 = vpop.f32.mrb[88].mxu1  ;;  %v1184_v26 = vpop.f32.mrb[89].mxu0 }
 0x2ba   : > { %1774 = vst.msk [vmem:[#allocation2 + $0x158] sm:$0xff] %vm1730_vm1, %v1709_v22  ;;  %v1568_v27 = vadd.f32 %v1567_v25, %v1182_v23  ;;  %v1569_v28 = vpop.f32.mrb[89].mxu1  ;;  %v565_v23 = vld [vmem:[#allocation2 + $0x1a8] sm:$0xff] }
 0x2bc   : > { %v1710_v29 = vadd.f32 %v1568_v27, %v556_v24  ;;  %v1187_v30 = vpop.f32.mrb[90].mxu0 }
 0x2bd   : > { %v1572_v32 = vpop.f32.mrb[90].mxu1  ;;  %v1189_v33 = vpop.f32.mrb[91].mxu0 }
 0x2be   : > { %1775 = vst.msk [vmem:[#allocation2 + $0x160] sm:$0xff] %vm1730_vm1, %v1710_v29  ;;  %v1573_v34 = vadd.f32 %v1572_v32, %v1187_v30  ;;  %v1574_v35 = vpop.f32.mrb[91].mxu1  ;;  %v566_v30 = vld [vmem:[#allocation2 + $0x1b0] sm:$0xff] }
 0x2c0   : > { %v1711_v36 = vadd.f32 %v1573_v34, %v557_v31  ;;  %v1192_v37 = vpop.f32.mrb[92].mxu0 }
 0x2c1   : > { %v1577_v39 = vpop.f32.mrb[92].mxu1  ;;  %v1194_v40 = vpop.f32.mrb[93].mxu0 }
 0x2c2   : > { %1776 = vst.msk [vmem:[#allocation2 + $0x168] sm:$0xff] %vm1730_vm1, %v1711_v36  ;;  %v1578_v41 = vadd.f32 %v1577_v39, %v1192_v37  ;;  %v1579_v42 = vpop.f32.mrb[93].mxu1  ;;  %v567_v37 = vld [vmem:[#allocation2 + $0x1b8] sm:$0xff] }
 0x2c4   : > { %v1712_v43 = vadd.f32 %v1578_v41, %v558_v38  ;;  %v1197_v4 = vpop.f32.mrb[94].mxu0 }
 0x2c5   : > { %v1582_v45 = vpop.f32.mrb[94].mxu1  ;;  %v1199_v46 = vpop.f32.mrb[95].mxu0 }
 0x2c6   : > { %1777 = vst.msk [vmem:[#allocation2 + $0x170] sm:$0xff] %vm1730_vm1, %v1712_v43  ;;  %v1583_v47 = vadd.f32 %v1582_v45, %v1197_v4  ;;  %v1584_v48 = vpop.f32.mrb[95].mxu1  ;;  %v568_v4 = vld [vmem:[#allocation2 + $0x1c0] sm:$0xff] }
 0x2c8   : > { %v1713_v49 = vadd.f32 %v1583_v47, %v559_v44  ;;  %v1202_v50 = vpop.f32.mrb[96].mxu0 }
 0x2c9   : > { %v1587_v52 = vpop.f32.mrb[96].mxu1  ;;  %v1204_v53 = vpop.f32.mrb[97].mxu0 }
 0x2ca   : > { %1778 = vst.msk [vmem:[#allocation2 + $0x178] sm:$0xff] %vm1730_vm1, %v1713_v49  ;;  %v1588_v54 = vadd.f32 %v1587_v52, %v1202_v50  ;;  %v1589_v55 = vpop.f32.mrb[97].mxu1  ;;  %v569_v50 = vld [vmem:[#allocation2 + $0x1c8] sm:$0xff] }
 0x2cc   : > { %v1714_v56 = vadd.f32 %v1588_v54, %v560_v51  ;;  %v1207_v57 = vpop.f32.mrb[98].mxu0 }
 0x2cd   : > { %v1592_v59 = vpop.f32.mrb[98].mxu1  ;;  %v1209_v60 = vpop.f32.mrb[99].mxu0 }
 0x2ce   : > { %1779 = vst.msk [vmem:[#allocation2 + $0x180] sm:$0xff] %vm1730_vm1, %v1714_v56  ;;  %v1593_v61 = vadd.f32 %v1592_v59, %v1207_v57  ;;  %v1594_v62 = vpop.f32.mrb[99].mxu1  ;;  %v570_v57 = vld [vmem:[#allocation2 + $0x1d0] sm:$0xff] }
 0x2d0   : > { %v1715_v63 = vadd.f32 %v1593_v61, %v561_v58  ;;  %v1212_v0 = vpop.f32.mrb[100].mxu0 }
 0x2d1   : > { %v1597_v2 = vpop.f32.mrb[100].mxu1  ;;  %v1214_v3 = vpop.f32.mrb[101].mxu0 }
 0x2d2   : > { %1780 = vst.msk [vmem:[#allocation2 + $0x188] sm:$0xff] %vm1730_vm1, %v1715_v63  ;;  %v1598_v5 = vadd.f32 %v1597_v2, %v1212_v0  ;;  %v1599_v6 = vpop.f32.mrb[101].mxu1  ;;  %v571_v0 = vld [vmem:[#allocation2 + $0x1d8] sm:$0xff] }
 0x2d4   : > { %v1716_v7 = vadd.f32 %v1598_v5, %v562_v1  ;;  %v1217_v8 = vpop.f32.mrb[102].mxu0 }
 0x2d5   : > { %v1602_v10 = vpop.f32.mrb[102].mxu1  ;;  %v1219_v11 = vpop.f32.mrb[103].mxu0 }
 0x2d6   : > { %1781 = vst.msk [vmem:[#allocation2 + $0x190] sm:$0xff] %vm1730_vm1, %v1716_v7  ;;  %v1603_v12 = vadd.f32 %v1602_v10, %v1217_v8  ;;  %v1604_v13 = vpop.f32.mrb[103].mxu1  ;;  %v572_v8 = vld [vmem:[#allocation2 + $0x1e0] sm:$0xff] }
 0x2d8   : > { %v1717_v14 = vadd.f32 %v1603_v12, %v563_v9  ;;  %v1222_v15 = vpop.f32.mrb[104].mxu0 }
 0x2d9   : > { %v1607_v17 = vpop.f32.mrb[104].mxu1  ;;  %v1224_v18 = vpop.f32.mrb[105].mxu0 }
 0x2da   : > { %1782 = vst.msk [vmem:[#allocation2 + $0x198] sm:$0xff] %vm1730_vm1, %v1717_v14  ;;  %v1608_v19 = vadd.f32 %v1607_v17, %v1222_v15  ;;  %v1609_v20 = vpop.f32.mrb[105].mxu1  ;;  %v573_v15 = vld [vmem:[#allocation2 + $0x1e8] sm:$0xff] }
 0x2dc   : > { %v1718_v21 = vadd.f32 %v1608_v19, %v564_v16  ;;  %v1227_v22 = vpop.f32.mrb[106].mxu0 }
 0x2dd   : > { %v1612_v24 = vpop.f32.mrb[106].mxu1  ;;  %v1229_v25 = vpop.f32.mrb[107].mxu0 }
 0x2de   : > { %1783 = vst.msk [vmem:[#allocation2 + $0x1a0] sm:$0xff] %vm1730_vm1, %v1718_v21  ;;  %v1613_v26 = vadd.f32 %v1612_v24, %v1227_v22  ;;  %v1614_v27 = vpop.f32.mrb[107].mxu1  ;;  %v574_v22 = vld [vmem:[#allocation2 + $0x1f0] sm:$0xff] }
 0x2e0   : > { %v1719_v28 = vadd.f32 %v1613_v26, %v565_v23  ;;  %v1232_v29 = vpop.f32.mrb[108].mxu0 }
 0x2e1   : > { %v1617_v31 = vpop.f32.mrb[108].mxu1  ;;  %v1234_v32 = vpop.f32.mrb[109].mxu0 }
 0x2e2   : > { %1784 = vst.msk [vmem:[#allocation2 + $0x1a8] sm:$0xff] %vm1730_vm1, %v1719_v28  ;;  %v1618_v33 = vadd.f32 %v1617_v31, %v1232_v29  ;;  %v1619_v34 = vpop.f32.mrb[109].mxu1  ;;  %v575_v29 = vld [vmem:[#allocation2 + $0x1f8] sm:$0xff] }
 0x2e4   : > { %v1720_v35 = vadd.f32 %v1618_v33, %v566_v30  ;;  %v1237_v36 = vpop.f32.mrb[110].mxu0 }
 0x2e5   : > { %v1622_v38 = vpop.f32.mrb[110].mxu1  ;;  %v1239_v39 = vpop.f32.mrb[111].mxu0 }
 0x2e6   : > { %1785 = vst.msk [vmem:[#allocation2 + $0x1b0] sm:$0xff] %vm1730_vm1, %v1720_v35  ;;  %v1623_v40 = vadd.f32 %v1622_v38, %v1237_v36  ;;  %v1624_v41 = vpop.f32.mrb[111].mxu1 }
 0x2e8   : > { %v1721_v42 = vadd.f32 %v1623_v40, %v567_v37  ;;  %v1242_v43 = vpop.f32.mrb[112].mxu0 }
 0x2e9   : > { %v1627_v44 = vpop.f32.mrb[112].mxu1  ;;  %v1244_v45 = vpop.f32.mrb[113].mxu0 }
 0x2ea   : > { %1786 = vst.msk [vmem:[#allocation2 + $0x1b8] sm:$0xff] %vm1730_vm1, %v1721_v42  ;;  %v1628_v46 = vadd.f32 %v1627_v44, %v1242_v43  ;;  %v1629_v47 = vpop.f32.mrb[113].mxu1 }
 0x2ec   : > { %v1722_v48 = vadd.f32 %v1628_v46, %v568_v4  ;;  %v1247_v49 = vpop.f32.mrb[114].mxu0 }
 0x2ed   : > { %v1632_v51 = vpop.f32.mrb[114].mxu1  ;;  %v1249_v52 = vpop.f32.mrb[115].mxu0 }
 0x2ee   : > { %1787 = vst.msk [vmem:[#allocation2 + $0x1c0] sm:$0xff] %vm1730_vm1, %v1722_v48  ;;  %v1633_v53 = vadd.f32 %v1632_v51, %v1247_v49  ;;  %v1634_v54 = vpop.f32.mrb[115].mxu1 }
 0x2f0   : > { %v1723_v55 = vadd.f32 %v1633_v53, %v569_v50  ;;  %v1252_v56 = vpop.f32.mrb[116].mxu0 }
 0x2f1   : > { %v1637_v58 = vpop.f32.mrb[116].mxu1  ;;  %v1254_v59 = vpop.f32.mrb[117].mxu0 }
 0x2f2   : > { %1788 = vst.msk [vmem:[#allocation2 + $0x1c8] sm:$0xff] %vm1730_vm1, %v1723_v55  ;;  %v1638_v60 = vadd.f32 %v1637_v58, %v1252_v56  ;;  %v1639_v61 = vpop.f32.mrb[117].mxu1 }
 0x2f4   : > { %v1724_v62 = vadd.f32 %v1638_v60, %v570_v57  ;;  %v1257_v63 = vpop.f32.mrb[118].mxu0 }
 0x2f5   : > { %v1642_v1 = vpop.f32.mrb[118].mxu1  ;;  %v1259_v2 = vpop.f32.mrb[119].mxu0 }
 0x2f6   : > { %1789 = vst.msk [vmem:[#allocation2 + $0x1d0] sm:$0xff] %vm1730_vm1, %v1724_v62  ;;  %v1643_v3 = vadd.f32 %v1642_v1, %v1257_v63  ;;  %v1644_v5 = vpop.f32.mrb[119].mxu1 }
 0x2f8   : > { %v1725_v6 = vadd.f32 %v1643_v3, %v571_v0  ;;  %v1262_v7 = vpop.f32.mrb[120].mxu0 }
 0x2f9   : > { %v1647_v9 = vpop.f32.mrb[120].mxu1  ;;  %v1264_v10 = vpop.f32.mrb[121].mxu0 }
 0x2fa   : > { %1790 = vst.msk [vmem:[#allocation2 + $0x1d8] sm:$0xff] %vm1730_vm1, %v1725_v6  ;;  %v1648_v11 = vadd.f32 %v1647_v9, %v1262_v7  ;;  %v1649_v12 = vpop.f32.mrb[121].mxu1 }
 0x2fc   : > { %v1726_v13 = vadd.f32 %v1648_v11, %v572_v8  ;;  %v1267_v14 = vpop.f32.mrb[122].mxu0 }
 0x2fd   : > { %v1652_v16 = vpop.f32.mrb[122].mxu1  ;;  %v1269_v17 = vpop.f32.mrb[123].mxu0 }
 0x2fe   : > { %1791 = vst.msk [vmem:[#allocation2 + $0x1e0] sm:$0xff] %vm1730_vm1, %v1726_v13  ;;  %v1653_v18 = vadd.f32 %v1652_v16, %v1267_v14  ;;  %v1654_v19 = vpop.f32.mrb[123].mxu1 }
 0x300   : > { %v1727_v20 = vadd.f32 %v1653_v18, %v573_v15  ;;  %v1272_v21 = vpop.f32.mrb[124].mxu0 }
 0x301   : > { %v1657_v23 = vpop.f32.mrb[124].mxu1  ;;  %v1274_v24 = vpop.f32.mrb[125].mxu0 }
 0x302   : > { %1792 = vst.msk [vmem:[#allocation2 + $0x1e8] sm:$0xff] %vm1730_vm1, %v1727_v20  ;;  %v1658_v25 = vadd.f32 %v1657_v23, %v1272_v21  ;;  %v1659_v26 = vpop.f32.mrb[125].mxu1 }
 0x304   : > { %v1728_v27 = vadd.f32 %v1658_v25, %v574_v22  ;;  %v1277_v28 = vpop.f32.mrb[126].mxu0  ;;  %1798 = sbr.rel (%p3788_p13) target bundleno = 1449 (0x5a9), region = 80 }
 0x305   : > { %v1662_v30 = vpop.f32.mrb[126].mxu1  ;;  %v1279_v31 = vpop.f32.mrb[127].mxu0 }
 0x306   : > { %1793 = vst.msk [vmem:[#allocation2 + $0x1f0] sm:$0xff] %vm1730_vm1, %v1728_v27  ;;  %v1663_v32 = vadd.f32 %v1662_v30, %v1277_v28  ;;  %v1664_v33 = vpop.f32.mrb[127].mxu1 }
 0x308   : > { %v1729_v34 = vadd.f32 %v1663_v32, %v575_v29 }
 0x30a   : > { %1794 = vst.msk [vmem:[#allocation2 + $0x1f8] sm:$0xff] %vm1730_vm1, %v1729_v34 }
 0x30b   : > { %v1931_v35 = vld [vmem:[#allocation9] sm:$0xff]  ;;  %v1932_v36 = vld [vmem:[#allocation9 + $0x8] sm:$0xff]  ;;  %v1933_v37 = vld [vmem:[#allocation9 + $0x10] sm:$0xff]  ;;  %s3562_s6 = sld [smem:[#allocation3]] }
 0x30c   : > { %v4433_v38 = vpack.c.bf16 %v1932_v36, %v1931_v35  ;;  %v1934_v39 = vld [vmem:[#allocation9 + $0x18] sm:$0xff]  ;;  %v1867_v40 = vld [vmem:[#allocation2] sm:$0xff]  ;;  %v1864_v43 = vld [vmem:[#allocation7 + $0x8] sm:$0xff] }
 0x30d   : > { %v4437_v41 = vpack.c.bf16 %v1934_v39, %v1933_v37  ;;  %4137 = vmatprep.mubr.msk.f32.mxu0 %vm1730_vm1, %v1867_v40  ;;  %v1863_v42 = vld [vmem:[#allocation7] sm:$0xff]  ;;  %v1868_v44 = vld [vmem:[#allocation2 + $0x8] sm:$0xff]  ;;  %v1865_v45 = vld [vmem:[#allocation7 + $0x10] sm:$0xff] }
 0x30e   : > { %4434 = vmatprep.subr.bf16.mxu0 %v4433_v38  ;;  %4513 = vmatprep.subr.bf16.mxu1 %v4433_v38  ;;  %v4441_v4 = vpack.c.bf16 %v1864_v43, %v1863_v42  ;;  %v1866_v46 = vld [vmem:[#allocation7 + $0x18] sm:$0xff]  ;;  %v1869_v47 = vld [vmem:[#allocation2 + $0x10] sm:$0xff]  ;;  %v1871_v50 = vld [vmem:[#allocation2 + $0x20] sm:$0xff] }
 0x30f   : > { %4436 = vmatpush3.bf16.msra.mxu0 %v4433_v38  ;;  %4515 = vmatpush3.bf16.msra.mxu1 %v4433_v38  ;;  %v4445_v48 = vpack.c.bf16 %v1866_v46, %v1865_v45  ;;  %v1870_v49 = vld [vmem:[#allocation2 + $0x18] sm:$0xff]  ;;  %v1885_v51 = vld [vmem:[#allocation2 + $0x90] sm:$0xff]  ;;  %v1872_v53 = vld [vmem:[#allocation2 + $0x28] sm:$0xff] }
 0x310   : > { %4438 = vmatprep.subr.bf16.mxu0 %v4437_v41  ;;  %4514 = vmatprep.subr.bf16.mxu1 %v4437_v41  ;;  %v1886_v52 = vld [vmem:[#allocation2 + $0x98] sm:$0xff]  ;;  %v1887_v54 = vld [vmem:[#allocation2 + $0xa0] sm:$0xff]  ;;  %v1873_v55 = vld [vmem:[#allocation2 + $0x30] sm:$0xff] }
 0x311   : > { %4164 = vmatprep.mubr.msk.f32.mxu1 %vm1730_vm1, %v1885_v51  ;;  %v1888_v56 = vld [vmem:[#allocation2 + $0xa8] sm:$0xff]  ;;  %v1889_v57 = vld [vmem:[#allocation2 + $0xb0] sm:$0xff]  ;;  %v1874_v58 = vld [vmem:[#allocation2 + $0x38] sm:$0xff] }
 0x312   : > { %v1875_v59 = vld [vmem:[#allocation2 + $0x40] sm:$0xff]  ;;  %v1890_v60 = vld [vmem:[#allocation2 + $0xb8] sm:$0xff]  ;;  %v1876_v62 = vld [vmem:[#allocation2 + $0x48] sm:$0xff] }
 0x313   : > { %4440 = vmatpush3.bf16.msra.mxu0 %v4437_v41  ;;  %4516 = vmatpush3.bf16.msra.mxu1 %v4437_v41  ;;  %v1891_v61 = vld [vmem:[#allocation2 + $0xc0] sm:$0xff]  ;;  %v1877_v63 = vld [vmem:[#allocation2 + $0x50] sm:$0xff]  ;;  %v1892_v0 = vld [vmem:[#allocation2 + $0xc8] sm:$0xff] }
 0x314   : > { %4442 = vmatprep.subr.bf16.mxu0 %v4441_v4  ;;  %v1893_v1 = vld [vmem:[#allocation2 + $0xd0] sm:$0xff]  ;;  %v1878_v2 = vld [vmem:[#allocation2 + $0x58] sm:$0xff]  ;;  %v1879_v3 = vld [vmem:[#allocation2 + $0x60] sm:$0xff] }
 0x315   : > { %v1894_v5 = vld [vmem:[#allocation2 + $0xd8] sm:$0xff]  ;;  %v1895_v6 = vld [vmem:[#allocation2 + $0xe0] sm:$0xff]  ;;  %v1880_v7 = vld [vmem:[#allocation2 + $0x68] sm:$0xff] }
 0x316   : > { %4138 = vmatmul.mubr.msk.f32.vlgmr.msra.gmra.mrb[0].mxu0 %vm1730_vm1, %v1868_v44  ;;  %4165 = vmatmul.mubr.msk.f32.vlgmr.msra.gmra.mrb[0].mxu1 %vm1730_vm1, %v1886_v52  ;;  %v1881_v8 = vld [vmem:[#allocation2 + $0x70] sm:$0xff]  ;;  %v1896_v9 = vld [vmem:[#allocation2 + $0xe8] sm:$0xff]  ;;  %v1882_v11 = vld [vmem:[#allocation2 + $0x78] sm:$0xff] }
 0x317   : > { %4140 = vmatprep.mubr.msk.f32.mxu0 %vm1730_vm1, %v1869_v47  ;;  %4444 = vmatpush3.bf16.msra.mxu0 %v4441_v4  ;;  %v1897_v10 = vld [vmem:[#allocation2 + $0xf0] sm:$0xff]  ;;  %v1883_v12 = vld [vmem:[#allocation2 + $0x80] sm:$0xff]  ;;  %v1898_v13 = vld [vmem:[#allocation2 + $0xf8] sm:$0xff] }
 0x318   : > { %4446 = vmatprep.subr.bf16.mxu0 %v4445_v48  ;;  %4167 = vmatprep.mubr.msk.f32.mxu1 %vm1730_vm1, %v1887_v54  ;;  %v1899_v14 = vld [vmem:[#allocation2 + $0x100] sm:$0xff]  ;;  %v1884_v15 = vld [vmem:[#allocation2 + $0x88] sm:$0xff]  ;;  %v1901_v18 = vld [vmem:[#allocation2 + $0x110] sm:$0xff] }
 0x319   : > { %v1799_v16 = vld [vmem:[%s5503_s23] sm:$0xff]  ;;  %v1900_v17 = vld [vmem:[#allocation2 + $0x108] sm:$0xff]  ;;  %v1801_v20 = vld [vmem:[%s5503_s23 + $0x10] sm:$0xff] }
 0x31a   : > { %4141 = vmatmul.mubr.msk.f32.gmra.mrb[2].mxu0 %vm1730_vm1, %v1870_v49  ;;  %4168 = vmatmul.mubr.msk.f32.gmra.mrb[2].mxu1 %vm1730_vm1, %v1888_v56  ;;  %v1800_v19 = vld [vmem:[%s5503_s23 + $0x8] sm:$0xff]  ;;  %v1902_v21 = vld [vmem:[#allocation2 + $0x118] sm:$0xff]  ;;  %v1903_v22 = vld [vmem:[#allocation2 + $0x120] sm:$0xff] }
 0x31b   : > { %4143 = vmatprep.mubr.msk.f32.mxu0 %vm1730_vm1, %v1871_v50  ;;  %4448 = vmatpush3.bf16.msra.mxu0 %v4445_v48  ;;  %v1802_v23 = vld [vmem:[%s5503_s23 + $0x18] sm:$0xff]  ;;  %v1803_v24 = vld [vmem:[%s5503_s23 + $0x20] sm:$0xff]  ;;  %v1904_v25 = vld [vmem:[#allocation2 + $0x128] sm:$0xff] }
 0x31c   : > { %4170 = vmatprep.mubr.msk.f32.mxu1 %vm1730_vm1, %v1889_v57  ;;  %v1905_v26 = vld [vmem:[#allocation2 + $0x130] sm:$0xff]  ;;  %v1804_v27 = vld [vmem:[%s5503_s23 + $0x28] sm:$0xff]  ;;  %v1906_v29 = vld [vmem:[#allocation2 + $0x138] sm:$0xff] }
 0x31d   : > { %v1805_v28 = vld [vmem:[%s5503_s23 + $0x30] sm:$0xff]  ;;  %v1907_v30 = vld [vmem:[#allocation2 + $0x140] sm:$0xff]  ;;  %v1806_v31 = vld [vmem:[%s5503_s23 + $0x38] sm:$0xff] }
 0x31e   : > { %4144 = vmatmul.mubr.msk.f32.gmra.mrb[4].mxu0 %vm1730_vm1, %v1872_v53  ;;  %4171 = vmatmul.mubr.msk.f32.gmra.mrb[4].mxu1 %vm1730_vm1, %v1890_v60  ;;  %v1807_v32 = vld [vmem:[%s5503_s23 + $0x40] sm:$0xff]  ;;  %v1908_v33 = vld [vmem:[#allocation2 + $0x148] sm:$0xff]  ;;  %v1909_v34 = vld [vmem:[#allocation2 + $0x150] sm:$0xff] }
 0x31f   : > { %4146 = vmatprep.mubr.msk.f32.mxu0 %vm1730_vm1, %v1873_v55  ;;  %4173 = vmatprep.mubr.msk.f32.mxu1 %vm1730_vm1, %v1891_v61  ;;  %v1808_v35 = vld [vmem:[%s5503_s23 + $0x48] sm:$0xff]  ;;  %v1809_v36 = vld [vmem:[%s5503_s23 + $0x50] sm:$0xff]  ;;  %v1910_v37 = vld [vmem:[#allocation2 + $0x158] sm:$0xff] }
 0x320   : > { %v1911_v38 = vld [vmem:[#allocation2 + $0x160] sm:$0xff]  ;;  %v1810_v39 = vld [vmem:[%s5503_s23 + $0x58] sm:$0xff]  ;;  %v1912_v41 = vld [vmem:[#allocation2 + $0x168] sm:$0xff] }
 0x321   : > { %v1811_v40 = vld [vmem:[%s5503_s23 + $0x60] sm:$0xff]  ;;  %v1913_v42 = vld [vmem:[#allocation2 + $0x170] sm:$0xff]  ;;  %v1812_v43 = vld [vmem:[%s5503_s23 + $0x68] sm:$0xff] }
 0x322   : > { %4147 = vmatmul.mubr.msk.f32.gmra.mrb[6].mxu0 %vm1730_vm1, %v1874_v58  ;;  %4174 = vmatmul.mubr.msk.f32.gmra.mrb[6].mxu1 %vm1730_vm1, %v1892_v0  ;;  %v1813_v4 = vld [vmem:[%s5503_s23 + $0x70] sm:$0xff]  ;;  %v1914_v44 = vld [vmem:[#allocation2 + $0x178] sm:$0xff]  ;;  %v1915_v45 = vld [vmem:[#allocation2 + $0x180] sm:$0xff] }
 0x323   : > { %4149 = vmatprep.mubr.msk.f32.mxu0 %vm1730_vm1, %v1875_v59  ;;  %4176 = vmatprep.mubr.msk.f32.mxu1 %vm1730_vm1, %v1893_v1  ;;  %v1814_v46 = vld [vmem:[%s5503_s23 + $0x78] sm:$0xff]  ;;  %v1815_v47 = vld [vmem:[%s5503_s23 + $0x80] sm:$0xff]  ;;  %v1916_v48 = vld [vmem:[#allocation2 + $0x188] sm:$0xff] }
 0x324   : > { %v1917_v49 = vld [vmem:[#allocation2 + $0x190] sm:$0xff]  ;;  %v1816_v50 = vld [vmem:[%s5503_s23 + $0x88] sm:$0xff]  ;;  %v1918_v52 = vld [vmem:[#allocation2 + $0x198] sm:$0xff] }
 0x325   : > { %v1817_v51 = vld [vmem:[%s5503_s23 + $0x90] sm:$0xff]  ;;  %v1919_v53 = vld [vmem:[#allocation2 + $0x1a0] sm:$0xff]  ;;  %v1818_v54 = vld [vmem:[%s5503_s23 + $0x98] sm:$0xff] }
 0x326   : > { %4150 = vmatmul.mubr.msk.f32.gmra.mrb[8].mxu0 %vm1730_vm1, %v1876_v62  ;;  %4177 = vmatmul.mubr.msk.f32.gmra.mrb[8].mxu1 %vm1730_vm1, %v1894_v5  ;;  %v1819_v55 = vld [vmem:[%s5503_s23 + $0xa0] sm:$0xff]  ;;  %v1920_v56 = vld [vmem:[#allocation2 + $0x1a8] sm:$0xff]  ;;  %v1921_v57 = vld [vmem:[#allocation2 + $0x1b0] sm:$0xff] }
 0x327   : > { %4152 = vmatprep.mubr.msk.f32.mxu0 %vm1730_vm1, %v1877_v63  ;;  %4179 = vmatprep.mubr.msk.f32.mxu1 %vm1730_vm1, %v1895_v6  ;;  %v1820_v58 = vld [vmem:[%s5503_s23 + $0xa8] sm:$0xff]  ;;  %v1821_v59 = vld [vmem:[%s5503_s23 + $0xb0] sm:$0xff]  ;;  %v1922_v60 = vld [vmem:[#allocation2 + $0x1b8] sm:$0xff] }
 0x328   : > { %v1923_v61 = vld [vmem:[#allocation2 + $0x1c0] sm:$0xff]  ;;  %v1822_v62 = vld [vmem:[%s5503_s23 + $0xb8] sm:$0xff]  ;;  %v1924_v0 = vld [vmem:[#allocation2 + $0x1c8] sm:$0xff] }
 0x329   : > { %v1823_v63 = vld [vmem:[%s5503_s23 + $0xc0] sm:$0xff]  ;;  %v1925_v1 = vld [vmem:[#allocation2 + $0x1d0] sm:$0xff]  ;;  %v1926_v5 = vld [vmem:[#allocation2 + $0x1d8] sm:$0xff] }
 0x32a   : > { %4153 = vmatmul.mubr.msk.f32.gmra.mrb[10].mxu0 %vm1730_vm1, %v1878_v2  ;;  %4180 = vmatmul.mubr.msk.f32.gmra.mrb[10].mxu1 %vm1730_vm1, %v1896_v9  ;;  %v1824_v2 = vld [vmem:[%s5503_s23 + $0xc8] sm:$0xff]  ;;  %v1927_v6 = vld [vmem:[#allocation2 + $0x1e0] sm:$0xff] }
 0x32b   : > { %4155 = vmatprep.mubr.msk.f32.mxu0 %vm1730_vm1, %v1879_v3  ;;  %4182 = vmatprep.mubr.msk.f32.mxu1 %vm1730_vm1, %v1897_v10  ;;  %v1825_v3 = vld [vmem:[%s5503_s23 + $0xd0] sm:$0xff]  ;;  %v1928_v9 = vld [vmem:[#allocation2 + $0x1e8] sm:$0xff] }
 0x32c   : > { %v1929_v10 = vld [vmem:[#allocation2 + $0x1f0] sm:$0xff] }
 0x32e   : > { %4156 = vmatmul.mubr.msk.f32.gmra.mrb[12].mxu0 %vm1730_vm1, %v1880_v7  ;;  %4183 = vmatmul.mubr.msk.f32.gmra.mrb[12].mxu1 %vm1730_vm1, %v1898_v13  ;;  %v1826_v7 = vld [vmem:[%s5503_s23 + $0xd8] sm:$0xff] }
 0x32f   : > { %4158 = vmatprep.mubr.msk.f32.mxu0 %vm1730_vm1, %v1881_v8  ;;  %4185 = vmatprep.mubr.msk.f32.mxu1 %vm1730_vm1, %v1899_v14  ;;  %v1827_v8 = vld [vmem:[%s5503_s23 + $0xe0] sm:$0xff]  ;;  %v1930_v13 = vld [vmem:[#allocation2 + $0x1f8] sm:$0xff] }
 0x330   : > { %v1830_v14 = vld [vmem:[%s5503_s23 + $0xf8] sm:$0xff] }
 0x332   : > { %4159 = vmatmul.mubr.msk.f32.gmra.mrb[14].mxu0 %vm1730_vm1, %v1882_v11  ;;  %4186 = vmatmul.mubr.msk.f32.gmra.mrb[14].mxu1 %vm1730_vm1, %v1900_v17  ;;  %v1828_v11 = vld [vmem:[%s5503_s23 + $0xe8] sm:$0xff]  ;;  %v1833_v17 = vld [vmem:[%s5503_s23 + $0x110] sm:$0xff] }
 0x333   : > { %4161 = vmatprep.mubr.msk.f32.mxu0 %vm1730_vm1, %v1883_v12  ;;  %4188 = vmatprep.mubr.msk.f32.mxu1 %vm1730_vm1, %v1901_v18  ;;  %v1829_v12 = vld [vmem:[%s5503_s23 + $0xf0] sm:$0xff]  ;;  %v1834_v18 = vld [vmem:[%s5503_s23 + $0x118] sm:$0xff] }
 0x336   : > { %4162 = vmatmul.mubr.msk.f32.gmra.mrb[16].mxu0 %vm1730_vm1, %v1884_v15  ;;  %4189 = vmatmul.mubr.msk.f32.gmra.mrb[16].mxu1 %vm1730_vm1, %v1902_v21  ;;  %v1831_v15 = vld [vmem:[%s5503_s23 + $0x100] sm:$0xff]  ;;  %v1837_v21 = vld [vmem:[%s5503_s23 + $0x130] sm:$0xff] }
 0x337   : > { %4241 = vmatprep.mubr.msk.f32.mxu0 %vm1730_vm1, %v1799_v16  ;;  %4191 = vmatprep.mubr.msk.f32.mxu1 %vm1730_vm1, %v1903_v22  ;;  %v1832_v16 = vld [vmem:[%s5503_s23 + $0x108] sm:$0xff]  ;;  %v1838_v22 = vld [vmem:[%s5503_s23 + $0x138] sm:$0xff] }
 0x33a   : > { %4242 = vmatmul.mubr.msk.f32.vlgmr.msra.gmra.mrb[0].mxu0 %vm1730_vm1, %v1800_v19  ;;  %4192 = vmatmul.mubr.msk.f32.gmra.mrb[18].mxu1 %vm1730_vm1, %v1904_v25  ;;  %v1835_v19 = vld [vmem:[%s5503_s23 + $0x120] sm:$0xff]  ;;  %v1841_v25 = vld [vmem:[%s5503_s23 + $0x150] sm:$0xff] }
 0x33b   : > { %4244 = vmatprep.mubr.msk.f32.mxu0 %vm1730_vm1, %v1801_v20  ;;  %4194 = vmatprep.mubr.msk.f32.mxu1 %vm1730_vm1, %v1905_v26  ;;  %v1836_v20 = vld [vmem:[%s5503_s23 + $0x128] sm:$0xff]  ;;  %v1842_v26 = vld [vmem:[%s5503_s23 + $0x158] sm:$0xff] }
 0x33e   : > { %4245 = vmatmul.mubr.msk.f32.gmra.mrb[2].mxu0 %vm1730_vm1, %v1802_v23  ;;  %4195 = vmatmul.mubr.msk.f32.gmra.mrb[20].mxu1 %vm1730_vm1, %v1906_v29  ;;  %v1839_v23 = vld [vmem:[%s5503_s23 + $0x140] sm:$0xff]  ;;  %v1845_v29 = vld [vmem:[%s5503_s23 + $0x170] sm:$0xff] }
 0x33f   : > { %4247 = vmatprep.mubr.msk.f32.mxu0 %vm1730_vm1, %v1803_v24  ;;  %4197 = vmatprep.mubr.msk.f32.mxu1 %vm1730_vm1, %v1907_v30  ;;  %v1840_v24 = vld [vmem:[%s5503_s23 + $0x148] sm:$0xff]  ;;  %v1846_v30 = vld [vmem:[%s5503_s23 + $0x178] sm:$0xff] }
 0x342   : > { %4248 = vmatmul.mubr.msk.f32.gmra.mrb[4].mxu0 %vm1730_vm1, %v1804_v27  ;;  %4198 = vmatmul.mubr.msk.f32.gmra.mrb[22].mxu1 %vm1730_vm1, %v1908_v33  ;;  %v1843_v27 = vld [vmem:[%s5503_s23 + $0x160] sm:$0xff]  ;;  %v1849_v33 = vld [vmem:[%s5503_s23 + $0x190] sm:$0xff] }
 0x343   : > { %4250 = vmatprep.mubr.msk.f32.mxu0 %vm1730_vm1, %v1805_v28  ;;  %4200 = vmatprep.mubr.msk.f32.mxu1 %vm1730_vm1, %v1909_v34  ;;  %v1844_v28 = vld [vmem:[%s5503_s23 + $0x168] sm:$0xff]  ;;  %v1850_v34 = vld [vmem:[%s5503_s23 + $0x198] sm:$0xff] }
 0x346   : > { %4251 = vmatmul.mubr.msk.f32.gmra.mrb[6].mxu0 %vm1730_vm1, %v1806_v31  ;;  %4201 = vmatmul.mubr.msk.f32.gmra.mrb[24].mxu1 %vm1730_vm1, %v1910_v37  ;;  %v1847_v31 = vld [vmem:[%s5503_s23 + $0x180] sm:$0xff]  ;;  %v1853_v37 = vld [vmem:[%s5503_s23 + $0x1b0] sm:$0xff] }
 0x347   : > { %4253 = vmatprep.mubr.msk.f32.mxu0 %vm1730_vm1, %v1807_v32  ;;  %4203 = vmatprep.mubr.msk.f32.mxu1 %vm1730_vm1, %v1911_v38  ;;  %v1848_v32 = vld [vmem:[%s5503_s23 + $0x188] sm:$0xff]  ;;  %v1854_v38 = vld [vmem:[%s5503_s23 + $0x1b8] sm:$0xff] }
 0x34a   : > { %4254 = vmatmul.mubr.msk.f32.gmra.mrb[8].mxu0 %vm1730_vm1, %v1808_v35  ;;  %4204 = vmatmul.mubr.msk.f32.gmra.mrb[26].mxu1 %vm1730_vm1, %v1912_v41  ;;  %v1851_v35 = vld [vmem:[%s5503_s23 + $0x1a0] sm:$0xff]  ;;  %v1857_v41 = vld [vmem:[%s5503_s23 + $0x1d0] sm:$0xff] }
 0x34b   : > { %4256 = vmatprep.mubr.msk.f32.mxu0 %vm1730_vm1, %v1809_v36  ;;  %4206 = vmatprep.mubr.msk.f32.mxu1 %vm1730_vm1, %v1913_v42  ;;  %v1852_v36 = vld [vmem:[%s5503_s23 + $0x1a8] sm:$0xff]  ;;  %v1858_v42 = vld [vmem:[%s5503_s23 + $0x1d8] sm:$0xff] }
 0x34e   : > { %4257 = vmatmul.mubr.msk.f32.gmra.mrb[10].mxu0 %vm1730_vm1, %v1810_v39  ;;  %4207 = vmatmul.mubr.msk.f32.gmra.mrb[28].mxu1 %vm1730_vm1, %v1914_v44  ;;  %v1855_v39 = vld [vmem:[%s5503_s23 + $0x1c0] sm:$0xff]  ;;  %v1861_v44 = vld [vmem:[%s5503_s23 + $0x1f0] sm:$0xff] }
 0x34f   : > { %4259 = vmatprep.mubr.msk.f32.mxu0 %vm1730_vm1, %v1811_v40  ;;  %4209 = vmatprep.mubr.msk.f32.mxu1 %vm1730_vm1, %v1915_v45  ;;  %v1856_v40 = vld [vmem:[%s5503_s23 + $0x1c8] sm:$0xff]  ;;  %v1862_v45 = vld [vmem:[%s5503_s23 + $0x1f8] sm:$0xff] }
 0x352   : > { %4260 = vmatmul.mubr.msk.f32.gmra.mrb[12].mxu0 %vm1730_vm1, %v1812_v43  ;;  %4210 = vmatmul.mubr.msk.f32.gmra.mrb[30].mxu1 %vm1730_vm1, %v1916_v48  ;;  %v1859_v43 = vld [vmem:[%s5503_s23 + $0x1e0] sm:$0xff] }
 0x353   : > { %4262 = vmatprep.mubr.msk.f32.mxu0 %vm1730_vm1, %v1813_v4  ;;  %4212 = vmatprep.mubr.msk.f32.mxu1 %vm1730_vm1, %v1917_v49  ;;  %v1860_v4 = vld [vmem:[%s5503_s23 + $0x1e8] sm:$0xff] }
 0x356   : > { %4263 = vmatmul.mubr.msk.f32.gmra.mrb[14].mxu0 %vm1730_vm1, %v1814_v46  ;;  %4213 = vmatmul.mubr.msk.f32.gmra.mrb[32].mxu1 %vm1730_vm1, %v1918_v52 }
 0x357   : > { %4265 = vmatprep.mubr.msk.f32.mxu0 %vm1730_vm1, %v1815_v47  ;;  %4215 = vmatprep.mubr.msk.f32.mxu1 %vm1730_vm1, %v1919_v53 }
 0x35a   : > { %4266 = vmatmul.mubr.msk.f32.gmra.mrb[16].mxu0 %vm1730_vm1, %v1816_v50  ;;  %4216 = vmatmul.mubr.msk.f32.gmra.mrb[34].mxu1 %vm1730_vm1, %v1920_v56 }
 0x35b   : > { %4268 = vmatprep.mubr.msk.f32.mxu0 %vm1730_vm1, %v1817_v51  ;;  %4218 = vmatprep.mubr.msk.f32.mxu1 %vm1730_vm1, %v1921_v57 }
 0x35e   : > { %4269 = vmatmul.mubr.msk.f32.gmra.mrb[18].mxu0 %vm1730_vm1, %v1818_v54  ;;  %4219 = vmatmul.mubr.msk.f32.gmra.mrb[36].mxu1 %vm1730_vm1, %v1922_v60  ;;  %v3419_v60 = vld [vmem:[#allocation12] sm:$0xff] }
 0x35f   : > { %4271 = vmatprep.mubr.msk.f32.mxu0 %vm1730_vm1, %v1819_v55  ;;  %4221 = vmatprep.mubr.msk.f32.mxu1 %vm1730_vm1, %v1923_v61  ;;  %v6272_v61 = vld [vmem:[#allocation10] ss:$0 sm:$0xff] }
 0x362   : > { %4272 = vmatmul.mubr.msk.f32.gmra.mrb[20].mxu0 %vm1730_vm1, %v1820_v58  ;;  %4222 = vmatmul.mubr.msk.f32.gmra.mrb[38].mxu1 %vm1730_vm1, %v1924_v0 }
 0x363   : > { %4274 = vmatprep.mubr.msk.f32.mxu0 %vm1730_vm1, %v1821_v59  ;;  %4224 = vmatprep.mubr.msk.f32.mxu1 %vm1730_vm1, %v1925_v1 }
 0x366   : > { %4275 = vmatmul.mubr.msk.f32.gmra.mrb[22].mxu0 %vm1730_vm1, %v1822_v62  ;;  %4225 = vmatmul.mubr.msk.f32.gmra.mrb[40].mxu1 %vm1730_vm1, %v1926_v5 }
 0x367   : > { %4277 = vmatprep.mubr.msk.f32.mxu0 %vm1730_vm1, %v1823_v63  ;;  %4227 = vmatprep.mubr.msk.f32.mxu1 %vm1730_vm1, %v1927_v6 }
 0x36a   : > { %4278 = vmatmul.mubr.msk.f32.gmra.mrb[24].mxu0 %vm1730_vm1, %v1824_v2  ;;  %4228 = vmatmul.mubr.msk.f32.gmra.mrb[42].mxu1 %vm1730_vm1, %v1928_v9 }
 0x36b   : > { %4280 = vmatprep.mubr.msk.f32.mxu0 %vm1730_vm1, %v1825_v3  ;;  %4230 = vmatprep.mubr.msk.f32.mxu1 %vm1730_vm1, %v1929_v10 }
 0x36e   : > { %4281 = vmatmul.mubr.msk.f32.gmra.mrb[26].mxu0 %vm1730_vm1, %v1826_v7  ;;  %4231 = vmatmul.mubr.msk.f32.gmra.mrb[44].mxu1 %vm1730_vm1, %v1930_v13 }
 0x36f   : > { %4283 = vmatprep.mubr.msk.f32.mxu0 %vm1730_vm1, %v1827_v8  ;;  %4093 = vmatprep.mubr.f32.mxu1 %v3419_v60 }
 0x372   : > { %4284 = vmatmul.mubr.msk.f32.gmra.mrb[28].mxu0 %vm1730_vm1, %v1828_v11  ;;  %v6852_v11 = vlaneseq }
 0x373   : > { %4286 = vmatprep.mubr.msk.f32.mxu0 %vm1730_vm1, %v1829_v12 }
 0x376   : > { %4287 = vmatmul.mubr.msk.f32.gmra.mrb[30].mxu0 %vm1730_vm1, %v1830_v14 }
 0x377   : > { %4289 = vmatprep.mubr.msk.f32.mxu0 %vm1730_vm1, %v1831_v15 }
 0x37a   : > { %4290 = vmatmul.mubr.msk.f32.gmra.mrb[32].mxu0 %vm1730_vm1, %v1832_v16 }
 0x37b   : > { %4292 = vmatprep.mubr.msk.f32.mxu0 %vm1730_vm1, %v1833_v17 }
 0x37e   : > { %4293 = vmatmul.mubr.msk.f32.gmra.mrb[34].mxu0 %vm1730_vm1, %v1834_v18  ;;  %v6293_v18 = vshrl.u32 %v6852_v11, 7 }
 0x37f   : > { %4295 = vmatprep.mubr.msk.f32.mxu0 %vm1730_vm1, %v1835_v19 }
 0x380   : > { %vm3290_vm2 = vcmp.lt.s32.totalorder %v6293_v18, 7 }
 0x382   : > { %4296 = vmatmul.mubr.msk.f32.gmra.mrb[36].mxu0 %vm1730_vm1, %v1836_v20 }
 0x383   : > { %4298 = vmatprep.mubr.msk.f32.mxu0 %vm1730_vm1, %v1837_v21 }
 0x386   : > { %4299 = vmatmul.mubr.msk.f32.gmra.mrb[38].mxu0 %vm1730_vm1, %v1838_v22 }
 0x387   : > { %4301 = vmatprep.mubr.msk.f32.mxu0 %vm1730_vm1, %v1839_v23 }
 0x38a   : > { %4302 = vmatmul.mubr.msk.f32.gmra.mrb[40].mxu0 %vm1730_vm1, %v1840_v24 }
 0x38b   : > { %4304 = vmatprep.mubr.msk.f32.mxu0 %vm1730_vm1, %v1841_v25 }
 0x38e   : > { %4305 = vmatmul.mubr.msk.f32.gmra.mrb[42].mxu0 %vm1730_vm1, %v1842_v26 }
 0x38f   : > { %4307 = vmatprep.mubr.msk.f32.mxu0 %vm1730_vm1, %v1843_v27 }
 0x392   : > { %4308 = vmatmul.mubr.msk.f32.gmra.mrb[44].mxu0 %vm1730_vm1, %v1844_v28 }
 0x393   : > { %4310 = vmatprep.mubr.msk.f32.mxu0 %vm1730_vm1, %v1845_v29 }
 0x396   : > { %4311 = vmatmul.mubr.msk.f32.gmra.mrb[46].mxu0 %vm1730_vm1, %v1846_v30 }
 0x397   : > { %4313 = vmatprep.mubr.msk.f32.mxu0 %vm1730_vm1, %v1847_v31 }
 0x39a   : > { %4314 = vmatmul.mubr.msk.f32.gmra.mrb[48].mxu0 %vm1730_vm1, %v1848_v32 }
 0x39b   : > { %4316 = vmatprep.mubr.msk.f32.mxu0 %vm1730_vm1, %v1849_v33 }
 0x39e   : > { %4317 = vmatmul.mubr.msk.f32.gmra.mrb[50].mxu0 %vm1730_vm1, %v1850_v34 }
 0x39f   : > { %4319 = vmatprep.mubr.msk.f32.mxu0 %vm1730_vm1, %v1851_v35 }
 0x3a2   : > { %4320 = vmatmul.mubr.msk.f32.gmra.mrb[52].mxu0 %vm1730_vm1, %v1852_v36 }
 0x3a3   : > { %4322 = vmatprep.mubr.msk.f32.mxu0 %vm1730_vm1, %v1853_v37 }
 0x3a6   : > { %4323 = vmatmul.mubr.msk.f32.gmra.mrb[54].mxu0 %vm1730_vm1, %v1854_v38 }
 0x3a7   : > { %4325 = vmatprep.mubr.msk.f32.mxu0 %vm1730_vm1, %v1855_v39 }
 0x3aa   : > { %4326 = vmatmul.mubr.msk.f32.gmra.mrb[56].mxu0 %vm1730_vm1, %v1856_v40 }
 0x3ab   : > { %4328 = vmatprep.mubr.msk.f32.mxu0 %vm1730_vm1, %v1857_v41 }
 0x3ae   : > { %4329 = vmatmul.mubr.msk.f32.gmra.mrb[58].mxu0 %vm1730_vm1, %v1858_v42 }
 0x3af   : > { %4331 = vmatprep.mubr.msk.f32.mxu0 %vm1730_vm1, %v1859_v43 }
 0x3b2   : > { %4332 = vmatmul.mubr.msk.f32.gmra.mrb[60].mxu0 %vm1730_vm1, %v1860_v4 }
 0x3b3   : > { %4334 = vmatprep.mubr.msk.f32.mxu0 %vm1730_vm1, %v1861_v44 }
 0x3b6   : > { %4335 = vmatmul.mubr.msk.f32.gmra.mrb[62].mxu0 %vm1730_vm1, %v1862_v45 }
 0x3e9   : > { %v6244_v46 = vpop.f32.mrb[0].mxu1 }
 0x3ea   : > { %v6246_v47 = vpop.f32.mrb[1].mxu1 }
 0x3ed   : > { %v6248_v48 = vpop.f32.mrb[2].mxu1 }
 0x3ee   : > { %v6250_v49 = vpop.f32.mrb[3].mxu1 }
 0x3f1   : > { %v6252_v50 = vpop.f32.mrb[4].mxu1 }
 0x3f2   : > { %v6254_v51 = vpop.f32.mrb[5].mxu1 }
 0x3f5   : > { %v6256_v52 = vpop.f32.mrb[6].mxu1 }
 0x3f6   : > { %v6258_v53 = vpop.f32.mrb[7].mxu1 }
 0x3f9   : > { %v6260_v54 = vpop.f32.mrb[8].mxu1 }
 0x3fa   : > { %v6262_v55 = vpop.f32.mrb[9].mxu1 }
 0x3fd   : > { %v6264_v56 = vpop.f32.mrb[10].mxu1 }
 0x3fe   : > { %v6266_v57 = vpop.f32.mrb[11].mxu1 }
 0x401   : > { %v6268_v58 = vpop.f32.mrb[12].mxu1 }
 0x402   : > { %v6270_v59 = vpop.f32.mrb[13].mxu1 }
 0x405   : > { %v6274_v62 = vpop.f32.mrb[14].mxu1 }
 0x406   : > { %v6276_v63 = vpop.f32.mrb[15].mxu1 }
 0x409   : > { %v6280_v5 = vpop.f32.mrb[16].mxu1 }
 0x40a   : > { %v6282_v6 = vpop.f32.mrb[17].mxu1 }
 0x40d   : > { %v4243_v0 = vpop.f32.mrb[0].mxu0  ;;  %v6286_v12 = vpop.f32.mrb[18].mxu1 }
 0x40e   : > { %v3097_v1 = vadd.f32 %v4243_v0, %v6272_v61  ;;  %v2770_v2 = vpop.f32.mrb[1].mxu0  ;;  %v6288_v13 = vpop.f32.mrb[19].mxu1 }
 0x40f   : > { %v3096_v3 = vadd.f32 %v6272_v61, %v2770_v2 }
 0x410   : > { %4732 = vtanh.f32 %v3097_v1 }
 0x411   : > { %4734 = vtanh.f32 %v3096_v3  ;;  %v4246_v7 = vpop.f32.mrb[2].mxu0  ;;  %v6295_v19 = vpop.f32.mrb[20].mxu1 }
 0x412   : > { %v3099_v8 = vadd.f32 %v4246_v7, %v6272_v61  ;;  %v2780_v9 = vpop.f32.mrb[3].mxu0  ;;  %v6297_v20 = vpop.f32.mrb[21].mxu1 }
 0x413   : > { %v3098_v10 = vadd.f32 %v6272_v61, %v2780_v9 }
 0x414   : > { %4736 = vtanh.f32 %v3099_v8 }
 0x415   : > { %4738 = vtanh.f32 %v3098_v10  ;;  %v4249_v14 = vpop.f32.mrb[4].mxu0  ;;  %v6304_v28 = vpop.f32.mrb[22].mxu1 }
 0x416   : > { %v3101_v15 = vadd.f32 %v4249_v14, %v6272_v61  ;;  %v2790_v16 = vpop.f32.mrb[5].mxu0  ;;  %v6307_v30 = vpop.f32.mrb[23].mxu1 }
 0x417   : > { %v3100_v17 = vadd.f32 %v6272_v61, %v2790_v16 }
 0x418   : > { %4740 = vtanh.f32 %v3101_v15 }
 0x419   : > { %4742 = vtanh.f32 %v3100_v17  ;;  %v4252_v21 = vpop.f32.mrb[6].mxu0  ;;  %v6318_v40 = vpop.f32.mrb[24].mxu1 }
 0x41a   : > { %v4733_v22 = vpop.eup %4732  ;;  %v3103_v23 = vadd.f32 %v4252_v21, %v6272_v61  ;;  %v2800_v24 = vpop.f32.mrb[7].mxu0 }
 0x41b   : > { %v6300_v25 = vpop.eup %4734  ;;  %v3225_v26 = vrot.slane %v4733_v22, 1  ;;  %v3102_v27 = vadd.f32 %v6272_v61, %v2800_v24  ;;  %v6320_v42 = vpop.f32.mrb[25].mxu1 }
 0x41c   : > { %6890 = vst [vmem:[#allocation24_spill] sm:$0xff] %v6300_v25  ;;  %v6853_v29 = vrot.slane %v6300_v25, 1  ;;  %4744 = vtanh.f32 %v3103_v23 }
 0x41d   : > { %4746 = vtanh.f32 %v3102_v27  ;;  %v4255_v31 = vpop.f32.mrb[8].mxu0  ;;  %v6332_v9 = vpop.f32.mrb[26].mxu1 }
 0x41e   : > { %v4737_v32 = vpop.eup %4736  ;;  %v3105_v33 = vadd.f32 %v4255_v31, %v6272_v61  ;;  %v2810_v34 = vpop.f32.mrb[9].mxu0  ;;  %v3353_v35 = vsel %vm3290_vm2, %v6853_v29, %v3225_v26 }
 0x41f   : > { %v4739_v36 = vpop.eup %4738  ;;  %v3227_v37 = vrot.slane %v4737_v32, 1  ;;  %v3104_v38 = vadd.f32 %v6272_v61, %v2810_v34  ;;  %v6316_v39 = vmul.f32 %v6300_v25, %v3353_v35  ;;  %v6334_v14 = vpop.f32.mrb[27].mxu1 }
 0x420   : > { %v3226_v41 = vrot.slane %v4739_v36, 1  ;;  %4748 = vtanh.f32 %v3105_v33 }
 0x421   : > { %4750 = vtanh.f32 %v3104_v38  ;;  %v4258_v43 = vpop.f32.mrb[10].mxu0  ;;  %v6348_v35 = vpop.f32.mrb[28].mxu1 }
 0x422   : > { %v4741_v4 = vpop.eup %4740  ;;  %v3107_v44 = vadd.f32 %v4258_v43, %v6272_v61  ;;  %v2820_v45 = vpop.f32.mrb[11].mxu0  ;;  %v3352_v60 = vsel %vm3290_vm2, %v3225_v26, %v3226_v41  ;;  %v3351_v0 = vsel %vm3290_vm2, %v3226_v41, %v3227_v37 }
 0x423   : > { %v4743_v1 = vpop.eup %4742  ;;  %v3229_v2 = vrot.slane %v4741_v4, 1  ;;  %v3106_v3 = vadd.f32 %v6272_v61, %v2820_v45  ;;  %v6328_v7 = vmul.f32 %v4733_v22, %v3352_v60  ;;  %v6330_v8 = vmul.f32 %v4739_v36, %v3351_v0  ;;  %v6350_v38 = vpop.f32.mrb[29].mxu1 }
 0x424   : > { %v3228_v10 = vrot.slane %v4743_v1, 1  ;;  %4752 = vtanh.f32 %v3107_v44 }
 0x425   : > { %4754 = vtanh.f32 %v3106_v3  ;;  %v4261_v15 = vpop.f32.mrb[12].mxu0 }
 0x426   : > { %v4745_v17 = vpop.eup %4744  ;;  %v3109_v21 = vadd.f32 %v4261_v15, %v6272_v61  ;;  %v2830_v23 = vpop.f32.mrb[13].mxu0  ;;  %v3350_v22 = vsel %vm3290_vm2, %v3227_v37, %v3228_v10  ;;  %v3349_v24 = vsel %vm3290_vm2, %v3228_v10, %v3229_v2 }
 0x427   : > { %v4747_v26 = vpop.eup %4746  ;;  %v3231_v27 = vrot.slane %v4745_v17, 1  ;;  %v3108_v31 = vadd.f32 %v6272_v61, %v2830_v23  ;;  %v6344_v33 = vmul.f32 %v4737_v32, %v3350_v22  ;;  %v6346_v34 = vmul.f32 %v4743_v1, %v3349_v24 }
 0x428   : > { %v3230_v36 = vrot.slane %v4747_v26, 1  ;;  %4756 = vtanh.f32 %v3109_v21  ;;  %v6364_v21 = vpop.f32.mrb[30].mxu1 }
 0x429   : > { %4758 = vtanh.f32 %v3108_v31  ;;  %v4264_v41 = vpop.f32.mrb[14].mxu0  ;;  %v6366_v22 = vpop.f32.mrb[31].mxu1 }
 0x42a   : > { %v4749_v43 = vpop.eup %4748  ;;  %v3111_v44 = vadd.f32 %v4264_v41, %v6272_v61  ;;  %v2840_v45 = vpop.f32.mrb[15].mxu0  ;;  %v3348_v32 = vsel %vm3290_vm2, %v3229_v2, %v3230_v36  ;;  %v3347_v60 = vsel %vm3290_vm2, %v3230_v36, %v3231_v27 }
 0x42b   : > { %v4751_v0 = vpop.eup %4750  ;;  %v3233_v1 = vrot.slane %v4749_v43, 1  ;;  %v3110_v3 = vadd.f32 %v6272_v61, %v2840_v45  ;;  %v6360_v10 = vmul.f32 %v4741_v4, %v3348_v32  ;;  %v6362_v15 = vmul.f32 %v4747_v26, %v3347_v60  ;;  %v6380_v11 = vpop.f32.mrb[32].mxu1 }
 0x42c   : > { %v3232_v23 = vrot.slane %v4751_v0, 1  ;;  %4760 = vtanh.f32 %v3111_v44  ;;  %6891 = vst [vmem:[#allocation25_spill] sm:$0xff] %v6380_v11 }
 0x42d   : > { %4762 = vtanh.f32 %v3110_v3  ;;  %v4267_v24 = vpop.f32.mrb[16].mxu0 }
 0x42e   : > { %v4753_v31 = vpop.eup %4752  ;;  %v3113_v36 = vadd.f32 %v4267_v24, %v6272_v61  ;;  %v2850_v41 = vpop.f32.mrb[17].mxu0  ;;  %v3346_v4 = vsel %vm3290_vm2, %v3231_v27, %v3232_v23  ;;  %v3345_v26 = vsel %vm3290_vm2, %v3232_v23, %v3233_v1 }
 0x42f   : > { %v4755_v45 = vpop.eup %4754  ;;  %v3235_v32 = vrot.slane %v4753_v31, 1  ;;  %v3112_v44 = vadd.f32 %v6272_v61, %v2850_v41  ;;  %v6376_v60 = vmul.f32 %v4745_v17, %v3346_v4  ;;  %v6378_v3 = vmul.f32 %v4751_v0, %v3345_v26  ;;  %v6382_v24 = vpop.f32.mrb[33].mxu1 }
 0x430   : > { %v3234_v29 = vrot.slane %v4755_v45, 1  ;;  %4764 = vtanh.f32 %v3113_v36  ;;  %6892 = vst [vmem:[#allocation26_spill] sm:$0xff] %v6382_v24  ;;  %v6396_v25 = vpop.f32.mrb[34].mxu1 }
 0x431   : > { %4766 = vtanh.f32 %v3112_v44  ;;  %v4270_v2 = vpop.f32.mrb[18].mxu0  ;;  %6893 = vst [vmem:[#allocation27_spill] sm:$0xff] %v6396_v25 }
 0x432   : > { %v4757_v23 = vpop.eup %4756  ;;  %v2866_v37 = vadd.f32 %v4270_v2, %v6244_v46  ;;  %v2860_v16 = vpop.f32.mrb[19].mxu0  ;;  %v3344_v17 = vsel %vm3290_vm2, %v3233_v1, %v3234_v29  ;;  %v3343_v0 = vsel %vm3290_vm2, %v3234_v29, %v3235_v32 }
 0x433   : > { %v4759_v41 = vpop.eup %4758  ;;  %v3237_v4 = vrot.slane %v4757_v23, 1  ;;  %v2861_v36 = vadd.f32 %v2860_v16, %v6246_v47  ;;  %v6392_v26 = vmul.f32 %v4749_v43, %v3344_v17  ;;  %v6394_v44 = vmul.f32 %v4755_v45, %v3343_v0  ;;  %v6399_v2 = vpop.f32.mrb[35].mxu1 }
 0x434   : > { %v3236_v27 = vrot.slane %v4759_v41, 1  ;;  %v3115_v46 = vadd.f32 %v6272_v61, %v2866_v37  ;;  %6894 = vst [vmem:[#allocation28_spill] sm:$0xff] %v6399_v2  ;;  %v6412_v2 = vpop.f32.mrb[36].mxu1 }
 0x435   : > { %v3114_v1 = vadd.f32 %v6272_v61, %v2861_v36  ;;  %v4273_v24 = vpop.f32.mrb[20].mxu0  ;;  %6895 = vst [vmem:[#allocation29_spill] sm:$0xff] %v6412_v2 }
 0x436   : > { %v4761_v11 = vpop.eup %4760  ;;  %4768 = vtanh.f32 %v3115_v46  ;;  %v2876_v47 = vadd.f32 %v4273_v24, %v6248_v48  ;;  %v2870_v16 = vpop.f32.mrb[21].mxu0  ;;  %v3342_v43 = vsel %vm3290_vm2, %v3235_v32, %v3236_v27  ;;  %v3341_v45 = vsel %vm3290_vm2, %v3236_v27, %v3237_v4 }
 0x437   : > { %v4763_v37 = vpop.eup %4762  ;;  %v3239_v17 = vrot.slane %v4761_v11, 1  ;;  %4770 = vtanh.f32 %v3114_v1  ;;  %v2871_v0 = vadd.f32 %v2870_v16, %v6250_v49  ;;  %v6410_v36 = vmul.f32 %v4753_v31, %v3342_v43  ;;  %v6417_v24 = vpop.f32.mrb[37].mxu1 }
 0x438   : > { %v3238_v29 = vrot.slane %v4763_v37, 1  ;;  %v3117_v46 = vadd.f32 %v6272_v61, %v2876_v47  ;;  %v6415_v48 = vmul.f32 %v4759_v41, %v3341_v45  ;;  %6896 = vst [vmem:[#allocation30_spill] sm:$0xff] %v6417_v24  ;;  %v6430_v24 = vpop.f32.mrb[38].mxu1 }
 0x439   : > { %v3116_v32 = vadd.f32 %v6272_v61, %v2871_v0  ;;  %v4276_v25 = vpop.f32.mrb[22].mxu0  ;;  %6897 = vst [vmem:[#allocation31_spill] sm:$0xff] %v6430_v24 }
 0x43a   : > { %v4765_v1 = vpop.eup %4764  ;;  %4772 = vtanh.f32 %v3117_v46  ;;  %v2886_v49 = vadd.f32 %v4276_v25, %v6252_v50  ;;  %v2880_v31 = vpop.f32.mrb[23].mxu0  ;;  %v3340_v16 = vsel %vm3290_vm2, %v3237_v4, %v3238_v29  ;;  %v3339_v41 = vsel %vm3290_vm2, %v3238_v29, %v3239_v17 }
 0x43b   : > { %v4767_v47 = vpop.eup %4766  ;;  %4774 = vtanh.f32 %v3116_v32  ;;  %v2881_v43 = vadd.f32 %v2880_v31, %v6254_v51  ;;  %v3241_v45 = vrot.slane %v4765_v1, 1  ;;  %v6428_v0 = vmul.f32 %v4757_v23, %v3340_v16  ;;  %v6435_v25 = vpop.f32.mrb[39].mxu1 }
 0x43c   : > { %v3119_v46 = vadd.f32 %v6272_v61, %v2886_v49  ;;  %v3240_v27 = vrot.slane %v4767_v47, 1  ;;  %v6433_v50 = vmul.f32 %v4763_v37, %v3339_v41  ;;  %6898 = vst [vmem:[#allocation32_spill] sm:$0xff] %v6435_v25  ;;  %v6448_v41 = vpop.f32.mrb[40].mxu1 }
 0x43d   : > { %v3118_v4 = vadd.f32 %v6272_v61, %v2881_v43  ;;  %v4279_v2 = vpop.f32.mrb[24].mxu0  ;;  %6899 = vst [vmem:[#allocation33_spill] sm:$0xff] %v6448_v41  ;;  %v6451_v29 = vpop.f32.mrb[41].mxu1 }
 0x43e   : > { %4776 = vtanh.f32 %v3119_v46  ;;  %v2896_v51 = vadd.f32 %v4279_v2, %v6256_v52  ;;  %v2890_v23 = vpop.f32.mrb[25].mxu0  ;;  %v3337_v32 = vsel %vm3290_vm2, %v3240_v27, %v3241_v45  ;;  %v3338_v49 = vsel %vm3290_vm2, %v3239_v17, %v3240_v27  ;;  %6900 = vst [vmem:[#allocation34_spill] sm:$0xff] %v6451_v29 }
 0x43f   : > { %4778 = vtanh.f32 %v3118_v4  ;;  %v2891_v37 = vadd.f32 %v2890_v23, %v6258_v53  ;;  %v3371_v31 = vmul.f32 %v4767_v47, %v3337_v32  ;;  %v6446_v16 = vmul.f32 %v4761_v11, %v3338_v49  ;;  %v6458_v4 = vpop.f32.mrb[42].mxu1 }
 0x440   : > { %v4769_v43 = vpop.eup %4768  ;;  %v3121_v46 = vadd.f32 %v6272_v61, %v2896_v51  ;;  %6901 = vst [vmem:[#allocation35_spill] sm:$0xff] %v6458_v4 }
 0x441   : > { %v4771_v52 = vpop.eup %4770  ;;  %v3120_v2 = vadd.f32 %v6272_v61, %v2891_v37  ;;  %v3243_v25 = vrot.slane %v4769_v43, 1  ;;  %v4282_v24 = vpop.f32.mrb[26].mxu0 }
 0x442   : > { %4780 = vtanh.f32 %v3121_v46  ;;  %v3242_v53 = vrot.slane %v4771_v52, 1  ;;  %v2906_v11 = vadd.f32 %v4282_v24, %v6260_v54  ;;  %v2900_v27 = vpop.f32.mrb[27].mxu0  ;;  %v6465_v37 = vpop.f32.mrb[43].mxu1 }
 0x443   : > { %4782 = vtanh.f32 %v3120_v2  ;;  %v2901_v47 = vadd.f32 %v2900_v27, %v6262_v55  ;;  %v6470_v41 = vpop.f32.mrb[44].mxu1 }
 0x444   : > { %v4773_v51 = vpop.eup %4772  ;;  %v3336_v23 = vsel %vm3290_vm2, %v3241_v45, %v3242_v53  ;;  %v3335_v32 = vsel %vm3290_vm2, %v3242_v53, %v3243_v25  ;;  %v3123_v49 = vadd.f32 %v6272_v61, %v2906_v11 }
 0x445   : > { %v4775_v46 = vpop.eup %4774  ;;  %v3372_v17 = vmul.f32 %v4765_v1, %v3336_v23  ;;  %v3373_v54 = vmul.f32 %v4771_v52, %v3335_v32  ;;  %v3122_v24 = vadd.f32 %v6272_v61, %v2901_v47  ;;  %v3245_v2 = vrot.slane %v4773_v51, 1  ;;  %v4285_v55 = vpop.f32.mrb[28].mxu0 }
 0x446   : > { %v3244_v27 = vrot.slane %v4775_v46, 1  ;;  %4784 = vtanh.f32 %v3123_v49  ;;  %v2916_v4 = vadd.f32 %v4285_v55, %v6264_v56  ;;  %v2910_v29 = vpop.f32.mrb[29].mxu0  ;;  %v6477_v23 = vpop.f32.mrb[45].mxu1  ;;  %v6902_v49 = vpack.c.bf16 %v6328_v7, %v6316_v39 }
 0x447   : > { %v4449_v45 = vpack.c.bf16 %v3372_v17, %v3371_v31  ;;  %4786 = vtanh.f32 %v3122_v24  ;;  %v2911_v53 = vadd.f32 %v2910_v29, %v6266_v57 }
 0x448   : > { %v4777_v11 = vpop.eup %4776  ;;  %v3334_v1 = vsel %vm3290_vm2, %v3243_v25, %v3244_v27  ;;  %v3333_v52 = vsel %vm3290_vm2, %v3244_v27, %v3245_v2  ;;  %v3125_v47 = vadd.f32 %v6272_v61, %v2916_v4 }
 0x449   : > { %v4779_v32 = vpop.eup %4778  ;;  %4450 = vmatprep.subr.bf16.mxu1 %v4449_v45  ;;  %v3374_v56 = vmul.f32 %v4769_v43, %v3334_v1  ;;  %v3375_v31 = vmul.f32 %v4775_v46, %v3333_v52  ;;  %v3124_v17 = vadd.f32 %v6272_v61, %v2911_v53  ;;  %v3247_v57 = vrot.slane %v4777_v11, 1  ;;  %v4288_v29 = vpop.f32.mrb[30].mxu0 }
 0x44a   : > { %4452 = vmatpush3.bf16.xpose.msra.mxu1 %v6902_v49  ;;  %v3246_v25 = vrot.slane %v4779_v32, 1  ;;  %4788 = vtanh.f32 %v3125_v47  ;;  %v2926_v24 = vadd.f32 %v4288_v29, %v6268_v58  ;;  %v2920_v55 = vpop.f32.mrb[31].mxu0 }
 0x44b   : > { %v4453_v4 = vpack.c.bf16 %v3374_v56, %v3373_v54  ;;  %4790 = vtanh.f32 %v3124_v17  ;;  %v2921_v27 = vadd.f32 %v2920_v55, %v6270_v59 }
 0x44c   : > { %v4781_v45 = vpop.eup %4780  ;;  %v3332_v43 = vsel %vm3290_vm2, %v3245_v2, %v3246_v25  ;;  %v3331_v46 = vsel %vm3290_vm2, %v3246_v25, %v3247_v57  ;;  %v3127_v53 = vadd.f32 %v6272_v61, %v2926_v24 }
 0x44d   : > { %v4783_v39 = vpop.eup %4782  ;;  %4454 = vmatprep.subr.bf16.mxu1 %v4453_v4  ;;  %v3376_v7 = vmul.f32 %v4773_v51, %v3332_v43  ;;  %v3377_v1 = vmul.f32 %v4779_v32, %v3331_v46  ;;  %v3126_v58 = vadd.f32 %v6272_v61, %v2921_v27  ;;  %v4291_v52 = vpop.f32.mrb[32].mxu0  ;;  %v3249_v54 = vrot.slane %v4781_v45, 1 }
 0x44e   : > { %v3248_v47 = vrot.slane %v4783_v39, 1  ;;  %4792 = vtanh.f32 %v3127_v53  ;;  %v2936_v59 = vadd.f32 %v4291_v52, %v6274_v62  ;;  %v2930_v56 = vpop.f32.mrb[33].mxu0 }
 0x44f   : > { %v4457_v17 = vpack.c.bf16 %v3376_v7, %v3375_v31  ;;  %4794 = vtanh.f32 %v3126_v58  ;;  %v2931_v2 = vadd.f32 %v2930_v56, %v6276_v63  ;;  %v6903_v63 = vpack.c.bf16 %v6344_v33, %v6330_v8 }
 0x450   : > { %v4785_v29 = vpop.eup %4784  ;;  %v3330_v49 = vsel %vm3290_vm2, %v3247_v57, %v3248_v47  ;;  %v3129_v51 = vadd.f32 %v6272_v61, %v2936_v59  ;;  %v3329_v32 = vsel %vm3290_vm2, %v3248_v47, %v3249_v54 }
 0x451   : > { %v4787_v25 = vpop.eup %4786  ;;  %v3378_v24 = vmul.f32 %v4777_v11, %v3330_v49  ;;  %v3128_v55 = vadd.f32 %v6272_v61, %v2931_v2  ;;  %v4294_v4 = vpop.f32.mrb[34].mxu0  ;;  %v6499_v62 = vmul.f32 %v4783_v39, %v3329_v32  ;;  %v3251_v31 = vrot.slane %v4785_v29, 1 }
 0x452   : > { %4456 = vmatpush3.bf16.xpose.msra.mxu1 %v6903_v63  ;;  %4796 = vtanh.f32 %v3129_v51  ;;  %v2946_v57 = vadd.f32 %v4294_v4, %v6280_v5  ;;  %v2940_v27 = vpop.f32.mrb[35].mxu0  ;;  %v3250_v43 = vrot.slane %v4787_v25, 1  ;;  %v6904_v4 = vpack.c.bf16 %v6360_v10, %v6346_v34 }
 0x453   : > { %4458 = vmatprep.subr.bf16.mxu1 %v4457_v17  ;;  %v4461_v46 = vpack.c.bf16 %v3378_v24, %v3377_v1  ;;  %4798 = vtanh.f32 %v3128_v55  ;;  %v2941_v11 = vadd.f32 %v2940_v27, %v6282_v6 }
 0x454   : > { %v4789_v53 = vpop.eup %4788  ;;  %v3131_v7 = vadd.f32 %v6272_v61, %v2946_v57  ;;  %v3328_v39 = vsel %vm3290_vm2, %v3249_v54, %v3250_v43  ;;  %v3327_v8 = vsel %vm3290_vm2, %v3250_v43, %v3251_v31 }
 0x455   : > { %v4791_v33 = vpop.eup %4790  ;;  %v3130_v58 = vadd.f32 %v6272_v61, %v2941_v11  ;;  %v4297_v5 = vpop.f32.mrb[36].mxu0  ;;  %v3380_v52 = vmul.f32 %v4781_v45, %v3328_v39  ;;  %v6512_v47 = vmul.f32 %v4787_v25, %v3327_v8  ;;  %v3253_v1 = vrot.slane %v4789_v53, 1 }
 0x456   : > { %4800 = vtanh.f32 %v3131_v7  ;;  %v2956_v6 = vadd.f32 %v4297_v5, %v6286_v12  ;;  %v2950_v59 = vpop.f32.mrb[37].mxu0  ;;  %v3252_v56 = vrot.slane %v4791_v33, 1 }
 0x457   : > { %4802 = vtanh.f32 %v3130_v58  ;;  %v2951_v17 = vadd.f32 %v2950_v59, %v6288_v13  ;;  %v4465_v54 = vpack.c.bf16 %v3380_v52, %v6499_v62 }
 0x458   : > { %v4793_v2 = vpop.eup %4792  ;;  %v3133_v49 = vadd.f32 %v6272_v61, %v2956_v6  ;;  %v3326_v51 = vsel %vm3290_vm2, %v3251_v31, %v3252_v56  ;;  %v3325_v45 = vsel %vm3290_vm2, %v3252_v56, %v3253_v1 }
 0x459   : > { %v4795_v32 = vpop.eup %4794  ;;  %v3132_v25 = vadd.f32 %v6272_v61, %v2951_v17  ;;  %v4300_v12 = vpop.f32.mrb[38].mxu0  ;;  %v6523_v24 = vmul.f32 %v4785_v29, %v3326_v51  ;;  %v6525_v55 = vmul.f32 %v4791_v33, %v3325_v45  ;;  %v3255_v13 = vrot.slane %v4793_v2, 1 }
 0x45a   : > { %4460 = vmatpush3.bf16.xpose.msra.mxu1 %v6904_v4  ;;  %4804 = vtanh.f32 %v3133_v49  ;;  %v2966_v62 = vadd.f32 %v4300_v12, %v6295_v19  ;;  %v2960_v31 = vpop.f32.mrb[39].mxu0  ;;  %v3254_v63 = vrot.slane %v4795_v32, 1 }
 0x45b   : > { %4462 = vmatprep.subr.bf16.mxu1 %v4461_v46  ;;  %4806 = vtanh.f32 %v3132_v25  ;;  %v2961_v57 = vadd.f32 %v2960_v31, %v6297_v20  ;;  %v4469_v29 = vpack.c.bf16 %v6523_v24, %v6512_v47 }
 0x45c   : > { %v4797_v27 = vpop.eup %4796  ;;  %v3135_v43 = vadd.f32 %v6272_v61, %v2966_v62  ;;  %v3324_v11 = vsel %vm3290_vm2, %v3253_v1, %v3254_v63  ;;  %v3323_v34 = vsel %vm3290_vm2, %v3254_v63, %v3255_v13 }
 0x45d   : > { %v4799_v10 = vpop.eup %4798  ;;  %v3257_v19 = vrot.slane %v4797_v27, 1  ;;  %v3134_v7 = vadd.f32 %v6272_v61, %v2961_v57  ;;  %v4303_v46 = vpop.f32.mrb[40].mxu0  ;;  %v6540_v39 = vmul.f32 %v4789_v53, %v3324_v11  ;;  %v6542_v20 = vmul.f32 %v4795_v32, %v3323_v34 }
 0x45e   : > { %4808 = vtanh.f32 %v3135_v43  ;;  %v2976_v8 = vadd.f32 %v4303_v46, %v6304_v28  ;;  %v2970_v33 = vpop.f32.mrb[41].mxu0  ;;  %v3256_v58 = vrot.slane %v4799_v10, 1  ;;  %v6905_v32 = vpack.c.bf16 %v6376_v60, %v6362_v15 }
 0x45f   : > { %4810 = vtanh.f32 %v3134_v7  ;;  %v2971_v5 = vadd.f32 %v2970_v33, %v6307_v30  ;;  %v4473_v52 = vpack.c.bf16 %v6540_v39, %v6525_v55 }
 0x460   : > { %v4801_v1 = vpop.eup %4800  ;;  %v3137_v6 = vadd.f32 %v6272_v61, %v2976_v8  ;;  %v3322_v53 = vsel %vm3290_vm2, %v3255_v13, %v3256_v58  ;;  %v3321_v59 = vsel %vm3290_vm2, %v3256_v58, %v3257_v19 }
 0x461   : > { %v4803_v56 = vpop.eup %4802  ;;  %v3259_v17 = vrot.slane %v4801_v1, 1  ;;  %v3136_v28 = vadd.f32 %v6272_v61, %v2971_v5  ;;  %v4306_v49 = vpop.f32.mrb[42].mxu0  ;;  %v6554_v51 = vmul.f32 %v4793_v2, %v3322_v53  ;;  %v6556_v30 = vmul.f32 %v4799_v10, %v3321_v59 }
 0x462   : > { %v3258_v45 = vrot.slane %v4803_v56, 1  ;;  %4464 = vmatpush3.bf16.xpose.msra.mxu1 %v6905_v32  ;;  %4812 = vtanh.f32 %v3137_v6  ;;  %v2986_v25 = vadd.f32 %v4306_v49, %v6318_v40  ;;  %v2980_v12 = vpop.f32.mrb[43].mxu0  ;;  %v6906_v59 = vpack.c.bf16 %v6392_v26, %v6378_v3 }
 0x463   : > { %4814 = vtanh.f32 %v3136_v28  ;;  %4466 = vmatprep.subr.bf16.mxu1 %v4465_v54  ;;  %v2981_v13 = vadd.f32 %v2980_v12, %v6320_v42  ;;  %v4477_v4 = vpack.c.bf16 %v6554_v51, %v6542_v20 }
 0x464   : > { %v4805_v2 = vpop.eup %4804  ;;  %v3139_v62 = vadd.f32 %v6272_v61, %v2986_v25  ;;  %v3320_v31 = vsel %vm3290_vm2, %v3257_v19, %v3258_v45  ;;  %v3319_v15 = vsel %vm3290_vm2, %v3258_v45, %v3259_v17 }
 0x465   : > { %v4807_v60 = vpop.eup %4806  ;;  %v3261_v63 = vrot.slane %v4805_v2, 1  ;;  %v3138_v40 = vadd.f32 %v6272_v61, %v2981_v13  ;;  %v4309_v57 = vpop.f32.mrb[44].mxu0  ;;  %v6571_v54 = vmul.f32 %v4797_v27, %v3320_v31  ;;  %v6573_v42 = vmul.f32 %v4803_v56, %v3319_v15 }
 0x466   : > { %v3260_v43 = vrot.slane %v4807_v60, 1  ;;  %4816 = vtanh.f32 %v3139_v62  ;;  %v2996_v11 = vadd.f32 %v4309_v57, %v6332_v9  ;;  %v2990_v34 = vpop.f32.mrb[45].mxu0 }
 0x467   : > { %4818 = vtanh.f32 %v3138_v40  ;;  %v2991_v10 = vadd.f32 %v2990_v34, %v6334_v14  ;;  %v4483_v19 = vpack.c.bf16 %v6571_v54, %v6556_v30 }
 0x468   : > { %v4809_v7 = vpop.eup %4808  ;;  %v3141_v46 = vadd.f32 %v6272_v61, %v2996_v11  ;;  %v3318_v27 = vsel %vm3290_vm2, %v3259_v17, %v3260_v43  ;;  %v3317_v8 = vsel %vm3290_vm2, %v3260_v43, %v3261_v63 }
 0x469   : > { %v4811_v33 = vpop.eup %4810  ;;  %v3263_v58 = vrot.slane %v4809_v7, 1  ;;  %v3140_v9 = vadd.f32 %v6272_v61, %v2991_v10  ;;  %v4312_v5 = vpop.f32.mrb[46].mxu0  ;;  %v6585_v6 = vmul.f32 %v4801_v1, %v3318_v27  ;;  %v6587_v14 = vmul.f32 %v4807_v60, %v3317_v8  ;;  %v6907_v10 = vld [vmem:[#allocation25_spill] sm:$0xff] }
 0x46a   : > { %v3262_v53 = vrot.slane %v4811_v33, 1  ;;  %4468 = vmatpush3.bf16.xpose.msra.mxu1 %v6906_v59  ;;  %4820 = vtanh.f32 %v3141_v46  ;;  %v3006_v56 = vadd.f32 %v4312_v5, %v6348_v35  ;;  %v3000_v17 = vpop.f32.mrb[47].mxu0  ;;  %v6908_v8 = vpack.c.bf16 %v6410_v36, %v6394_v44 }
 0x46b   : > { %4822 = vtanh.f32 %v3140_v9  ;;  %v3001_v28 = vadd.f32 %v3000_v17, %v6350_v38  ;;  %4470 = vmatprep.subr.bf16.mxu1 %v4469_v29  ;;  %v4487_v1 = vpack.c.bf16 %v6585_v6, %v6573_v42 }
 0x46c   : > { %v4813_v49 = vpop.eup %4812  ;;  %v3143_v45 = vadd.f32 %v6272_v61, %v3006_v56  ;;  %v3316_v3 = vsel %vm3290_vm2, %v3261_v63, %v3262_v53  ;;  %v3315_v35 = vsel %vm3290_vm2, %v3262_v53, %v3263_v58 }
 0x46d   : > { %v4815_v26 = vpop.eup %4814  ;;  %v3265_v32 = vrot.slane %v4813_v49, 1  ;;  %v3142_v38 = vadd.f32 %v6272_v61, %v3001_v28  ;;  %v4315_v25 = vpop.f32.mrb[48].mxu0  ;;  %v6605_v12 = vmul.f32 %v4805_v2, %v3316_v3  ;;  %v6607_v47 = vmul.f32 %v4811_v33, %v3315_v35  ;;  %v6909_v33 = vld [vmem:[#allocation26_spill] sm:$0xff]  ;;  %v6911_v35 = vld [vmem:[#allocation28_spill] sm:$0xff] }
 0x46e   : > { %v3264_v24 = vrot.slane %v4815_v26, 1  ;;  %4824 = vtanh.f32 %v3143_v45  ;;  %v3016_v29 = vadd.f32 %v4315_v25, %v6364_v21  ;;  %v3010_v13 = vpop.f32.mrb[49].mxu0 }
 0x46f   : > { %4826 = vtanh.f32 %v3142_v38  ;;  %v3011_v62 = vadd.f32 %v3010_v13, %v6366_v22  ;;  %v4491_v31 = vpack.c.bf16 %v6605_v12, %v6587_v14  ;;  %v3563_v12 = vstv %s3562_s6 }
 0x470   : > { %v4817_v15 = vpop.eup %4816  ;;  %v3145_v60 = vadd.f32 %v6272_v61, %v3016_v29  ;;  %v3314_v2 = vsel %vm3290_vm2, %v3263_v58, %v3264_v24  ;;  %v3313_v63 = vsel %vm3290_vm2, %v3264_v24, %v3265_v32 }
 0x471   : > { %v4819_v40 = vpop.eup %4818  ;;  %v3267_v57 = vrot.slane %v4817_v15, 1  ;;  %v3144_v21 = vadd.f32 %v6272_v61, %v3011_v62  ;;  %v4318_v43 = vpop.f32.mrb[50].mxu0  ;;  %v6619_v11 = vmul.f32 %v4809_v7, %v3314_v2  ;;  %v6621_v22 = vmul.f32 %v4815_v26, %v3313_v63 }
 0x472   : > { %v3266_v34 = vrot.slane %v4819_v40, 1  ;;  %4828 = vtanh.f32 %v3145_v60  ;;  %v3026_v46 = vadd.f32 %v4318_v43, %v6907_v10  ;;  %v3020_v27 = vpop.f32.mrb[51].mxu0  ;;  %4472 = vmatpush3.bf16.xpose.msra.mxu1 %v6908_v8  ;;  %v6913_v43 = vld [vmem:[#allocation29_spill] sm:$0xff]  ;;  %v6914_v10 = vld [vmem:[#allocation30_spill] sm:$0xff] }
 0x473   : > { %4830 = vtanh.f32 %v3144_v21  ;;  %v3021_v58 = vadd.f32 %v3020_v27, %v6909_v33  ;;  %4474 = vmatprep.subr.bf16.mxu1 %v4473_v52  ;;  %v4495_v7 = vpack.c.bf16 %v6619_v11, %v6607_v47  ;;  %v6910_v52 = vld [vmem:[#allocation27_spill] sm:$0xff]  ;;  %v6912_v21 = vpack.c.bf16 %v6428_v0, %v6415_v48 }
 0x474   : > { %v4821_v9 = vpop.eup %4820  ;;  %v3147_v5 = vadd.f32 %v6272_v61, %v3026_v46  ;;  %v3312_v53 = vsel %vm3290_vm2, %v3265_v32, %v3266_v34  ;;  %v3311_v44 = vsel %vm3290_vm2, %v3266_v34, %v3267_v57 }
 0x475   : > { %v4823_v36 = vpop.eup %4822  ;;  %v3269_v59 = vrot.slane %v4821_v9, 1  ;;  %v3146_v56 = vadd.f32 %v6272_v61, %v3021_v58  ;;  %v4321_v17 = vpop.f32.mrb[52].mxu0  ;;  %v6639_v28 = vmul.f32 %v4813_v49, %v3312_v53  ;;  %v6641_v55 = vmul.f32 %v4819_v40, %v3311_v44  ;;  %v6915_v53 = vld [vmem:[#allocation31_spill] sm:$0xff] }
 0x476   : > { %v3268_v39 = vrot.slane %v4823_v36, 1  ;;  %4832 = vtanh.f32 %v3147_v5  ;;  %v3036_v45 = vadd.f32 %v4321_v17, %v6910_v52  ;;  %v3030_v3 = vpop.f32.mrb[53].mxu0  ;;  %v6916_v17 = vld [vmem:[#allocation32_spill] sm:$0xff] }
 0x477   : > { %4834 = vtanh.f32 %v3146_v56  ;;  %v3031_v26 = vadd.f32 %v3030_v3, %v6911_v35  ;;  %v4499_v32 = vpack.c.bf16 %v6639_v28, %v6621_v22  ;;  %v5148_v28 = vmov 1966171168  }
 0x478   : > { %v4825_v38 = vpop.eup %4824  ;;  %v3149_v25 = vadd.f32 %v6272_v61, %v3036_v45  ;;  %v3310_v49 = vsel %vm3290_vm2, %v3267_v57, %v3268_v39  ;;  %v3309_v24 = vsel %vm3290_vm2, %v3268_v39, %v3269_v59 }
 0x479   : > { %v4827_v29 = vpop.eup %4826  ;;  %v3271_v13 = vrot.slane %v4825_v38, 1  ;;  %v3148_v62 = vadd.f32 %v6272_v61, %v3031_v26  ;;  %v4324_v60 = vpop.f32.mrb[54].mxu0  ;;  %v6653_v2 = vmul.f32 %v4817_v15, %v3310_v49  ;;  %v6655_v63 = vmul.f32 %v4823_v36, %v3309_v24 }
 0x47a   : > { %v3270_v40 = vrot.slane %v4827_v29, 1  ;;  %4836 = vtanh.f32 %v3149_v25  ;;  %4476 = vmatpush3.bf16.xpose.msra.mxu1 %v6912_v21  ;;  %v3046_v57 = vadd.f32 %v4324_v60, %v6913_v43  ;;  %v3040_v34 = vpop.f32.mrb[55].mxu0  ;;  %v6918_v60 = vld [vmem:[#allocation33_spill] sm:$0xff] }
 0x47b   : > { %4838 = vtanh.f32 %v3148_v62  ;;  %4478 = vmatprep.subr.bf16.mxu1 %v4477_v4  ;;  %v3041_v46 = vadd.f32 %v3040_v34, %v6914_v10  ;;  %v4503_v15 = vpack.c.bf16 %v6653_v2, %v6641_v55  ;;  %v6917_v62 = vpack.c.bf16 %v6446_v16, %v6433_v50 }
 0x47c   : > { %v4829_v27 = vpop.eup %4828  ;;  %v3151_v8 = vadd.f32 %v6272_v61, %v3046_v57  ;;  %v3308_v48 = vsel %vm3290_vm2, %v3269_v59, %v3270_v40  ;;  %v3307_v0 = vsel %vm3290_vm2, %v3270_v40, %v3271_v13  ;;  %v6919_v57 = vld [vmem:[#allocation34_spill] sm:$0xff]  ;;  %v3575_v55 = vunpack.c.l.s4 %v5148_v28 }
 0x47d   : > { %v4831_v33 = vpop.eup %4830  ;;  %v3150_v58 = vadd.f32 %v6272_v61, %v3041_v46  ;;  %v4327_v5 = vpop.f32.mrb[56].mxu0  ;;  %v3273_v20 = vrot.slane %v4829_v27, 1  ;;  %v6673_v51 = vmul.f32 %v4821_v9, %v3308_v48  ;;  %v6675_v4 = vmul.f32 %v4827_v29, %v3307_v0 }
 0x47e   : > { %4840 = vtanh.f32 %v3151_v8  ;;  %v3056_v44 = vadd.f32 %v4327_v5, %v6915_v53  ;;  %v3050_v36 = vpop.f32.mrb[57].mxu0  ;;  %v3272_v56 = vrot.slane %v4831_v33, 1  ;;  %v6920_v5 = vld [vmem:[#allocation35_spill] sm:$0xff] }
 0x47f   : > { %4842 = vtanh.f32 %v3150_v58  ;;  %v3051_v59 = vadd.f32 %v3050_v36, %v6916_v17  ;;  %v4507_v39 = vpack.c.bf16 %v6673_v51, %v6655_v63 }
 0x480   : > { %v4833_v52 = vpop.eup %4832  ;;  %v3153_v45 = vadd.f32 %v6272_v61, %v3056_v44  ;;  %v3305_v9 = vsel %vm3290_vm2, %v3272_v56, %v3273_v20  ;;  %v3306_v3 = vsel %vm3290_vm2, %v3271_v13, %v3272_v56 }
 0x481   : > { %v4835_v35 = vpop.eup %4834  ;;  %v3152_v26 = vadd.f32 %v6272_v61, %v3051_v59  ;;  %v4330_v25 = vpop.f32.mrb[58].mxu0  ;;  %v3403_v49 = vmul.f32 %v4831_v33, %v3305_v9  ;;  %v3275_v24 = vrot.slane %v4833_v52, 1  ;;  %v6687_v29 = vmul.f32 %v4825_v38, %v3306_v3  ;;  %v4860_v59 = vld [vmem:[#allocation10] ss:$0 sm:$0xff] }
 0x482   : > { %4480 = vmatpush3.bf16.xpose.msra.mxu1 %v6917_v62  ;;  %4844 = vtanh.f32 %v3153_v45  ;;  %v3066_v40 = vadd.f32 %v4330_v25, %v6918_v60  ;;  %v3060_v21 = vpop.f32.mrb[59].mxu0  ;;  %v3274_v43 = vrot.slane %v4835_v35, 1 }
 0x483   : > { %4846 = vtanh.f32 %v3152_v26  ;;  %v3061_v13 = vadd.f32 %v3060_v21, %v6919_v57  ;;  %v4511_v34 = vpack.c.bf16 %v6687_v29, %v6675_v4  ;;  %v6708_v26 = vld [vmem:[#allocation12] sm:$0xff] }
 0x484   : > { %v4837_v10 = vpop.eup %4836  ;;  %v3155_v46 = vadd.f32 %v6272_v61, %v3066_v40  ;;  %v3304_v38 = vsel %vm3290_vm2, %v3273_v20, %v3274_v43  ;;  %v3303_v50 = vsel %vm3290_vm2, %v3274_v43, %v3275_v24 }
 0x485   : > { %v4839_v16 = vpop.eup %4838  ;;  %v3154_v8 = vadd.f32 %v6272_v61, %v3061_v13  ;;  %v4333_v48 = vpop.f32.mrb[60].mxu0  ;;  %v3404_v0 = vmul.f32 %v4829_v27, %v3304_v38  ;;  %v3405_v33 = vmul.f32 %v4835_v35, %v3303_v50  ;;  %v3277_v58 = vrot.slane %v4837_v10, 1 }
 0x486   : > { %4848 = vtanh.f32 %v3155_v46  ;;  %v3076_v53 = vadd.f32 %v4333_v48, %v6920_v5  ;;  %v3070_v44 = vpop.f32.mrb[61].mxu0  ;;  %v3276_v36 = vrot.slane %v4839_v16, 1 }
 0x487   : > { %4850 = vtanh.f32 %v3154_v8  ;;  %v3071_v56 = vadd.f32 %v3070_v44, %v6465_v37  ;;  %v4481_v17 = vpack.c.bf16 %v3404_v0, %v3403_v49 }
 0x488   : > { %v4841_v20 = vpop.eup %4840  ;;  %v3157_v45 = vadd.f32 %v4860_v59, %v3076_v53  ;;  %v3302_v9 = vsel %vm3290_vm2, %v3275_v24, %v3276_v36  ;;  %v3301_v61 = vsel %vm3290_vm2, %v3276_v36, %v3277_v58 }
 0x489   : > { %v4843_v27 = vpop.eup %4842  ;;  %v3156_v3 = vadd.f32 %v4860_v59, %v3071_v56  ;;  %v4336_v35 = vpop.f32.mrb[62].mxu0  ;;  %4482 = vmatprep.subr.bf16.mxu1 %v4481_v17  ;;  %4094 = vmatmul.mubr.f32.vlgmr.msra.gmra.mrb[46].mxu1 %v6708_v26  ;;  %v3406_v25 = vmul.f32 %v4833_v52, %v3302_v9  ;;  %v3407_v37 = vmul.f32 %v4839_v16, %v3301_v61  ;;  %v3279_v49 = vrot.slane %v4841_v20, 1 }
 0x48a   : > { %4852 = vtanh.f32 %v3157_v45  ;;  %v3086_v62 = vadd.f32 %v4336_v35, %v6470_v41  ;;  %v3080_v60 = vpop.f32.mrb[63].mxu0  ;;  %4484 = vmatpush3.bf16.xpose.msra.mxu1 %v4483_v19  ;;  %v3278_v24 = vrot.slane %v4843_v27, 1  ;;  %4127 = vmatprep.mubr.f32.mxu1 %v6708_v26 }
 0x48b   : > { %4854 = vtanh.f32 %v3156_v3  ;;  %v3081_v40 = vadd.f32 %v3080_v60, %v6477_v23  ;;  %v4485_v21 = vpack.c.bf16 %v3406_v25, %v3405_v33 }
 0x48c   : > { %v4845_v43 = vpop.eup %4844  ;;  %v3159_v57 = vadd.f32 %v4860_v59, %v3086_v62  ;;  %v3300_v52 = vsel %vm3290_vm2, %v3277_v58, %v3278_v24  ;;  %v3299_v41 = vsel %vm3290_vm2, %v3278_v24, %v3279_v49 }
 0x48d   : > { %v4847_v13 = vpop.eup %4846  ;;  %v3158_v46 = vadd.f32 %v4860_v59, %v3081_v40  ;;  %4486 = vmatprep.subr.bf16.mxu1 %v4485_v21  ;;  %v3408_v30 = vmul.f32 %v4837_v10, %v3300_v52  ;;  %v3409_v54 = vmul.f32 %v4843_v27, %v3299_v41  ;;  %v3281_v19 = vrot.slane %v4845_v43, 1 }
 0x48e   : > { %4856 = vtanh.f32 %v3159_v57  ;;  %v3280_v38 = vrot.slane %v4847_v13, 1  ;;  %v6923_v41 = vlaneseq }
 0x48f   : > { %4858 = vtanh.f32 %v3158_v46  ;;  %v4489_v50 = vpack.c.bf16 %v3408_v30, %v3407_v37 }
 0x490   : > { %v4849_v23 = vpop.eup %4848  ;;  %v3298_v16 = vsel %vm3290_vm2, %v3279_v49, %v3280_v38  ;;  %v3297_v8 = vsel %vm3290_vm2, %v3280_v38, %v3281_v19  ;;  %v6921_v49 = vld [vmem:[#allocation24_spill] sm:$0xff]  ;;  %vm3599_vm3 = vcmp.lt.s32.totalorder %v6923_v41, 512 }
 0x491   : > { %v4851_v48 = vpop.eup %4850  ;;  %v3410_v0 = vmul.f32 %v4841_v20, %v3298_v16  ;;  %v3411_v33 = vmul.f32 %v4847_v13, %v3297_v8  ;;  %v3283_v58 = vrot.slane %v4849_v23, 1  ;;  %v6922_v62 = vrot.slane %v6921_v49, 1 }
 0x492   : > { %4488 = vmatpush3.bf16.xpose.msra.mxu1 %v4487_v1  ;;  %v3282_v10 = vrot.slane %v4851_v48, 1 }
 0x493   : > { %4490 = vmatprep.subr.bf16.mxu1 %v4489_v50  ;;  %v4493_v5 = vpack.c.bf16 %v3410_v0, %v3409_v54 }
 0x494   : > { %v4853_v53 = vpop.eup %4852  ;;  %v3296_v44 = vsel %vm3290_vm2, %v3281_v19, %v3282_v10  ;;  %v3295_v36 = vsel %vm3290_vm2, %v3282_v10, %v3283_v58 }
 0x495   : > { %v4855_v56 = vpop.eup %4854  ;;  %v3412_v17 = vmul.f32 %v4845_v43, %v3296_v44  ;;  %v3413_v59 = vmul.f32 %v4851_v48, %v3295_v36  ;;  %v3285_v20 = vrot.slane %v4853_v53, 1 }
 0x496   : > { %v3284_v45 = vrot.slane %v4855_v56, 1 }
 0x497   : > { %v4497_v9 = vpack.c.bf16 %v3412_v17, %v3411_v33 }
 0x498   : > { %v4857_v61 = vpop.eup %4856  ;;  %v3294_v42 = vsel %vm3290_vm2, %v3283_v58, %v3284_v45  ;;  %v3293_v6 = vsel %vm3290_vm2, %v3284_v45, %v3285_v20 }
 0x499   : > { %v4859_v1 = vpop.eup %4858  ;;  %v3414_v27 = vmul.f32 %v4849_v23, %v3294_v42  ;;  %v3415_v3 = vmul.f32 %v4855_v56, %v3293_v6  ;;  %v3287_v35 = vrot.slane %v4857_v61, 1 }
 0x49a   : > { %4492 = vmatpush3.bf16.xpose.msra.mxu1 %v4491_v31  ;;  %v3286_v25 = vrot.slane %v4859_v1, 1 }
 0x49b   : > { %4494 = vmatprep.subr.bf16.mxu1 %v4493_v5  ;;  %v4501_v37 = vpack.c.bf16 %v3414_v27, %v3413_v59  ;;  %v3354_v60 = vsel %vm3290_vm2, %v3287_v35, %v6922_v62 }
 0x49c   : > { %v3292_v24 = vsel %vm3290_vm2, %v3285_v20, %v3286_v25  ;;  %v3291_v40 = vsel %vm3290_vm2, %v3286_v25, %v3287_v35  ;;  %v3418_v21 = vmul.f32 %v4857_v61, %v3354_v60 }
 0x49d   : > { %v3416_v43 = vmul.f32 %v4853_v53, %v3292_v24  ;;  %v3417_v57 = vmul.f32 %v4859_v1, %v3291_v40 }
 0x49f   : > { %v4505_v52 = vpack.c.bf16 %v3416_v43, %v3415_v3  ;;  %v4509_v14 = vpack.c.bf16 %v3418_v21, %v3417_v57 }
 0x4a2   : > { %4496 = vmatpush3.bf16.xpose.msra.mxu1 %v4495_v7 }
 0x4a3   : > { %4498 = vmatprep.subr.bf16.mxu1 %v4497_v9 }
 0x4aa   : > { %4500 = vmatpush3.bf16.xpose.msra.mxu1 %v4499_v32  ;;  %v3576_v32 = vunpack.c.0.s8 %v3575_v55 }
 0x4ab   : > { %4502 = vmatprep.subr.bf16.mxu1 %v4501_v37 }
 0x4ac   : > { %v3579_v51 = vsub.s32 %v3576_v32, %v6293_v18 }
 0x4b2   : > { %4504 = vmatpush3.bf16.xpose.msra.mxu1 %v4503_v15 }
 0x4b3   : > { %4506 = vmatprep.subr.bf16.mxu1 %v4505_v52 }
 0x4ba   : > { %4508 = vmatpush3.bf16.xpose.msra.mxu1 %v4507_v39 }
 0x4bb   : > { %4510 = vmatprep.subr.bf16.mxu1 %v4509_v14 }
 0x4c2   : > { %4512 = vmatpush3.bf16.xpose.msra.mxu1 %v4511_v34 }
 0x4c9   : > { %4128 = vmatmul.mubr.f32.vlgmr.msra.gmra.mrb[48].mxu1 %v6708_v26 }
 0x55c   : > { %v3486_v47 = vpop.f32.mrb[46].mxu1 }
 0x55d   : > { %v3564_v31 = vadd.f32 %v3563_v12, %v3486_v47  ;;  %v3488_v11 = vpop.f32.mrb[47].mxu1 }
 0x55e   : > { %v3565_v22 = vadd.f32 %v3563_v12, %v3488_v11 }
 0x560   : > { %v3572_v7 = vcombine.low %v3564_v31, %v3565_v22 }
 0x562   : > { %v3580_v29 = vrot.slane %v3572_v7, %v3579_v51 }
 0x59c   : > { %v3557_v2 = vpop.f32.mrb[48].mxu1 }
 0x59d   : > { %v3566_v63 = vadd.f32 %v3563_v12, %v3557_v2  ;;  %v3559_v15 = vpop.f32.mrb[49].mxu1 }
 0x59e   : > { %v3567_v4 = vadd.f32 %v3563_v12, %v3559_v15 }
 0x5a0   : > { %v3573_v39 = vcombine.low %v3566_v63, %v3567_v4 }
 0x5a2   : > { %v3587_v34 = vrot.slane %v3573_v39, %v3579_v51 }
 0x5a4   : > { %v3588_v26 = vcombine.low %v3580_v29, %v3587_v34 }
 0x5a6   : > { %v3595_v13 = vrot.slane %v3588_v26, %v3579_v51 }
 0x5a8   : > { %3601 = vst.msk [vmem:[%s427_s4] sm:$0xf] %vm3599_vm3, %v3595_v13 }
 0x5a9 PF: > { %s6924_s27 = sld [smem:[#allocation42_spill]]  ;;  %s6925_s13 = sld [smem:[#allocation21_spill]] }
 0x5aa   : > { %s3617_s25 = sshll.u32 %s427_s4, 4  ;;  %s3603_s7 = scalar_lea.sflag [#allocation6], %s425_s8  ;;  %s3618_s25 = int_to_ptr.vmem [resolvable:$true] %s3617_s25 }
 0x5ab   : > { %s5004_s28 = scalar_lea.vmem %s3618_s25, 64  ;;  %s5149_s17 = smov [#allocation13]  }
 0x5ac   : > { %p5005_p5 = scmp.ne.s32.totalorder %s3618_s25, %s5004_s28  ;;  %s5008_s29 = sshll.u32 %s5149_s17, 4  ;;  %s5009_s29 = int_to_ptr.vmem [resolvable:$false] %s5008_s29 }
 0x5ad   : > { %s5010_s26 = scalar_lea.vmem %s5009_s29, 128  ;;  %p5011_p4 = scmp.lt.s32.totalorder %s3618_s25, %s5009_s29 }
 0x5ae   : > { %p5012_p7 = scmp.lt.s32.totalorder %s5010_s26, %s5004_s28 }
 0x5af   : > { %s6771_s19 = scalar_lea.hbm %s6924_s27, %s5491_s2  ;;  %p6926_p6 = scmp.ne.s32.totalorder %s6925_s13, 0 }
 0x5b0   : > { %p5013_p2 = por %p5012_p7, %p5011_p4 }
 0x5b1   : > { %p5006_p8 = pnand %p5005_p5, %p6926_p6 }
 0x5b3   : > { %p5007_p12 = pneg %p5006_p8 }
 0x5b5   : > { %p5014_p0 = pnand %p5013_p2, %p5007_p12 }
 0x5b7   : > { %5017 = shalt.err (!%p5014_p0)
}
 0x5b8   : > { %s5018_s8 = scalar_lea.hbm %s6771_s19, 64  ;;  %s5022_s20 = scalar_lea.hbm %s6924_s27, 128 }
 0x5b9   : > { %p5019_p1 = scmp.ne.s32.totalorder %s6771_s19, %s5018_s8  ;;  %p5023_p11 = scmp.lt.u32.totalorder %s6771_s19, %s6924_s27 }
 0x5ba   : > { %p5024_p9 = scmp.lt.u32.totalorder %s5022_s20, %s5018_s8  ;;  %p5026_p5 = scmp.lt.u32.totalorder %s5018_s8, %s6771_s19 }
 0x5bb   : > { %p5020_p3 = pnand %p5019_p1, %p6926_p6 }
 0x5bc   : > { %p5025_p13 = por %p5024_p9, %p5023_p11 }
 0x5bd   : > { %p5021_p10 = pneg %p5020_p3 }
 0x5be   : > { %p5027_p8 = por %p5026_p5, %p5025_p13 }
 0x5c0   : > { %p5028_p12 = pnand %p5027_p8, %p5021_p10 }
 0x5c2   : > { %5031 = shalt.err (!%p5028_p12)
}
 0x5c3   : > { %4599 = dma.vmem_to_hbm [thread:$0]  (%p6926_p6), %s3618_s25, 64, %s6771_s19, %s3603_s7  }
 0x5c4 PF: > { %s6927_s4 = sld [smem:[#allocation18_spill]]  ;;  %s6928_s5 = sld [smem:[#allocation22_spill]] }
 0x5c5   : > { %p4631_p4 = scmp.ge.s32.totalorder %s5134_s16, 2 }
 0x5ca   : > { %s3629_s6 = sand.u32 1, %s6927_s4   ;;  %p6929_p7 = scmp.ne.s32.totalorder %s6928_s5, 0 }
 0x5cb   : > { %s3630_s3 = scalar_lea.sflag [#allocation6], %s3629_s6 }
 0x5cc   : > { %p4619_p2 = pnand %p4631_p4, %p6929_p7 }
 0x5ce   : > { %5089 = dma.done.wait (!%p4619_p2), %s3630_s3, 64  }
 0x5cf   : > { %5091 = vsyncadd (!%p4619_p2), %s3630_s3, 4294967232  ;;  %s27_s16 = sadd.s32 1, %s5134_s16   ;;  %s6930_s24 = sld [smem:[#allocation23_spill]] }
 0x5d0   : > { %p24_p0 = scmp.ge.s32.totalorder %s27_s16, 6   ;;  %s6931_s19 = smov %s6947_s10 }
 0x5d1   : > { %s6932_s29 = smov %s5098_s30  ;;  %s6933_s30 = smov %s5102_s9 }
 0x5d2   : > { %s6934_s9 = smov %s5419_s1  ;;  %s6935_s10 = smov %s5110_s11 }
 0x5d3   : > { %s6936_s11 = smov %s5114_s12  ;;  %s6937_s12 = smov %s5422_s18 }
 0x5d4   : > { %s6938_s13 = smov %s5126_s14  ;;  %s6939_s7 = smov %s5130_s15 }
 0x5d5   : > { %s6940_s14 = smov %s6930_s24  ;;  %s6941_s15 = smov %s6931_s19 }
 0x5d6   :  { %26 = sbr.rel (!%p24_p0) target bundleno = 20 (0x14), region = 127 }
 0x5dd   :  { %3635 = vsyncpa [#allocation5], 1 }
 0x5de   :  { %3637 = vsyncpa [#allocation5 + $0x1], 1 }
 0x5df   :  { %3638 = vsyncpa [#allocation8], 1 }
 0x5e0   :  { %3639 = vsyncpa [#allocation11], 1 }
 0x5e1   :  { %3640 = vsyncpa [#allocation6], 1 }
 0x5e2   :  { %3642 = vsyncpa [#allocation6 + $0x1], 1 }

</bundles_post_ra>
